<compile_context>
chip_gen: v7x
topology: tpu7x:2x2x1
jax: 0.10.0
libtpu: 0.0.40
codegen_flags: <defaults>
</compile_context>

<pallas_src>
import math
import functools

import jax
import jax.numpy as jnp
from jax.experimental import pallas as pl
from jax.experimental.pallas import tpu as pltpu


# ----------------------------------------------------------------------------
# Fused decoder-stack kernel (one program per batch element)
# ----------------------------------------------------------------------------

def _decoder_stack_kernel(
        trg_ref, enc_ref, pe_ref,
        ln_g_ref, ln_b_ref,
        wqkv1_ref, bqkv1_ref, wo1_ref, bo1_ref,
        wqkv2_ref, bqkv2_ref, wo2_ref, bo2_ref,
        ffw1_ref, ffb1_ref, ffw2_ref, ffb2_ref,
        ng_ref, nb_ref,
        o_ref,
        *, n_layers, n_heads):
    Sq, D = pe_ref.shape
    dk = D // n_heads
    scale = 1.0 / math.sqrt(dk)

    # Positional encoding: x = trg * sqrt(D) + pe
    x = trg_ref[0] * math.sqrt(D) + pe_ref[...]          # (Sq, D) f32
    enc = enc_ref[0]                                     # (Sk, D) f32

    def layer_norm(v, g, b):
        m = jnp.mean(v, axis=-1, keepdims=True)
        c = v - m
        var = jnp.mean(c * c, axis=-1, keepdims=True)
        return c * jax.lax.rsqrt(var + 1e-5) * g + b

    def softmax_rows(s):
        s = s - jnp.max(s, axis=-1, keepdims=True)
        p = jnp.exp(s)
        return p * pl.reciprocal(jnp.sum(p, axis=-1, keepdims=True), approx=True)

    def mha(q_in, kv_in, is_self, wqkv, bqkv, wo, bo):
        # q_in: (Sq', D), kv_in: (Skv, D); wqkv: (D, 3D) = [Wq | Wk | Wv]
        if is_self:
            qkv = jnp.dot(q_in, wqkv, preferred_element_type=jnp.float32) + bqkv
            q = qkv[:, :D]
            k = qkv[:, D:2 * D]
            v = qkv[:, 2 * D:]
        else:
            q = jnp.dot(q_in, wqkv[:, :D],
                        preferred_element_type=jnp.float32) + bqkv[:, :D]
            kv = jnp.dot(kv_in, wqkv[:, D:],
                         preferred_element_type=jnp.float32) + bqkv[:, D:]
            k = kv[:, :D]
            v = kv[:, D:]
        q = q * scale                                     # fold 1/sqrt(dk) once
        out = jnp.zeros((q.shape[0], D), jnp.float32)
        for h in range(n_heads):                          # static head loop, in-VMEM slices
            sl = slice(h * dk, (h + 1) * dk)
            s = jax.lax.dot_general(q[:, sl], k[:, sl],
                                    (((1,), (1,)), ((), ())),
                                    preferred_element_type=jnp.float32)  # (Sq', Skv)
            p = softmax_rows(s)
            oh = jnp.dot(p, v[:, sl], preferred_element_type=jnp.float32)  # (Sq', dk)
            # concat(heads) @ Wo  ==  sum_h  head_h @ Wo[h*dk:(h+1)*dk, :]
            out = out + jnp.dot(oh, wo[sl, :], preferred_element_type=jnp.float32)
        return out + bo

    for l in range(n_layers):                             # static layer loop, weights resident
        g = ln_g_ref[l]                                   # (3, D)
        b = ln_b_ref[l]
        # self-attention block
        x2 = layer_norm(x, g[0:1, :], b[0:1, :])
        x = x + mha(x2, x2, True,
                    wqkv1_ref[l], bqkv1_ref[l], wo1_ref[l], bo1_ref[l])
        # cross-attention block
        x2 = layer_norm(x, g[1:2, :], b[1:2, :])
        x = x + mha(x2, enc, False,
                    wqkv2_ref[l], bqkv2_ref[l], wo2_ref[l], bo2_ref[l])
        # feed-forward block (fused relu(x@W1+b1)@W2+b2)
        x2 = layer_norm(x, g[2:3, :], b[2:3, :])
        h1 = jnp.maximum(
            jnp.dot(x2, ffw1_ref[l], preferred_element_type=jnp.float32) + ffb1_ref[l],
            0.0)
        x = x + jnp.dot(h1, ffw2_ref[l], preferred_element_type=jnp.float32) + ffb2_ref[l]

    # final layer norm, lane-dense (Sq, D) store
    x = layer_norm(x, ng_ref[...], nb_ref[...])
    o_ref[0] = x.astype(o_ref.dtype)


# ----------------------------------------------------------------------------
# Wrapper: single pallas_call for the whole decoder stack
# ----------------------------------------------------------------------------

def tf_decoder_forward(trg, enc_output, params, n_heads):
    B, Sq, D = trg.shape
    Sk = enc_output.shape[1]
    n_layers = params["ln_g"].shape[0]
    pe = params["pe"][:Sq]

    def full_spec(arr):
        nd = arr.ndim
        return pl.BlockSpec(arr.shape, lambda b: (0,) * nd)

    weight_names = ["ln_g", "ln_b",
                    "wqkv1", "bqkv1", "wo1", "bo1",
                    "wqkv2", "bqkv2", "wo2", "bo2",
                    "ffw1", "ffb1", "ffw2", "ffb2",
                    "norm_g", "norm_b"]
    weights = [params[n] for n in weight_names]

    in_specs = ([pl.BlockSpec((1, Sq, D), lambda b: (b, 0, 0)),   # trg (per batch)
                 pl.BlockSpec((1, Sk, D), lambda b: (b, 0, 0)),   # enc (per batch)
                 full_spec(pe)]                                   # positional encoding
                + [full_spec(w) for w in weights])                # all layer params

    return pl.pallas_call(
        functools.partial(_decoder_stack_kernel,
                          n_layers=n_layers, n_heads=n_heads),
        out_shape=jax.ShapeDtypeStruct((B, Sq, D), trg.dtype),
        grid=(B,),
        in_specs=in_specs,
        out_specs=pl.BlockSpec((1, Sq, D), lambda b: (b, 0, 0)),
        compiler_params=pltpu.CompilerParams(
            dimension_semantics=("parallel",)),   # shards batches across v7x's 2 TCs
    )(trg, enc_output, pe, *weights)


# ----------------------------------------------------------------------------
# Deterministic parameter construction
# ----------------------------------------------------------------------------

def make_positional_encoding(max_len, d_model):
    position = jnp.arange(max_len, dtype=jnp.float32)[:, None]
    div_term = jnp.exp(jnp.arange(0, d_model, 2, dtype=jnp.float32)
                       * (-math.log(10000.0) / d_model))
    pe = jnp.zeros((max_len, d_model), dtype=jnp.float32)
    pe = pe.at[:, 0::2].set(jnp.sin(position * div_term))
    pe = pe.at[:, 1::2].set(jnp.cos(position * div_term))
    return pe


def make_params(key, d_model, n_layers, d_ff, max_seq_len):
    D, F, L = d_model, d_ff, n_layers
    params = {"pe": make_positional_encoding(max_seq_len, D)}

    def dense(k, din, dout):
        return jax.random.normal(k, (din, dout), dtype=jnp.float32) * 0.02

    wqkv1, wo1, wqkv2, wo2, ffw1, ffw2 = [], [], [], [], [], []
    for l in range(L):
        keys = jax.random.split(jax.random.fold_in(key, l), 10)
        wqkv1.append(jnp.concatenate(
            [dense(keys[0], D, D), dense(keys[1], D, D), dense(keys[2], D, D)], axis=1))
        wo1.append(dense(keys[3], D, D))
        wqkv2.append(jnp.concatenate(
            [dense(keys[4], D, D), dense(keys[5], D, D), dense(keys[6], D, D)], axis=1))
        wo2.append(dense(keys[7], D, D))
        ffw1.append(dense(keys[8], D, F))
        ffw2.append(dense(keys[9], F, D))

    params.update(
        ln_g=jnp.ones((L, 3, D), jnp.float32),
        ln_b=jnp.zeros((L, 3, D), jnp.float32),
        wqkv1=jnp.stack(wqkv1), bqkv1=jnp.zeros((L, 1, 3 * D), jnp.float32),
        wo1=jnp.stack(wo1),     bo1=jnp.zeros((L, 1, D), jnp.float32),
        wqkv2=jnp.stack(wqkv2), bqkv2=jnp.zeros((L, 1, 3 * D), jnp.float32),
        wo2=jnp.stack(wo2),     bo2=jnp.zeros((L, 1, D), jnp.float32),
        ffw1=jnp.stack(ffw1),   ffb1=jnp.zeros((L, 1, F), jnp.float32),
        ffw2=jnp.stack(ffw2),   ffb2=jnp.zeros((L, 1, D), jnp.float32),
        norm_g=jnp.ones((1, D), jnp.float32),
        norm_b=jnp.zeros((1, D), jnp.float32),
    )
    return params


# ----------------------------------------------------------------------------
# Main
# ----------------------------------------------------------------------------

if __name__ == "__main__":
    d_model, n_layers, n_heads, d_ff, max_seq_len = 32, 2, 4, 64, 16
    B, S_trg, S_enc = 2, 8, 8

    root = jax.random.PRNGKey(0)
    k_trg, k_enc, k_par = jax.random.split(root, 3)
    trg = jax.random.normal(k_trg, (B, S_trg, d_model), dtype=jnp.float32)
    enc_output = jax.random.normal(k_enc, (B, S_enc, d_model), dtype=jnp.float32)
    params = make_params(k_par, d_model, n_layers, d_ff, max_seq_len)

    out = tf_decoder_forward(trg, enc_output, params, n_heads)
    out = jax.block_until_ready(out)
    assert out.shape == (B, S_trg, d_model)
    assert bool(jnp.all(jnp.isfinite(out)))
    print("KERNEL_OK")
</pallas_src>

<mosaic_0001>
module attributes {stable_mosaic.version = 11 : i64} {
  func.func @_decoder_stack_kernel(%arg0: i32, %arg1: memref<1x8x32xf32, #tpu.memory_space<vmem>>, %arg2: memref<1x8x32xf32, #tpu.memory_space<vmem>>, %arg3: memref<8x32xf32, #tpu.memory_space<vmem>>, %arg4: memref<2x3x32xf32, #tpu.memory_space<vmem>>, %arg5: memref<2x3x32xf32, #tpu.memory_space<vmem>>, %arg6: memref<2x32x96xf32, #tpu.memory_space<vmem>>, %arg7: memref<2x1x96xf32, #tpu.memory_space<vmem>>, %arg8: memref<2x32x32xf32, #tpu.memory_space<vmem>>, %arg9: memref<2x1x32xf32, #tpu.memory_space<vmem>>, %arg10: memref<2x32x96xf32, #tpu.memory_space<vmem>>, %arg11: memref<2x1x96xf32, #tpu.memory_space<vmem>>, %arg12: memref<2x32x32xf32, #tpu.memory_space<vmem>>, %arg13: memref<2x1x32xf32, #tpu.memory_space<vmem>>, %arg14: memref<2x32x64xf32, #tpu.memory_space<vmem>>, %arg15: memref<2x1x64xf32, #tpu.memory_space<vmem>>, %arg16: memref<2x64x32xf32, #tpu.memory_space<vmem>>, %arg17: memref<2x1x32xf32, #tpu.memory_space<vmem>>, %arg18: memref<1x32xf32, #tpu.memory_space<vmem>>, %arg19: memref<1x32xf32, #tpu.memory_space<vmem>>, %arg20: memref<1x8x32xf32, #tpu.memory_space<vmem>>) attributes {dimension_semantics = [#tpu.dimension_semantics<parallel>], iteration_bounds = array<i64: 2>, scalar_prefetch = 0 : i64, scratch_operands = 0 : i64, tpu.core_type = #tpu.core_type<tc>, window_params = [{transform_indices = @transform_0, window_bounds = array<i64: 1, 8, 32>}, {transform_indices = @transform_1, window_bounds = array<i64: 1, 8, 32>}, {pipeline_mode = #tpu.pipeline_mode<synchronous>, transform_indices = @transform_2, window_bounds = array<i64: 8, 32>}, {pipeline_mode = #tpu.pipeline_mode<synchronous>, transform_indices = @transform_3, window_bounds = array<i64: 2, 3, 32>}, {pipeline_mode = #tpu.pipeline_mode<synchronous>, transform_indices = @transform_4, window_bounds = array<i64: 2, 3, 32>}, {pipeline_mode = #tpu.pipeline_mode<synchronous>, transform_indices = @transform_5, window_bounds = array<i64: 2, 32, 96>}, {pipeline_mode = #tpu.pipeline_mode<synchronous>, transform_indices = @transform_6, window_bounds = array<i64: 2, 1, 96>}, {pipeline_mode = #tpu.pipeline_mode<synchronous>, transform_indices = @transform_7, window_bounds = array<i64: 2, 32, 32>}, {pipeline_mode = #tpu.pipeline_mode<synchronous>, transform_indices = @transform_8, window_bounds = array<i64: 2, 1, 32>}, {pipeline_mode = #tpu.pipeline_mode<synchronous>, transform_indices = @transform_9, window_bounds = array<i64: 2, 32, 96>}, {pipeline_mode = #tpu.pipeline_mode<synchronous>, transform_indices = @transform_10, window_bounds = array<i64: 2, 1, 96>}, {pipeline_mode = #tpu.pipeline_mode<synchronous>, transform_indices = @transform_11, window_bounds = array<i64: 2, 32, 32>}, {pipeline_mode = #tpu.pipeline_mode<synchronous>, transform_indices = @transform_12, window_bounds = array<i64: 2, 1, 32>}, {pipeline_mode = #tpu.pipeline_mode<synchronous>, transform_indices = @transform_13, window_bounds = array<i64: 2, 32, 64>}, {pipeline_mode = #tpu.pipeline_mode<synchronous>, transform_indices = @transform_14, window_bounds = array<i64: 2, 1, 64>}, {pipeline_mode = #tpu.pipeline_mode<synchronous>, transform_indices = @transform_15, window_bounds = array<i64: 2, 64, 32>}, {pipeline_mode = #tpu.pipeline_mode<synchronous>, transform_indices = @transform_16, window_bounds = array<i64: 2, 1, 32>}, {pipeline_mode = #tpu.pipeline_mode<synchronous>, transform_indices = @transform_17, window_bounds = array<i64: 1, 32>}, {pipeline_mode = #tpu.pipeline_mode<synchronous>, transform_indices = @transform_18, window_bounds = array<i64: 1, 32>}, {transform_indices = @transform_19, window_bounds = array<i64: 1, 8, 32>}]} {
    %c0 = arith.constant 0 : index
    %c0_0 = arith.constant 0 : index
    %c0_1 = arith.constant 0 : index
    %0 = vector.load %arg1[%c0, %c0_0, %c0_1] : memref<1x8x32xf32, #tpu.memory_space<vmem>>, vector<1x8x32xf32>
    %1 = vector.shape_cast %0 : vector<1x8x32xf32> to vector<8x32xf32>
    %cst = arith.constant 5.65685415 : f32
    %2 = vector.broadcast %cst : f32 to vector<8x32xf32>
    %3 = arith.mulf %1, %2 : vector<8x32xf32>
    %c0_2 = arith.constant 0 : index
    %c0_3 = arith.constant 0 : index
    %4 = vector.load %arg3[%c0_2, %c0_3] : memref<8x32xf32, #tpu.memory_space<vmem>>, vector<8x32xf32>
    %5 = arith.addf %3, %4 : vector<8x32xf32>
    %c0_4 = arith.constant 0 : index
    %c0_5 = arith.constant 0 : index
    %c0_6 = arith.constant 0 : index
    %6 = vector.load %arg2[%c0_4, %c0_5, %c0_6] : memref<1x8x32xf32, #tpu.memory_space<vmem>>, vector<1x8x32xf32>
    %7 = vector.shape_cast %6 : vector<1x8x32xf32> to vector<8x32xf32>
    %c0_7 = arith.constant 0 : index
    %c0_8 = arith.constant 0 : index
    %c0_9 = arith.constant 0 : index
    %8 = vector.load %arg4[%c0_7, %c0_8, %c0_9] : memref<2x3x32xf32, #tpu.memory_space<vmem>>, vector<1x3x32xf32>
    %9 = vector.shape_cast %8 : vector<1x3x32xf32> to vector<3x32xf32>
    %c0_10 = arith.constant 0 : index
    %c0_11 = arith.constant 0 : index
    %c0_12 = arith.constant 0 : index
    %10 = vector.load %arg5[%c0_10, %c0_11, %c0_12] : memref<2x3x32xf32, #tpu.memory_space<vmem>>, vector<1x3x32xf32>
    %11 = vector.shape_cast %10 : vector<1x3x32xf32> to vector<3x32xf32>
    %12 = vector.extract_strided_slice %9 {offsets = [0, 0], sizes = [1, 32], strides = [1, 1]} : vector<3x32xf32> to vector<1x32xf32>
    %13 = vector.extract_strided_slice %11 {offsets = [0, 0], sizes = [1, 32], strides = [1, 1]} : vector<3x32xf32> to vector<1x32xf32>
    %cst_13 = arith.constant dense<0.000000e+00> : vector<8xf32>
    %14 = vector.multi_reduction <add>, %5, %cst_13 [1] : vector<8x32xf32> to vector<8xf32>
    %15 = vector.shape_cast %14 : vector<8xf32> to vector<8x1xf32>
    %cst_14 = arith.constant 3.200000e+01 : f32
    %16 = vector.broadcast %cst_14 : f32 to vector<8x1xf32>
    %17 = arith.divf %15, %16 : vector<8x1xf32>
    %18 = vector.broadcast %17 : vector<8x1xf32> to vector<8x32xf32>
    %19 = arith.subf %5, %18 : vector<8x32xf32>
    %20 = arith.mulf %19, %19 : vector<8x32xf32>
    %cst_15 = arith.constant dense<0.000000e+00> : vector<8xf32>
    %21 = vector.multi_reduction <add>, %20, %cst_15 [1] : vector<8x32xf32> to vector<8xf32>
    %22 = vector.shape_cast %21 : vector<8xf32> to vector<8x1xf32>
    %cst_16 = arith.constant 3.200000e+01 : f32
    %23 = vector.broadcast %cst_16 : f32 to vector<8x1xf32>
    %24 = arith.divf %22, %23 : vector<8x1xf32>
    %cst_17 = arith.constant 9.99999974E-6 : f32
    %25 = vector.broadcast %cst_17 : f32 to vector<8x1xf32>
    %26 = arith.addf %24, %25 : vector<8x1xf32>
    %27 = math.rsqrt %26 : vector<8x1xf32>
    %28 = vector.broadcast %27 : vector<8x1xf32> to vector<8x32xf32>
    %29 = arith.mulf %19, %28 : vector<8x32xf32>
    %30 = vector.broadcast %12 : vector<1x32xf32> to vector<8x32xf32>
    %31 = arith.mulf %29, %30 : vector<8x32xf32>
    %32 = vector.broadcast %13 : vector<1x32xf32> to vector<8x32xf32>
    %33 = arith.addf %31, %32 : vector<8x32xf32>
    %c0_18 = arith.constant 0 : index
    %c0_19 = arith.constant 0 : index
    %c0_20 = arith.constant 0 : index
    %34 = vector.load %arg6[%c0_18, %c0_19, %c0_20] : memref<2x32x96xf32, #tpu.memory_space<vmem>>, vector<1x32x96xf32>
    %35 = vector.shape_cast %34 : vector<1x32x96xf32> to vector<32x96xf32>
    %c0_21 = arith.constant 0 : index
    %c0_22 = arith.constant 0 : index
    %c0_23 = arith.constant 0 : index
    %36 = vector.load %arg7[%c0_21, %c0_22, %c0_23] : memref<2x1x96xf32, #tpu.memory_space<vmem>>, vector<1x1x96xf32>
    %37 = vector.shape_cast %36 : vector<1x1x96xf32> to vector<1x96xf32>
    %c0_24 = arith.constant 0 : index
    %c0_25 = arith.constant 0 : index
    %c0_26 = arith.constant 0 : index
    %38 = vector.load %arg8[%c0_24, %c0_25, %c0_26] : memref<2x32x32xf32, #tpu.memory_space<vmem>>, vector<1x32x32xf32>
    %39 = vector.shape_cast %38 : vector<1x32x32xf32> to vector<32x32xf32>
    %c0_27 = arith.constant 0 : index
    %c0_28 = arith.constant 0 : index
    %c0_29 = arith.constant 0 : index
    %40 = vector.load %arg9[%c0_27, %c0_28, %c0_29] : memref<2x1x32xf32, #tpu.memory_space<vmem>>, vector<1x1x32xf32>
    %41 = vector.shape_cast %40 : vector<1x1x32xf32> to vector<1x32xf32>
    %cst_30 = arith.constant dense<0.000000e+00> : vector<8x96xf32>
    %42 = tpu.matmul %33, %35, %cst_30 {dimension_numbers = #tpu.dot_dimension_numbers<[1], [0], [0], [1], [0, 0, 1, 1], [], []>} : vector<8x32xf32>, vector<32x96xf32>, vector<8x96xf32> -> vector<8x96xf32>
    %43 = vector.broadcast %37 : vector<1x96xf32> to vector<8x96xf32>
    %44 = arith.addf %42, %43 : vector<8x96xf32>
    %45 = vector.extract_strided_slice %44 {offsets = [0, 0], sizes = [8, 32], strides = [1, 1]} : vector<8x96xf32> to vector<8x32xf32>
    %46 = vector.extract_strided_slice %44 {offsets = [0, 32], sizes = [8, 32], strides = [1, 1]} : vector<8x96xf32> to vector<8x32xf32>
    %47 = vector.extract_strided_slice %44 {offsets = [0, 64], sizes = [8, 32], strides = [1, 1]} : vector<8x96xf32> to vector<8x32xf32>
    %cst_31 = arith.constant 0.353553385 : f32
    %48 = vector.broadcast %cst_31 : f32 to vector<8x32xf32>
    %49 = arith.mulf %45, %48 : vector<8x32xf32>
    %cst_32 = arith.constant 0.000000e+00 : f32
    %50 = vector.broadcast %cst_32 : f32 to vector<8x32xf32>
    %51 = vector.extract_strided_slice %49 {offsets = [0, 0], sizes = [8, 8], strides = [1, 1]} : vector<8x32xf32> to vector<8x8xf32>
    %52 = vector.extract_strided_slice %46 {offsets = [0, 0], sizes = [8, 8], strides = [1, 1]} : vector<8x32xf32> to vector<8x8xf32>
    %cst_33 = arith.constant dense<0.000000e+00> : vector<8x8xf32>
    %53 = tpu.matmul %51, %52, %cst_33 {dimension_numbers = #tpu.dot_dimension_numbers<[1], [1], [0], [0], [0, 0, 1, 0], [], []>} : vector<8x8xf32>, vector<8x8xf32>, vector<8x8xf32> -> vector<8x8xf32>
    %cst_34 = arith.constant dense<0xFF800000> : vector<8xf32>
    %54 = vector.multi_reduction <maximumf>, %53, %cst_34 [1] : vector<8x8xf32> to vector<8xf32>
    %55 = vector.shape_cast %54 : vector<8xf32> to vector<8x1xf32>
    %56 = vector.broadcast %55 : vector<8x1xf32> to vector<8x8xf32>
    %57 = arith.subf %53, %56 : vector<8x8xf32>
    %58 = math.exp %57 : vector<8x8xf32>
    %cst_35 = arith.constant dense<0.000000e+00> : vector<8xf32>
    %59 = vector.multi_reduction <add>, %58, %cst_35 [1] : vector<8x8xf32> to vector<8xf32>
    %60 = vector.shape_cast %59 : vector<8xf32> to vector<8x1xf32>
    %61 = tpu.reciprocal %60 {approx = true} : vector<8x1xf32> -> vector<8x1xf32>
    %62 = vector.broadcast %61 : vector<8x1xf32> to vector<8x8xf32>
    %63 = arith.mulf %58, %62 : vector<8x8xf32>
    %64 = vector.extract_strided_slice %47 {offsets = [0, 0], sizes = [8, 8], strides = [1, 1]} : vector<8x32xf32> to vector<8x8xf32>
    %cst_36 = arith.constant dense<0.000000e+00> : vector<8x8xf32>
    %65 = tpu.matmul %63, %64, %cst_36 {dimension_numbers = #tpu.dot_dimension_numbers<[1], [0], [0], [1], [0, 0, 1, 1], [], []>} : vector<8x8xf32>, vector<8x8xf32>, vector<8x8xf32> -> vector<8x8xf32>
    %66 = vector.extract_strided_slice %39 {offsets = [0, 0], sizes = [8, 32], strides = [1, 1]} : vector<32x32xf32> to vector<8x32xf32>
    %cst_37 = arith.constant dense<0.000000e+00> : vector<8x32xf32>
    %67 = tpu.matmul %65, %66, %cst_37 {dimension_numbers = #tpu.dot_dimension_numbers<[1], [0], [0], [1], [0, 0, 1, 1], [], []>} : vector<8x8xf32>, vector<8x32xf32>, vector<8x32xf32> -> vector<8x32xf32>
    %68 = arith.addf %50, %67 : vector<8x32xf32>
    %69 = vector.extract_strided_slice %49 {offsets = [0, 8], sizes = [8, 8], strides = [1, 1]} : vector<8x32xf32> to vector<8x8xf32>
    %70 = vector.extract_strided_slice %46 {offsets = [0, 8], sizes = [8, 8], strides = [1, 1]} : vector<8x32xf32> to vector<8x8xf32>
    %cst_38 = arith.constant dense<0.000000e+00> : vector<8x8xf32>
    %71 = tpu.matmul %69, %70, %cst_38 {dimension_numbers = #tpu.dot_dimension_numbers<[1], [1], [0], [0], [0, 0, 1, 0], [], []>} : vector<8x8xf32>, vector<8x8xf32>, vector<8x8xf32> -> vector<8x8xf32>
    %cst_39 = arith.constant dense<0xFF800000> : vector<8xf32>
    %72 = vector.multi_reduction <maximumf>, %71, %cst_39 [1] : vector<8x8xf32> to vector<8xf32>
    %73 = vector.shape_cast %72 : vector<8xf32> to vector<8x1xf32>
    %74 = vector.broadcast %73 : vector<8x1xf32> to vector<8x8xf32>
    %75 = arith.subf %71, %74 : vector<8x8xf32>
    %76 = math.exp %75 : vector<8x8xf32>
    %cst_40 = arith.constant dense<0.000000e+00> : vector<8xf32>
    %77 = vector.multi_reduction <add>, %76, %cst_40 [1] : vector<8x8xf32> to vector<8xf32>
    %78 = vector.shape_cast %77 : vector<8xf32> to vector<8x1xf32>
    %79 = tpu.reciprocal %78 {approx = true} : vector<8x1xf32> -> vector<8x1xf32>
    %80 = vector.broadcast %79 : vector<8x1xf32> to vector<8x8xf32>
    %81 = arith.mulf %76, %80 : vector<8x8xf32>
    %82 = vector.extract_strided_slice %47 {offsets = [0, 8], sizes = [8, 8], strides = [1, 1]} : vector<8x32xf32> to vector<8x8xf32>
    %cst_41 = arith.constant dense<0.000000e+00> : vector<8x8xf32>
    %83 = tpu.matmul %81, %82, %cst_41 {dimension_numbers = #tpu.dot_dimension_numbers<[1], [0], [0], [1], [0, 0, 1, 1], [], []>} : vector<8x8xf32>, vector<8x8xf32>, vector<8x8xf32> -> vector<8x8xf32>
    %84 = vector.extract_strided_slice %39 {offsets = [8, 0], sizes = [8, 32], strides = [1, 1]} : vector<32x32xf32> to vector<8x32xf32>
    %cst_42 = arith.constant dense<0.000000e+00> : vector<8x32xf32>
    %85 = tpu.matmul %83, %84, %cst_42 {dimension_numbers = #tpu.dot_dimension_numbers<[1], [0], [0], [1], [0, 0, 1, 1], [], []>} : vector<8x8xf32>, vector<8x32xf32>, vector<8x32xf32> -> vector<8x32xf32>
    %86 = arith.addf %68, %85 : vector<8x32xf32>
    %87 = vector.extract_strided_slice %49 {offsets = [0, 16], sizes = [8, 8], strides = [1, 1]} : vector<8x32xf32> to vector<8x8xf32>
    %88 = vector.extract_strided_slice %46 {offsets = [0, 16], sizes = [8, 8], strides = [1, 1]} : vector<8x32xf32> to vector<8x8xf32>
    %cst_43 = arith.constant dense<0.000000e+00> : vector<8x8xf32>
    %89 = tpu.matmul %87, %88, %cst_43 {dimension_numbers = #tpu.dot_dimension_numbers<[1], [1], [0], [0], [0, 0, 1, 0], [], []>} : vector<8x8xf32>, vector<8x8xf32>, vector<8x8xf32> -> vector<8x8xf32>
    %cst_44 = arith.constant dense<0xFF800000> : vector<8xf32>
    %90 = vector.multi_reduction <maximumf>, %89, %cst_44 [1] : vector<8x8xf32> to vector<8xf32>
    %91 = vector.shape_cast %90 : vector<8xf32> to vector<8x1xf32>
    %92 = vector.broadcast %91 : vector<8x1xf32> to vector<8x8xf32>
    %93 = arith.subf %89, %92 : vector<8x8xf32>
    %94 = math.exp %93 : vector<8x8xf32>
    %cst_45 = arith.constant dense<0.000000e+00> : vector<8xf32>
    %95 = vector.multi_reduction <add>, %94, %cst_45 [1] : vector<8x8xf32> to vector<8xf32>
    %96 = vector.shape_cast %95 : vector<8xf32> to vector<8x1xf32>
    %97 = tpu.reciprocal %96 {approx = true} : vector<8x1xf32> -> vector<8x1xf32>
    %98 = vector.broadcast %97 : vector<8x1xf32> to vector<8x8xf32>
    %99 = arith.mulf %94, %98 : vector<8x8xf32>
    %100 = vector.extract_strided_slice %47 {offsets = [0, 16], sizes = [8, 8], strides = [1, 1]} : vector<8x32xf32> to vector<8x8xf32>
    %cst_46 = arith.constant dense<0.000000e+00> : vector<8x8xf32>
    %101 = tpu.matmul %99, %100, %cst_46 {dimension_numbers = #tpu.dot_dimension_numbers<[1], [0], [0], [1], [0, 0, 1, 1], [], []>} : vector<8x8xf32>, vector<8x8xf32>, vector<8x8xf32> -> vector<8x8xf32>
    %102 = vector.extract_strided_slice %39 {offsets = [16, 0], sizes = [8, 32], strides = [1, 1]} : vector<32x32xf32> to vector<8x32xf32>
    %cst_47 = arith.constant dense<0.000000e+00> : vector<8x32xf32>
    %103 = tpu.matmul %101, %102, %cst_47 {dimension_numbers = #tpu.dot_dimension_numbers<[1], [0], [0], [1], [0, 0, 1, 1], [], []>} : vector<8x8xf32>, vector<8x32xf32>, vector<8x32xf32> -> vector<8x32xf32>
    %104 = arith.addf %86, %103 : vector<8x32xf32>
    %105 = vector.extract_strided_slice %49 {offsets = [0, 24], sizes = [8, 8], strides = [1, 1]} : vector<8x32xf32> to vector<8x8xf32>
    %106 = vector.extract_strided_slice %46 {offsets = [0, 24], sizes = [8, 8], strides = [1, 1]} : vector<8x32xf32> to vector<8x8xf32>
    %cst_48 = arith.constant dense<0.000000e+00> : vector<8x8xf32>
    %107 = tpu.matmul %105, %106, %cst_48 {dimension_numbers = #tpu.dot_dimension_numbers<[1], [1], [0], [0], [0, 0, 1, 0], [], []>} : vector<8x8xf32>, vector<8x8xf32>, vector<8x8xf32> -> vector<8x8xf32>
    %cst_49 = arith.constant dense<0xFF800000> : vector<8xf32>
    %108 = vector.multi_reduction <maximumf>, %107, %cst_49 [1] : vector<8x8xf32> to vector<8xf32>
    %109 = vector.shape_cast %108 : vector<8xf32> to vector<8x1xf32>
    %110 = vector.broadcast %109 : vector<8x1xf32> to vector<8x8xf32>
    %111 = arith.subf %107, %110 : vector<8x8xf32>
    %112 = math.exp %111 : vector<8x8xf32>
    %cst_50 = arith.constant dense<0.000000e+00> : vector<8xf32>
    %113 = vector.multi_reduction <add>, %112, %cst_50 [1] : vector<8x8xf32> to vector<8xf32>
    %114 = vector.shape_cast %113 : vector<8xf32> to vector<8x1xf32>
    %115 = tpu.reciprocal %114 {approx = true} : vector<8x1xf32> -> vector<8x1xf32>
    %116 = vector.broadcast %115 : vector<8x1xf32> to vector<8x8xf32>
    %117 = arith.mulf %112, %116 : vector<8x8xf32>
    %118 = vector.extract_strided_slice %47 {offsets = [0, 24], sizes = [8, 8], strides = [1, 1]} : vector<8x32xf32> to vector<8x8xf32>
    %cst_51 = arith.constant dense<0.000000e+00> : vector<8x8xf32>
    %119 = tpu.matmul %117, %118, %cst_51 {dimension_numbers = #tpu.dot_dimension_numbers<[1], [0], [0], [1], [0, 0, 1, 1], [], []>} : vector<8x8xf32>, vector<8x8xf32>, vector<8x8xf32> -> vector<8x8xf32>
    %120 = vector.extract_strided_slice %39 {offsets = [24, 0], sizes = [8, 32], strides = [1, 1]} : vector<32x32xf32> to vector<8x32xf32>
    %cst_52 = arith.constant dense<0.000000e+00> : vector<8x32xf32>
    %121 = tpu.matmul %119, %120, %cst_52 {dimension_numbers = #tpu.dot_dimension_numbers<[1], [0], [0], [1], [0, 0, 1, 1], [], []>} : vector<8x8xf32>, vector<8x32xf32>, vector<8x32xf32> -> vector<8x32xf32>
    %122 = arith.addf %104, %121 : vector<8x32xf32>
    %123 = vector.broadcast %41 : vector<1x32xf32> to vector<8x32xf32>
    %124 = arith.addf %122, %123 : vector<8x32xf32>
    %125 = arith.addf %5, %124 : vector<8x32xf32>
    %126 = vector.extract_strided_slice %9 {offsets = [1, 0], sizes = [1, 32], strides = [1, 1]} : vector<3x32xf32> to vector<1x32xf32>
    %127 = vector.extract_strided_slice %11 {offsets = [1, 0], sizes = [1, 32], strides = [1, 1]} : vector<3x32xf32> to vector<1x32xf32>
    %cst_53 = arith.constant dense<0.000000e+00> : vector<8xf32>
    %128 = vector.multi_reduction <add>, %125, %cst_53 [1] : vector<8x32xf32> to vector<8xf32>
    %129 = vector.shape_cast %128 : vector<8xf32> to vector<8x1xf32>
    %cst_54 = arith.constant 3.200000e+01 : f32
    %130 = vector.broadcast %cst_54 : f32 to vector<8x1xf32>
    %131 = arith.divf %129, %130 : vector<8x1xf32>
    %132 = vector.broadcast %131 : vector<8x1xf32> to vector<8x32xf32>
    %133 = arith.subf %125, %132 : vector<8x32xf32>
    %134 = arith.mulf %133, %133 : vector<8x32xf32>
    %cst_55 = arith.constant dense<0.000000e+00> : vector<8xf32>
    %135 = vector.multi_reduction <add>, %134, %cst_55 [1] : vector<8x32xf32> to vector<8xf32>
    %136 = vector.shape_cast %135 : vector<8xf32> to vector<8x1xf32>
    %cst_56 = arith.constant 3.200000e+01 : f32
    %137 = vector.broadcast %cst_56 : f32 to vector<8x1xf32>
    %138 = arith.divf %136, %137 : vector<8x1xf32>
    %cst_57 = arith.constant 9.99999974E-6 : f32
    %139 = vector.broadcast %cst_57 : f32 to vector<8x1xf32>
    %140 = arith.addf %138, %139 : vector<8x1xf32>
    %141 = math.rsqrt %140 : vector<8x1xf32>
    %142 = vector.broadcast %141 : vector<8x1xf32> to vector<8x32xf32>
    %143 = arith.mulf %133, %142 : vector<8x32xf32>
    %144 = vector.broadcast %126 : vector<1x32xf32> to vector<8x32xf32>
    %145 = arith.mulf %143, %144 : vector<8x32xf32>
    %146 = vector.broadcast %127 : vector<1x32xf32> to vector<8x32xf32>
    %147 = arith.addf %145, %146 : vector<8x32xf32>
    %c0_58 = arith.constant 0 : index
    %c0_59 = arith.constant 0 : index
    %c0_60 = arith.constant 0 : index
    %148 = vector.load %arg10[%c0_58, %c0_59, %c0_60] : memref<2x32x96xf32, #tpu.memory_space<vmem>>, vector<1x32x96xf32>
    %149 = vector.shape_cast %148 : vector<1x32x96xf32> to vector<32x96xf32>
    %c0_61 = arith.constant 0 : index
    %c0_62 = arith.constant 0 : index
    %c0_63 = arith.constant 0 : index
    %150 = vector.load %arg11[%c0_61, %c0_62, %c0_63] : memref<2x1x96xf32, #tpu.memory_space<vmem>>, vector<1x1x96xf32>
    %151 = vector.shape_cast %150 : vector<1x1x96xf32> to vector<1x96xf32>
    %c0_64 = arith.constant 0 : index
    %c0_65 = arith.constant 0 : index
    %c0_66 = arith.constant 0 : index
    %152 = vector.load %arg12[%c0_64, %c0_65, %c0_66] : memref<2x32x32xf32, #tpu.memory_space<vmem>>, vector<1x32x32xf32>
    %153 = vector.shape_cast %152 : vector<1x32x32xf32> to vector<32x32xf32>
    %c0_67 = arith.constant 0 : index
    %c0_68 = arith.constant 0 : index
    %c0_69 = arith.constant 0 : index
    %154 = vector.load %arg13[%c0_67, %c0_68, %c0_69] : memref<2x1x32xf32, #tpu.memory_space<vmem>>, vector<1x1x32xf32>
    %155 = vector.shape_cast %154 : vector<1x1x32xf32> to vector<1x32xf32>
    %156 = vector.extract_strided_slice %149 {offsets = [0, 0], sizes = [32, 32], strides = [1, 1]} : vector<32x96xf32> to vector<32x32xf32>
    %cst_70 = arith.constant dense<0.000000e+00> : vector<8x32xf32>
    %157 = tpu.matmul %147, %156, %cst_70 {dimension_numbers = #tpu.dot_dimension_numbers<[1], [0], [0], [1], [0, 0, 1, 1], [], []>} : vector<8x32xf32>, vector<32x32xf32>, vector<8x32xf32> -> vector<8x32xf32>
    %158 = vector.extract_strided_slice %151 {offsets = [0, 0], sizes = [1, 32], strides = [1, 1]} : vector<1x96xf32> to vector<1x32xf32>
    %159 = vector.broadcast %158 : vector<1x32xf32> to vector<8x32xf32>
    %160 = arith.addf %157, %159 : vector<8x32xf32>
    %161 = vector.extract_strided_slice %149 {offsets = [0, 32], sizes = [32, 64], strides = [1, 1]} : vector<32x96xf32> to vector<32x64xf32>
    %cst_71 = arith.constant dense<0.000000e+00> : vector<8x64xf32>
    %162 = tpu.matmul %7, %161, %cst_71 {dimension_numbers = #tpu.dot_dimension_numbers<[1], [0], [0], [1], [0, 0, 1, 1], [], []>} : vector<8x32xf32>, vector<32x64xf32>, vector<8x64xf32> -> vector<8x64xf32>
    %163 = vector.extract_strided_slice %151 {offsets = [0, 32], sizes = [1, 64], strides = [1, 1]} : vector<1x96xf32> to vector<1x64xf32>
    %164 = vector.broadcast %163 : vector<1x64xf32> to vector<8x64xf32>
    %165 = arith.addf %162, %164 : vector<8x64xf32>
    %166 = vector.extract_strided_slice %165 {offsets = [0, 0], sizes = [8, 32], strides = [1, 1]} : vector<8x64xf32> to vector<8x32xf32>
    %167 = vector.extract_strided_slice %165 {offsets = [0, 32], sizes = [8, 32], strides = [1, 1]} : vector<8x64xf32> to vector<8x32xf32>
    %cst_72 = arith.constant 0.353553385 : f32
    %168 = vector.broadcast %cst_72 : f32 to vector<8x32xf32>
    %169 = arith.mulf %160, %168 : vector<8x32xf32>
    %cst_73 = arith.constant 0.000000e+00 : f32
    %170 = vector.broadcast %cst_73 : f32 to vector<8x32xf32>
    %171 = vector.extract_strided_slice %169 {offsets = [0, 0], sizes = [8, 8], strides = [1, 1]} : vector<8x32xf32> to vector<8x8xf32>
    %172 = vector.extract_strided_slice %166 {offsets = [0, 0], sizes = [8, 8], strides = [1, 1]} : vector<8x32xf32> to vector<8x8xf32>
    %cst_74 = arith.constant dense<0.000000e+00> : vector<8x8xf32>
    %173 = tpu.matmul %171, %172, %cst_74 {dimension_numbers = #tpu.dot_dimension_numbers<[1], [1], [0], [0], [0, 0, 1, 0], [], []>} : vector<8x8xf32>, vector<8x8xf32>, vector<8x8xf32> -> vector<8x8xf32>
    %cst_75 = arith.constant dense<0xFF800000> : vector<8xf32>
    %174 = vector.multi_reduction <maximumf>, %173, %cst_75 [1] : vector<8x8xf32> to vector<8xf32>
    %175 = vector.shape_cast %174 : vector<8xf32> to vector<8x1xf32>
    %176 = vector.broadcast %175 : vector<8x1xf32> to vector<8x8xf32>
    %177 = arith.subf %173, %176 : vector<8x8xf32>
    %178 = math.exp %177 : vector<8x8xf32>
    %cst_76 = arith.constant dense<0.000000e+00> : vector<8xf32>
    %179 = vector.multi_reduction <add>, %178, %cst_76 [1] : vector<8x8xf32> to vector<8xf32>
    %180 = vector.shape_cast %179 : vector<8xf32> to vector<8x1xf32>
    %181 = tpu.reciprocal %180 {approx = true} : vector<8x1xf32> -> vector<8x1xf32>
    %182 = vector.broadcast %181 : vector<8x1xf32> to vector<8x8xf32>
    %183 = arith.mulf %178, %182 : vector<8x8xf32>
    %184 = vector.extract_strided_slice %167 {offsets = [0, 0], sizes = [8, 8], strides = [1, 1]} : vector<8x32xf32> to vector<8x8xf32>
    %cst_77 = arith.constant dense<0.000000e+00> : vector<8x8xf32>
    %185 = tpu.matmul %183, %184, %cst_77 {dimension_numbers = #tpu.dot_dimension_numbers<[1], [0], [0], [1], [0, 0, 1, 1], [], []>} : vector<8x8xf32>, vector<8x8xf32>, vector<8x8xf32> -> vector<8x8xf32>
    %186 = vector.extract_strided_slice %153 {offsets = [0, 0], sizes = [8, 32], strides = [1, 1]} : vector<32x32xf32> to vector<8x32xf32>
    %cst_78 = arith.constant dense<0.000000e+00> : vector<8x32xf32>
    %187 = tpu.matmul %185, %186, %cst_78 {dimension_numbers = #tpu.dot_dimension_numbers<[1], [0], [0], [1], [0, 0, 1, 1], [], []>} : vector<8x8xf32>, vector<8x32xf32>, vector<8x32xf32> -> vector<8x32xf32>
    %188 = arith.addf %170, %187 : vector<8x32xf32>
    %189 = vector.extract_strided_slice %169 {offsets = [0, 8], sizes = [8, 8], strides = [1, 1]} : vector<8x32xf32> to vector<8x8xf32>
    %190 = vector.extract_strided_slice %166 {offsets = [0, 8], sizes = [8, 8], strides = [1, 1]} : vector<8x32xf32> to vector<8x8xf32>
    %cst_79 = arith.constant dense<0.000000e+00> : vector<8x8xf32>
    %191 = tpu.matmul %189, %190, %cst_79 {dimension_numbers = #tpu.dot_dimension_numbers<[1], [1], [0], [0], [0, 0, 1, 0], [], []>} : vector<8x8xf32>, vector<8x8xf32>, vector<8x8xf32> -> vector<8x8xf32>
    %cst_80 = arith.constant dense<0xFF800000> : vector<8xf32>
    %192 = vector.multi_reduction <maximumf>, %191, %cst_80 [1] : vector<8x8xf32> to vector<8xf32>
    %193 = vector.shape_cast %192 : vector<8xf32> to vector<8x1xf32>
    %194 = vector.broadcast %193 : vector<8x1xf32> to vector<8x8xf32>
    %195 = arith.subf %191, %194 : vector<8x8xf32>
    %196 = math.exp %195 : vector<8x8xf32>
    %cst_81 = arith.constant dense<0.000000e+00> : vector<8xf32>
    %197 = vector.multi_reduction <add>, %196, %cst_81 [1] : vector<8x8xf32> to vector<8xf32>
    %198 = vector.shape_cast %197 : vector<8xf32> to vector<8x1xf32>
    %199 = tpu.reciprocal %198 {approx = true} : vector<8x1xf32> -> vector<8x1xf32>
    %200 = vector.broadcast %199 : vector<8x1xf32> to vector<8x8xf32>
    %201 = arith.mulf %196, %200 : vector<8x8xf32>
    %202 = vector.extract_strided_slice %167 {offsets = [0, 8], sizes = [8, 8], strides = [1, 1]} : vector<8x32xf32> to vector<8x8xf32>
    %cst_82 = arith.constant dense<0.000000e+00> : vector<8x8xf32>
    %203 = tpu.matmul %201, %202, %cst_82 {dimension_numbers = #tpu.dot_dimension_numbers<[1], [0], [0], [1], [0, 0, 1, 1], [], []>} : vector<8x8xf32>, vector<8x8xf32>, vector<8x8xf32> -> vector<8x8xf32>
    %204 = vector.extract_strided_slice %153 {offsets = [8, 0], sizes = [8, 32], strides = [1, 1]} : vector<32x32xf32> to vector<8x32xf32>
    %cst_83 = arith.constant dense<0.000000e+00> : vector<8x32xf32>
    %205 = tpu.matmul %203, %204, %cst_83 {dimension_numbers = #tpu.dot_dimension_numbers<[1], [0], [0], [1], [0, 0, 1, 1], [], []>} : vector<8x8xf32>, vector<8x32xf32>, vector<8x32xf32> -> vector<8x32xf32>
    %206 = arith.addf %188, %205 : vector<8x32xf32>
    %207 = vector.extract_strided_slice %169 {offsets = [0, 16], sizes = [8, 8], strides = [1, 1]} : vector<8x32xf32> to vector<8x8xf32>
    %208 = vector.extract_strided_slice %166 {offsets = [0, 16], sizes = [8, 8], strides = [1, 1]} : vector<8x32xf32> to vector<8x8xf32>
    %cst_84 = arith.constant dense<0.000000e+00> : vector<8x8xf32>
    %209 = tpu.matmul %207, %208, %cst_84 {dimension_numbers = #tpu.dot_dimension_numbers<[1], [1], [0], [0], [0, 0, 1, 0], [], []>} : vector<8x8xf32>, vector<8x8xf32>, vector<8x8xf32> -> vector<8x8xf32>
    %cst_85 = arith.constant dense<0xFF800000> : vector<8xf32>
    %210 = vector.multi_reduction <maximumf>, %209, %cst_85 [1] : vector<8x8xf32> to vector<8xf32>
    %211 = vector.shape_cast %210 : vector<8xf32> to vector<8x1xf32>
    %212 = vector.broadcast %211 : vector<8x1xf32> to vector<8x8xf32>
    %213 = arith.subf %209, %212 : vector<8x8xf32>
    %214 = math.exp %213 : vector<8x8xf32>
    %cst_86 = arith.constant dense<0.000000e+00> : vector<8xf32>
    %215 = vector.multi_reduction <add>, %214, %cst_86 [1] : vector<8x8xf32> to vector<8xf32>
    %216 = vector.shape_cast %215 : vector<8xf32> to vector<8x1xf32>
    %217 = tpu.reciprocal %216 {approx = true} : vector<8x1xf32> -> vector<8x1xf32>
    %218 = vector.broadcast %217 : vector<8x1xf32> to vector<8x8xf32>
    %219 = arith.mulf %214, %218 : vector<8x8xf32>
    %220 = vector.extract_strided_slice %167 {offsets = [0, 16], sizes = [8, 8], strides = [1, 1]} : vector<8x32xf32> to vector<8x8xf32>
    %cst_87 = arith.constant dense<0.000000e+00> : vector<8x8xf32>
    %221 = tpu.matmul %219, %220, %cst_87 {dimension_numbers = #tpu.dot_dimension_numbers<[1], [0], [0], [1], [0, 0, 1, 1], [], []>} : vector<8x8xf32>, vector<8x8xf32>, vector<8x8xf32> -> vector<8x8xf32>
    %222 = vector.extract_strided_slice %153 {offsets = [16, 0], sizes = [8, 32], strides = [1, 1]} : vector<32x32xf32> to vector<8x32xf32>
    %cst_88 = arith.constant dense<0.000000e+00> : vector<8x32xf32>
    %223 = tpu.matmul %221, %222, %cst_88 {dimension_numbers = #tpu.dot_dimension_numbers<[1], [0], [0], [1], [0, 0, 1, 1], [], []>} : vector<8x8xf32>, vector<8x32xf32>, vector<8x32xf32> -> vector<8x32xf32>
    %224 = arith.addf %206, %223 : vector<8x32xf32>
    %225 = vector.extract_strided_slice %169 {offsets = [0, 24], sizes = [8, 8], strides = [1, 1]} : vector<8x32xf32> to vector<8x8xf32>
    %226 = vector.extract_strided_slice %166 {offsets = [0, 24], sizes = [8, 8], strides = [1, 1]} : vector<8x32xf32> to vector<8x8xf32>
    %cst_89 = arith.constant dense<0.000000e+00> : vector<8x8xf32>
    %227 = tpu.matmul %225, %226, %cst_89 {dimension_numbers = #tpu.dot_dimension_numbers<[1], [1], [0], [0], [0, 0, 1, 0], [], []>} : vector<8x8xf32>, vector<8x8xf32>, vector<8x8xf32> -> vector<8x8xf32>
    %cst_90 = arith.constant dense<0xFF800000> : vector<8xf32>
    %228 = vector.multi_reduction <maximumf>, %227, %cst_90 [1] : vector<8x8xf32> to vector<8xf32>
    %229 = vector.shape_cast %228 : vector<8xf32> to vector<8x1xf32>
    %230 = vector.broadcast %229 : vector<8x1xf32> to vector<8x8xf32>
    %231 = arith.subf %227, %230 : vector<8x8xf32>
    %232 = math.exp %231 : vector<8x8xf32>
    %cst_91 = arith.constant dense<0.000000e+00> : vector<8xf32>
    %233 = vector.multi_reduction <add>, %232, %cst_91 [1] : vector<8x8xf32> to vector<8xf32>
    %234 = vector.shape_cast %233 : vector<8xf32> to vector<8x1xf32>
    %235 = tpu.reciprocal %234 {approx = true} : vector<8x1xf32> -> vector<8x1xf32>
    %236 = vector.broadcast %235 : vector<8x1xf32> to vector<8x8xf32>
    %237 = arith.mulf %232, %236 : vector<8x8xf32>
    %238 = vector.extract_strided_slice %167 {offsets = [0, 24], sizes = [8, 8], strides = [1, 1]} : vector<8x32xf32> to vector<8x8xf32>
    %cst_92 = arith.constant dense<0.000000e+00> : vector<8x8xf32>
    %239 = tpu.matmul %237, %238, %cst_92 {dimension_numbers = #tpu.dot_dimension_numbers<[1], [0], [0], [1], [0, 0, 1, 1], [], []>} : vector<8x8xf32>, vector<8x8xf32>, vector<8x8xf32> -> vector<8x8xf32>
    %240 = vector.extract_strided_slice %153 {offsets = [24, 0], sizes = [8, 32], strides = [1, 1]} : vector<32x32xf32> to vector<8x32xf32>
    %cst_93 = arith.constant dense<0.000000e+00> : vector<8x32xf32>
    %241 = tpu.matmul %239, %240, %cst_93 {dimension_numbers = #tpu.dot_dimension_numbers<[1], [0], [0], [1], [0, 0, 1, 1], [], []>} : vector<8x8xf32>, vector<8x32xf32>, vector<8x32xf32> -> vector<8x32xf32>
    %242 = arith.addf %224, %241 : vector<8x32xf32>
    %243 = vector.broadcast %155 : vector<1x32xf32> to vector<8x32xf32>
    %244 = arith.addf %242, %243 : vector<8x32xf32>
    %245 = arith.addf %125, %244 : vector<8x32xf32>
    %246 = vector.extract_strided_slice %9 {offsets = [2, 0], sizes = [1, 32], strides = [1, 1]} : vector<3x32xf32> to vector<1x32xf32>
    %247 = vector.extract_strided_slice %11 {offsets = [2, 0], sizes = [1, 32], strides = [1, 1]} : vector<3x32xf32> to vector<1x32xf32>
    %cst_94 = arith.constant dense<0.000000e+00> : vector<8xf32>
    %248 = vector.multi_reduction <add>, %245, %cst_94 [1] : vector<8x32xf32> to vector<8xf32>
    %249 = vector.shape_cast %248 : vector<8xf32> to vector<8x1xf32>
    %cst_95 = arith.constant 3.200000e+01 : f32
    %250 = vector.broadcast %cst_95 : f32 to vector<8x1xf32>
    %251 = arith.divf %249, %250 : vector<8x1xf32>
    %252 = vector.broadcast %251 : vector<8x1xf32> to vector<8x32xf32>
    %253 = arith.subf %245, %252 : vector<8x32xf32>
    %254 = arith.mulf %253, %253 : vector<8x32xf32>
    %cst_96 = arith.constant dense<0.000000e+00> : vector<8xf32>
    %255 = vector.multi_reduction <add>, %254, %cst_96 [1] : vector<8x32xf32> to vector<8xf32>
    %256 = vector.shape_cast %255 : vector<8xf32> to vector<8x1xf32>
    %cst_97 = arith.constant 3.200000e+01 : f32
    %257 = vector.broadcast %cst_97 : f32 to vector<8x1xf32>
    %258 = arith.divf %256, %257 : vector<8x1xf32>
    %cst_98 = arith.constant 9.99999974E-6 : f32
    %259 = vector.broadcast %cst_98 : f32 to vector<8x1xf32>
    %260 = arith.addf %258, %259 : vector<8x1xf32>
    %261 = math.rsqrt %260 : vector<8x1xf32>
    %262 = vector.broadcast %261 : vector<8x1xf32> to vector<8x32xf32>
    %263 = arith.mulf %253, %262 : vector<8x32xf32>
    %264 = vector.broadcast %246 : vector<1x32xf32> to vector<8x32xf32>
    %265 = arith.mulf %263, %264 : vector<8x32xf32>
    %266 = vector.broadcast %247 : vector<1x32xf32> to vector<8x32xf32>
    %267 = arith.addf %265, %266 : vector<8x32xf32>
    %c0_99 = arith.constant 0 : index
    %c0_100 = arith.constant 0 : index
    %c0_101 = arith.constant 0 : index
    %268 = vector.load %arg14[%c0_99, %c0_100, %c0_101] : memref<2x32x64xf32, #tpu.memory_space<vmem>>, vector<1x32x64xf32>
    %269 = vector.shape_cast %268 : vector<1x32x64xf32> to vector<32x64xf32>
    %cst_102 = arith.constant dense<0.000000e+00> : vector<8x64xf32>
    %270 = tpu.matmul %267, %269, %cst_102 {dimension_numbers = #tpu.dot_dimension_numbers<[1], [0], [0], [1], [0, 0, 1, 1], [], []>} : vector<8x32xf32>, vector<32x64xf32>, vector<8x64xf32> -> vector<8x64xf32>
    %c0_103 = arith.constant 0 : index
    %c0_104 = arith.constant 0 : index
    %c0_105 = arith.constant 0 : index
    %271 = vector.load %arg15[%c0_103, %c0_104, %c0_105] : memref<2x1x64xf32, #tpu.memory_space<vmem>>, vector<1x1x64xf32>
    %272 = vector.shape_cast %271 : vector<1x1x64xf32> to vector<1x64xf32>
    %273 = vector.broadcast %272 : vector<1x64xf32> to vector<8x64xf32>
    %274 = arith.addf %270, %273 : vector<8x64xf32>
    %cst_106 = arith.constant 0.000000e+00 : f32
    %275 = vector.broadcast %cst_106 : f32 to vector<8x64xf32>
    %276 = arith.maximumf %274, %275 : vector<8x64xf32>
    %c0_107 = arith.constant 0 : index
    %c0_108 = arith.constant 0 : index
    %c0_109 = arith.constant 0 : index
    %277 = vector.load %arg16[%c0_107, %c0_108, %c0_109] : memref<2x64x32xf32, #tpu.memory_space<vmem>>, vector<1x64x32xf32>
    %278 = vector.shape_cast %277 : vector<1x64x32xf32> to vector<64x32xf32>
    %cst_110 = arith.constant dense<0.000000e+00> : vector<8x32xf32>
    %279 = tpu.matmul %276, %278, %cst_110 {dimension_numbers = #tpu.dot_dimension_numbers<[1], [0], [0], [1], [0, 0, 1, 1], [], []>} : vector<8x64xf32>, vector<64x32xf32>, vector<8x32xf32> -> vector<8x32xf32>
    %280 = arith.addf %245, %279 : vector<8x32xf32>
    %c0_111 = arith.constant 0 : index
    %c0_112 = arith.constant 0 : index
    %c0_113 = arith.constant 0 : index
    %281 = vector.load %arg17[%c0_111, %c0_112, %c0_113] : memref<2x1x32xf32, #tpu.memory_space<vmem>>, vector<1x1x32xf32>
    %282 = vector.shape_cast %281 : vector<1x1x32xf32> to vector<1x32xf32>
    %283 = vector.broadcast %282 : vector<1x32xf32> to vector<8x32xf32>
    %284 = arith.addf %280, %283 : vector<8x32xf32>
    %c1 = arith.constant 1 : index
    %c0_114 = arith.constant 0 : index
    %c0_115 = arith.constant 0 : index
    %285 = vector.load %arg4[%c1, %c0_114, %c0_115] : memref<2x3x32xf32, #tpu.memory_space<vmem>>, vector<1x3x32xf32>
    %286 = vector.shape_cast %285 : vector<1x3x32xf32> to vector<3x32xf32>
    %c1_116 = arith.constant 1 : index
    %c0_117 = arith.constant 0 : index
    %c0_118 = arith.constant 0 : index
    %287 = vector.load %arg5[%c1_116, %c0_117, %c0_118] : memref<2x3x32xf32, #tpu.memory_space<vmem>>, vector<1x3x32xf32>
    %288 = vector.shape_cast %287 : vector<1x3x32xf32> to vector<3x32xf32>
    %289 = vector.extract_strided_slice %286 {offsets = [0, 0], sizes = [1, 32], strides = [1, 1]} : vector<3x32xf32> to vector<1x32xf32>
    %290 = vector.extract_strided_slice %288 {offsets = [0, 0], sizes = [1, 32], strides = [1, 1]} : vector<3x32xf32> to vector<1x32xf32>
    %cst_119 = arith.constant dense<0.000000e+00> : vector<8xf32>
    %291 = vector.multi_reduction <add>, %284, %cst_119 [1] : vector<8x32xf32> to vector<8xf32>
    %292 = vector.shape_cast %291 : vector<8xf32> to vector<8x1xf32>
    %cst_120 = arith.constant 3.200000e+01 : f32
    %293 = vector.broadcast %cst_120 : f32 to vector<8x1xf32>
    %294 = arith.divf %292, %293 : vector<8x1xf32>
    %295 = vector.broadcast %294 : vector<8x1xf32> to vector<8x32xf32>
    %296 = arith.subf %284, %295 : vector<8x32xf32>
    %297 = arith.mulf %296, %296 : vector<8x32xf32>
    %cst_121 = arith.constant dense<0.000000e+00> : vector<8xf32>
    %298 = vector.multi_reduction <add>, %297, %cst_121 [1] : vector<8x32xf32> to vector<8xf32>
    %299 = vector.shape_cast %298 : vector<8xf32> to vector<8x1xf32>
    %cst_122 = arith.constant 3.200000e+01 : f32
    %300 = vector.broadcast %cst_122 : f32 to vector<8x1xf32>
    %301 = arith.divf %299, %300 : vector<8x1xf32>
    %cst_123 = arith.constant 9.99999974E-6 : f32
    %302 = vector.broadcast %cst_123 : f32 to vector<8x1xf32>
    %303 = arith.addf %301, %302 : vector<8x1xf32>
    %304 = math.rsqrt %303 : vector<8x1xf32>
    %305 = vector.broadcast %304 : vector<8x1xf32> to vector<8x32xf32>
    %306 = arith.mulf %296, %305 : vector<8x32xf32>
    %307 = vector.broadcast %289 : vector<1x32xf32> to vector<8x32xf32>
    %308 = arith.mulf %306, %307 : vector<8x32xf32>
    %309 = vector.broadcast %290 : vector<1x32xf32> to vector<8x32xf32>
    %310 = arith.addf %308, %309 : vector<8x32xf32>
    %c1_124 = arith.constant 1 : index
    %c0_125 = arith.constant 0 : index
    %c0_126 = arith.constant 0 : index
    %311 = vector.load %arg6[%c1_124, %c0_125, %c0_126] : memref<2x32x96xf32, #tpu.memory_space<vmem>>, vector<1x32x96xf32>
    %312 = vector.shape_cast %311 : vector<1x32x96xf32> to vector<32x96xf32>
    %c1_127 = arith.constant 1 : index
    %c0_128 = arith.constant 0 : index
    %c0_129 = arith.constant 0 : index
    %313 = vector.load %arg7[%c1_127, %c0_128, %c0_129] : memref<2x1x96xf32, #tpu.memory_space<vmem>>, vector<1x1x96xf32>
    %314 = vector.shape_cast %313 : vector<1x1x96xf32> to vector<1x96xf32>
    %c1_130 = arith.constant 1 : index
    %c0_131 = arith.constant 0 : index
    %c0_132 = arith.constant 0 : index
    %315 = vector.load %arg8[%c1_130, %c0_131, %c0_132] : memref<2x32x32xf32, #tpu.memory_space<vmem>>, vector<1x32x32xf32>
    %316 = vector.shape_cast %315 : vector<1x32x32xf32> to vector<32x32xf32>
    %c1_133 = arith.constant 1 : index
    %c0_134 = arith.constant 0 : index
    %c0_135 = arith.constant 0 : index
    %317 = vector.load %arg9[%c1_133, %c0_134, %c0_135] : memref<2x1x32xf32, #tpu.memory_space<vmem>>, vector<1x1x32xf32>
    %318 = vector.shape_cast %317 : vector<1x1x32xf32> to vector<1x32xf32>
    %cst_136 = arith.constant dense<0.000000e+00> : vector<8x96xf32>
    %319 = tpu.matmul %310, %312, %cst_136 {dimension_numbers = #tpu.dot_dimension_numbers<[1], [0], [0], [1], [0, 0, 1, 1], [], []>} : vector<8x32xf32>, vector<32x96xf32>, vector<8x96xf32> -> vector<8x96xf32>
    %320 = vector.broadcast %314 : vector<1x96xf32> to vector<8x96xf32>
    %321 = arith.addf %319, %320 : vector<8x96xf32>
    %322 = vector.extract_strided_slice %321 {offsets = [0, 0], sizes = [8, 32], strides = [1, 1]} : vector<8x96xf32> to vector<8x32xf32>
    %323 = vector.extract_strided_slice %321 {offsets = [0, 32], sizes = [8, 32], strides = [1, 1]} : vector<8x96xf32> to vector<8x32xf32>
    %324 = vector.extract_strided_slice %321 {offsets = [0, 64], sizes = [8, 32], strides = [1, 1]} : vector<8x96xf32> to vector<8x32xf32>
    %cst_137 = arith.constant 0.353553385 : f32
    %325 = vector.broadcast %cst_137 : f32 to vector<8x32xf32>
    %326 = arith.mulf %322, %325 : vector<8x32xf32>
    %cst_138 = arith.constant 0.000000e+00 : f32
    %327 = vector.broadcast %cst_138 : f32 to vector<8x32xf32>
    %328 = vector.extract_strided_slice %326 {offsets = [0, 0], sizes = [8, 8], strides = [1, 1]} : vector<8x32xf32> to vector<8x8xf32>
    %329 = vector.extract_strided_slice %323 {offsets = [0, 0], sizes = [8, 8], strides = [1, 1]} : vector<8x32xf32> to vector<8x8xf32>
    %cst_139 = arith.constant dense<0.000000e+00> : vector<8x8xf32>
    %330 = tpu.matmul %328, %329, %cst_139 {dimension_numbers = #tpu.dot_dimension_numbers<[1], [1], [0], [0], [0, 0, 1, 0], [], []>} : vector<8x8xf32>, vector<8x8xf32>, vector<8x8xf32> -> vector<8x8xf32>
    %cst_140 = arith.constant dense<0xFF800000> : vector<8xf32>
    %331 = vector.multi_reduction <maximumf>, %330, %cst_140 [1] : vector<8x8xf32> to vector<8xf32>
    %332 = vector.shape_cast %331 : vector<8xf32> to vector<8x1xf32>
    %333 = vector.broadcast %332 : vector<8x1xf32> to vector<8x8xf32>
    %334 = arith.subf %330, %333 : vector<8x8xf32>
    %335 = math.exp %334 : vector<8x8xf32>
    %cst_141 = arith.constant dense<0.000000e+00> : vector<8xf32>
    %336 = vector.multi_reduction <add>, %335, %cst_141 [1] : vector<8x8xf32> to vector<8xf32>
    %337 = vector.shape_cast %336 : vector<8xf32> to vector<8x1xf32>
    %338 = tpu.reciprocal %337 {approx = true} : vector<8x1xf32> -> vector<8x1xf32>
    %339 = vector.broadcast %338 : vector<8x1xf32> to vector<8x8xf32>
    %340 = arith.mulf %335, %339 : vector<8x8xf32>
    %341 = vector.extract_strided_slice %324 {offsets = [0, 0], sizes = [8, 8], strides = [1, 1]} : vector<8x32xf32> to vector<8x8xf32>
    %cst_142 = arith.constant dense<0.000000e+00> : vector<8x8xf32>
    %342 = tpu.matmul %340, %341, %cst_142 {dimension_numbers = #tpu.dot_dimension_numbers<[1], [0], [0], [1], [0, 0, 1, 1], [], []>} : vector<8x8xf32>, vector<8x8xf32>, vector<8x8xf32> -> vector<8x8xf32>
    %343 = vector.extract_strided_slice %316 {offsets = [0, 0], sizes = [8, 32], strides = [1, 1]} : vector<32x32xf32> to vector<8x32xf32>
    %cst_143 = arith.constant dense<0.000000e+00> : vector<8x32xf32>
    %344 = tpu.matmul %342, %343, %cst_143 {dimension_numbers = #tpu.dot_dimension_numbers<[1], [0], [0], [1], [0, 0, 1, 1], [], []>} : vector<8x8xf32>, vector<8x32xf32>, vector<8x32xf32> -> vector<8x32xf32>
    %345 = arith.addf %327, %344 : vector<8x32xf32>
    %346 = vector.extract_strided_slice %326 {offsets = [0, 8], sizes = [8, 8], strides = [1, 1]} : vector<8x32xf32> to vector<8x8xf32>
    %347 = vector.extract_strided_slice %323 {offsets = [0, 8], sizes = [8, 8], strides = [1, 1]} : vector<8x32xf32> to vector<8x8xf32>
    %cst_144 = arith.constant dense<0.000000e+00> : vector<8x8xf32>
    %348 = tpu.matmul %346, %347, %cst_144 {dimension_numbers = #tpu.dot_dimension_numbers<[1], [1], [0], [0], [0, 0, 1, 0], [], []>} : vector<8x8xf32>, vector<8x8xf32>, vector<8x8xf32> -> vector<8x8xf32>
    %cst_145 = arith.constant dense<0xFF800000> : vector<8xf32>
    %349 = vector.multi_reduction <maximumf>, %348, %cst_145 [1] : vector<8x8xf32> to vector<8xf32>
    %350 = vector.shape_cast %349 : vector<8xf32> to vector<8x1xf32>
    %351 = vector.broadcast %350 : vector<8x1xf32> to vector<8x8xf32>
    %352 = arith.subf %348, %351 : vector<8x8xf32>
    %353 = math.exp %352 : vector<8x8xf32>
    %cst_146 = arith.constant dense<0.000000e+00> : vector<8xf32>
    %354 = vector.multi_reduction <add>, %353, %cst_146 [1] : vector<8x8xf32> to vector<8xf32>
    %355 = vector.shape_cast %354 : vector<8xf32> to vector<8x1xf32>
    %356 = tpu.reciprocal %355 {approx = true} : vector<8x1xf32> -> vector<8x1xf32>
    %357 = vector.broadcast %356 : vector<8x1xf32> to vector<8x8xf32>
    %358 = arith.mulf %353, %357 : vector<8x8xf32>
    %359 = vector.extract_strided_slice %324 {offsets = [0, 8], sizes = [8, 8], strides = [1, 1]} : vector<8x32xf32> to vector<8x8xf32>
    %cst_147 = arith.constant dense<0.000000e+00> : vector<8x8xf32>
    %360 = tpu.matmul %358, %359, %cst_147 {dimension_numbers = #tpu.dot_dimension_numbers<[1], [0], [0], [1], [0, 0, 1, 1], [], []>} : vector<8x8xf32>, vector<8x8xf32>, vector<8x8xf32> -> vector<8x8xf32>
    %361 = vector.extract_strided_slice %316 {offsets = [8, 0], sizes = [8, 32], strides = [1, 1]} : vector<32x32xf32> to vector<8x32xf32>
    %cst_148 = arith.constant dense<0.000000e+00> : vector<8x32xf32>
    %362 = tpu.matmul %360, %361, %cst_148 {dimension_numbers = #tpu.dot_dimension_numbers<[1], [0], [0], [1], [0, 0, 1, 1], [], []>} : vector<8x8xf32>, vector<8x32xf32>, vector<8x32xf32> -> vector<8x32xf32>
    %363 = arith.addf %345, %362 : vector<8x32xf32>
    %364 = vector.extract_strided_slice %326 {offsets = [0, 16], sizes = [8, 8], strides = [1, 1]} : vector<8x32xf32> to vector<8x8xf32>
    %365 = vector.extract_strided_slice %323 {offsets = [0, 16], sizes = [8, 8], strides = [1, 1]} : vector<8x32xf32> to vector<8x8xf32>
    %cst_149 = arith.constant dense<0.000000e+00> : vector<8x8xf32>
    %366 = tpu.matmul %364, %365, %cst_149 {dimension_numbers = #tpu.dot_dimension_numbers<[1], [1], [0], [0], [0, 0, 1, 0], [], []>} : vector<8x8xf32>, vector<8x8xf32>, vector<8x8xf32> -> vector<8x8xf32>
    %cst_150 = arith.constant dense<0xFF800000> : vector<8xf32>
    %367 = vector.multi_reduction <maximumf>, %366, %cst_150 [1] : vector<8x8xf32> to vector<8xf32>
    %368 = vector.shape_cast %367 : vector<8xf32> to vector<8x1xf32>
    %369 = vector.broadcast %368 : vector<8x1xf32> to vector<8x8xf32>
    %370 = arith.subf %366, %369 : vector<8x8xf32>
    %371 = math.exp %370 : vector<8x8xf32>
    %cst_151 = arith.constant dense<0.000000e+00> : vector<8xf32>
    %372 = vector.multi_reduction <add>, %371, %cst_151 [1] : vector<8x8xf32> to vector<8xf32>
    %373 = vector.shape_cast %372 : vector<8xf32> to vector<8x1xf32>
    %374 = tpu.reciprocal %373 {approx = true} : vector<8x1xf32> -> vector<8x1xf32>
    %375 = vector.broadcast %374 : vector<8x1xf32> to vector<8x8xf32>
    %376 = arith.mulf %371, %375 : vector<8x8xf32>
    %377 = vector.extract_strided_slice %324 {offsets = [0, 16], sizes = [8, 8], strides = [1, 1]} : vector<8x32xf32> to vector<8x8xf32>
    %cst_152 = arith.constant dense<0.000000e+00> : vector<8x8xf32>
    %378 = tpu.matmul %376, %377, %cst_152 {dimension_numbers = #tpu.dot_dimension_numbers<[1], [0], [0], [1], [0, 0, 1, 1], [], []>} : vector<8x8xf32>, vector<8x8xf32>, vector<8x8xf32> -> vector<8x8xf32>
    %379 = vector.extract_strided_slice %316 {offsets = [16, 0], sizes = [8, 32], strides = [1, 1]} : vector<32x32xf32> to vector<8x32xf32>
    %cst_153 = arith.constant dense<0.000000e+00> : vector<8x32xf32>
    %380 = tpu.matmul %378, %379, %cst_153 {dimension_numbers = #tpu.dot_dimension_numbers<[1], [0], [0], [1], [0, 0, 1, 1], [], []>} : vector<8x8xf32>, vector<8x32xf32>, vector<8x32xf32> -> vector<8x32xf32>
    %381 = arith.addf %363, %380 : vector<8x32xf32>
    %382 = vector.extract_strided_slice %326 {offsets = [0, 24], sizes = [8, 8], strides = [1, 1]} : vector<8x32xf32> to vector<8x8xf32>
    %383 = vector.extract_strided_slice %323 {offsets = [0, 24], sizes = [8, 8], strides = [1, 1]} : vector<8x32xf32> to vector<8x8xf32>
    %cst_154 = arith.constant dense<0.000000e+00> : vector<8x8xf32>
    %384 = tpu.matmul %382, %383, %cst_154 {dimension_numbers = #tpu.dot_dimension_numbers<[1], [1], [0], [0], [0, 0, 1, 0], [], []>} : vector<8x8xf32>, vector<8x8xf32>, vector<8x8xf32> -> vector<8x8xf32>
    %cst_155 = arith.constant dense<0xFF800000> : vector<8xf32>
    %385 = vector.multi_reduction <maximumf>, %384, %cst_155 [1] : vector<8x8xf32> to vector<8xf32>
    %386 = vector.shape_cast %385 : vector<8xf32> to vector<8x1xf32>
    %387 = vector.broadcast %386 : vector<8x1xf32> to vector<8x8xf32>
    %388 = arith.subf %384, %387 : vector<8x8xf32>
    %389 = math.exp %388 : vector<8x8xf32>
    %cst_156 = arith.constant dense<0.000000e+00> : vector<8xf32>
    %390 = vector.multi_reduction <add>, %389, %cst_156 [1] : vector<8x8xf32> to vector<8xf32>
    %391 = vector.shape_cast %390 : vector<8xf32> to vector<8x1xf32>
    %392 = tpu.reciprocal %391 {approx = true} : vector<8x1xf32> -> vector<8x1xf32>
    %393 = vector.broadcast %392 : vector<8x1xf32> to vector<8x8xf32>
    %394 = arith.mulf %389, %393 : vector<8x8xf32>
    %395 = vector.extract_strided_slice %324 {offsets = [0, 24], sizes = [8, 8], strides = [1, 1]} : vector<8x32xf32> to vector<8x8xf32>
    %cst_157 = arith.constant dense<0.000000e+00> : vector<8x8xf32>
    %396 = tpu.matmul %394, %395, %cst_157 {dimension_numbers = #tpu.dot_dimension_numbers<[1], [0], [0], [1], [0, 0, 1, 1], [], []>} : vector<8x8xf32>, vector<8x8xf32>, vector<8x8xf32> -> vector<8x8xf32>
    %397 = vector.extract_strided_slice %316 {offsets = [24, 0], sizes = [8, 32], strides = [1, 1]} : vector<32x32xf32> to vector<8x32xf32>
    %cst_158 = arith.constant dense<0.000000e+00> : vector<8x32xf32>
    %398 = tpu.matmul %396, %397, %cst_158 {dimension_numbers = #tpu.dot_dimension_numbers<[1], [0], [0], [1], [0, 0, 1, 1], [], []>} : vector<8x8xf32>, vector<8x32xf32>, vector<8x32xf32> -> vector<8x32xf32>
    %399 = arith.addf %381, %398 : vector<8x32xf32>
    %400 = vector.broadcast %318 : vector<1x32xf32> to vector<8x32xf32>
    %401 = arith.addf %399, %400 : vector<8x32xf32>
    %402 = arith.addf %284, %401 : vector<8x32xf32>
    %403 = vector.extract_strided_slice %286 {offsets = [1, 0], sizes = [1, 32], strides = [1, 1]} : vector<3x32xf32> to vector<1x32xf32>
    %404 = vector.extract_strided_slice %288 {offsets = [1, 0], sizes = [1, 32], strides = [1, 1]} : vector<3x32xf32> to vector<1x32xf32>
    %cst_159 = arith.constant dense<0.000000e+00> : vector<8xf32>
    %405 = vector.multi_reduction <add>, %402, %cst_159 [1] : vector<8x32xf32> to vector<8xf32>
    %406 = vector.shape_cast %405 : vector<8xf32> to vector<8x1xf32>
    %cst_160 = arith.constant 3.200000e+01 : f32
    %407 = vector.broadcast %cst_160 : f32 to vector<8x1xf32>
    %408 = arith.divf %406, %407 : vector<8x1xf32>
    %409 = vector.broadcast %408 : vector<8x1xf32> to vector<8x32xf32>
    %410 = arith.subf %402, %409 : vector<8x32xf32>
    %411 = arith.mulf %410, %410 : vector<8x32xf32>
    %cst_161 = arith.constant dense<0.000000e+00> : vector<8xf32>
    %412 = vector.multi_reduction <add>, %411, %cst_161 [1] : vector<8x32xf32> to vector<8xf32>
    %413 = vector.shape_cast %412 : vector<8xf32> to vector<8x1xf32>
    %cst_162 = arith.constant 3.200000e+01 : f32
    %414 = vector.broadcast %cst_162 : f32 to vector<8x1xf32>
    %415 = arith.divf %413, %414 : vector<8x1xf32>
    %cst_163 = arith.constant 9.99999974E-6 : f32
    %416 = vector.broadcast %cst_163 : f32 to vector<8x1xf32>
    %417 = arith.addf %415, %416 : vector<8x1xf32>
    %418 = math.rsqrt %417 : vector<8x1xf32>
    %419 = vector.broadcast %418 : vector<8x1xf32> to vector<8x32xf32>
    %420 = arith.mulf %410, %419 : vector<8x32xf32>
    %421 = vector.broadcast %403 : vector<1x32xf32> to vector<8x32xf32>
    %422 = arith.mulf %420, %421 : vector<8x32xf32>
    %423 = vector.broadcast %404 : vector<1x32xf32> to vector<8x32xf32>
    %424 = arith.addf %422, %423 : vector<8x32xf32>
    %c1_164 = arith.constant 1 : index
    %c0_165 = arith.constant 0 : index
    %c0_166 = arith.constant 0 : index
    %425 = vector.load %arg10[%c1_164, %c0_165, %c0_166] : memref<2x32x96xf32, #tpu.memory_space<vmem>>, vector<1x32x96xf32>
    %426 = vector.shape_cast %425 : vector<1x32x96xf32> to vector<32x96xf32>
    %c1_167 = arith.constant 1 : index
    %c0_168 = arith.constant 0 : index
    %c0_169 = arith.constant 0 : index
    %427 = vector.load %arg11[%c1_167, %c0_168, %c0_169] : memref<2x1x96xf32, #tpu.memory_space<vmem>>, vector<1x1x96xf32>
    %428 = vector.shape_cast %427 : vector<1x1x96xf32> to vector<1x96xf32>
    %c1_170 = arith.constant 1 : index
    %c0_171 = arith.constant 0 : index
    %c0_172 = arith.constant 0 : index
    %429 = vector.load %arg12[%c1_170, %c0_171, %c0_172] : memref<2x32x32xf32, #tpu.memory_space<vmem>>, vector<1x32x32xf32>
    %430 = vector.shape_cast %429 : vector<1x32x32xf32> to vector<32x32xf32>
    %c1_173 = arith.constant 1 : index
    %c0_174 = arith.constant 0 : index
    %c0_175 = arith.constant 0 : index
    %431 = vector.load %arg13[%c1_173, %c0_174, %c0_175] : memref<2x1x32xf32, #tpu.memory_space<vmem>>, vector<1x1x32xf32>
    %432 = vector.shape_cast %431 : vector<1x1x32xf32> to vector<1x32xf32>
    %433 = vector.extract_strided_slice %426 {offsets = [0, 0], sizes = [32, 32], strides = [1, 1]} : vector<32x96xf32> to vector<32x32xf32>
    %cst_176 = arith.constant dense<0.000000e+00> : vector<8x32xf32>
    %434 = tpu.matmul %424, %433, %cst_176 {dimension_numbers = #tpu.dot_dimension_numbers<[1], [0], [0], [1], [0, 0, 1, 1], [], []>} : vector<8x32xf32>, vector<32x32xf32>, vector<8x32xf32> -> vector<8x32xf32>
    %435 = vector.extract_strided_slice %428 {offsets = [0, 0], sizes = [1, 32], strides = [1, 1]} : vector<1x96xf32> to vector<1x32xf32>
    %436 = vector.broadcast %435 : vector<1x32xf32> to vector<8x32xf32>
    %437 = arith.addf %434, %436 : vector<8x32xf32>
    %438 = vector.extract_strided_slice %426 {offsets = [0, 32], sizes = [32, 64], strides = [1, 1]} : vector<32x96xf32> to vector<32x64xf32>
    %cst_177 = arith.constant dense<0.000000e+00> : vector<8x64xf32>
    %439 = tpu.matmul %7, %438, %cst_177 {dimension_numbers = #tpu.dot_dimension_numbers<[1], [0], [0], [1], [0, 0, 1, 1], [], []>} : vector<8x32xf32>, vector<32x64xf32>, vector<8x64xf32> -> vector<8x64xf32>
    %440 = vector.extract_strided_slice %428 {offsets = [0, 32], sizes = [1, 64], strides = [1, 1]} : vector<1x96xf32> to vector<1x64xf32>
    %441 = vector.broadcast %440 : vector<1x64xf32> to vector<8x64xf32>
    %442 = arith.addf %439, %441 : vector<8x64xf32>
    %443 = vector.extract_strided_slice %442 {offsets = [0, 0], sizes = [8, 32], strides = [1, 1]} : vector<8x64xf32> to vector<8x32xf32>
    %444 = vector.extract_strided_slice %442 {offsets = [0, 32], sizes = [8, 32], strides = [1, 1]} : vector<8x64xf32> to vector<8x32xf32>
    %cst_178 = arith.constant 0.353553385 : f32
    %445 = vector.broadcast %cst_178 : f32 to vector<8x32xf32>
    %446 = arith.mulf %437, %445 : vector<8x32xf32>
    %cst_179 = arith.constant 0.000000e+00 : f32
    %447 = vector.broadcast %cst_179 : f32 to vector<8x32xf32>
    %448 = vector.extract_strided_slice %446 {offsets = [0, 0], sizes = [8, 8], strides = [1, 1]} : vector<8x32xf32> to vector<8x8xf32>
    %449 = vector.extract_strided_slice %443 {offsets = [0, 0], sizes = [8, 8], strides = [1, 1]} : vector<8x32xf32> to vector<8x8xf32>
    %cst_180 = arith.constant dense<0.000000e+00> : vector<8x8xf32>
    %450 = tpu.matmul %448, %449, %cst_180 {dimension_numbers = #tpu.dot_dimension_numbers<[1], [1], [0], [0], [0, 0, 1, 0], [], []>} : vector<8x8xf32>, vector<8x8xf32>, vector<8x8xf32> -> vector<8x8xf32>
    %cst_181 = arith.constant dense<0xFF800000> : vector<8xf32>
    %451 = vector.multi_reduction <maximumf>, %450, %cst_181 [1] : vector<8x8xf32> to vector<8xf32>
    %452 = vector.shape_cast %451 : vector<8xf32> to vector<8x1xf32>
    %453 = vector.broadcast %452 : vector<8x1xf32> to vector<8x8xf32>
    %454 = arith.subf %450, %453 : vector<8x8xf32>
    %455 = math.exp %454 : vector<8x8xf32>
    %cst_182 = arith.constant dense<0.000000e+00> : vector<8xf32>
    %456 = vector.multi_reduction <add>, %455, %cst_182 [1] : vector<8x8xf32> to vector<8xf32>
    %457 = vector.shape_cast %456 : vector<8xf32> to vector<8x1xf32>
    %458 = tpu.reciprocal %457 {approx = true} : vector<8x1xf32> -> vector<8x1xf32>
    %459 = vector.broadcast %458 : vector<8x1xf32> to vector<8x8xf32>
    %460 = arith.mulf %455, %459 : vector<8x8xf32>
    %461 = vector.extract_strided_slice %444 {offsets = [0, 0], sizes = [8, 8], strides = [1, 1]} : vector<8x32xf32> to vector<8x8xf32>
    %cst_183 = arith.constant dense<0.000000e+00> : vector<8x8xf32>
    %462 = tpu.matmul %460, %461, %cst_183 {dimension_numbers = #tpu.dot_dimension_numbers<[1], [0], [0], [1], [0, 0, 1, 1], [], []>} : vector<8x8xf32>, vector<8x8xf32>, vector<8x8xf32> -> vector<8x8xf32>
    %463 = vector.extract_strided_slice %430 {offsets = [0, 0], sizes = [8, 32], strides = [1, 1]} : vector<32x32xf32> to vector<8x32xf32>
    %cst_184 = arith.constant dense<0.000000e+00> : vector<8x32xf32>
    %464 = tpu.matmul %462, %463, %cst_184 {dimension_numbers = #tpu.dot_dimension_numbers<[1], [0], [0], [1], [0, 0, 1, 1], [], []>} : vector<8x8xf32>, vector<8x32xf32>, vector<8x32xf32> -> vector<8x32xf32>
    %465 = arith.addf %447, %464 : vector<8x32xf32>
    %466 = vector.extract_strided_slice %446 {offsets = [0, 8], sizes = [8, 8], strides = [1, 1]} : vector<8x32xf32> to vector<8x8xf32>
    %467 = vector.extract_strided_slice %443 {offsets = [0, 8], sizes = [8, 8], strides = [1, 1]} : vector<8x32xf32> to vector<8x8xf32>
    %cst_185 = arith.constant dense<0.000000e+00> : vector<8x8xf32>
    %468 = tpu.matmul %466, %467, %cst_185 {dimension_numbers = #tpu.dot_dimension_numbers<[1], [1], [0], [0], [0, 0, 1, 0], [], []>} : vector<8x8xf32>, vector<8x8xf32>, vector<8x8xf32> -> vector<8x8xf32>
    %cst_186 = arith.constant dense<0xFF800000> : vector<8xf32>
    %469 = vector.multi_reduction <maximumf>, %468, %cst_186 [1] : vector<8x8xf32> to vector<8xf32>
    %470 = vector.shape_cast %469 : vector<8xf32> to vector<8x1xf32>
    %471 = vector.broadcast %470 : vector<8x1xf32> to vector<8x8xf32>
    %472 = arith.subf %468, %471 : vector<8x8xf32>
    %473 = math.exp %472 : vector<8x8xf32>
    %cst_187 = arith.constant dense<0.000000e+00> : vector<8xf32>
    %474 = vector.multi_reduction <add>, %473, %cst_187 [1] : vector<8x8xf32> to vector<8xf32>
    %475 = vector.shape_cast %474 : vector<8xf32> to vector<8x1xf32>
    %476 = tpu.reciprocal %475 {approx = true} : vector<8x1xf32> -> vector<8x1xf32>
    %477 = vector.broadcast %476 : vector<8x1xf32> to vector<8x8xf32>
    %478 = arith.mulf %473, %477 : vector<8x8xf32>
    %479 = vector.extract_strided_slice %444 {offsets = [0, 8], sizes = [8, 8], strides = [1, 1]} : vector<8x32xf32> to vector<8x8xf32>
    %cst_188 = arith.constant dense<0.000000e+00> : vector<8x8xf32>
    %480 = tpu.matmul %478, %479, %cst_188 {dimension_numbers = #tpu.dot_dimension_numbers<[1], [0], [0], [1], [0, 0, 1, 1], [], []>} : vector<8x8xf32>, vector<8x8xf32>, vector<8x8xf32> -> vector<8x8xf32>
    %481 = vector.extract_strided_slice %430 {offsets = [8, 0], sizes = [8, 32], strides = [1, 1]} : vector<32x32xf32> to vector<8x32xf32>
    %cst_189 = arith.constant dense<0.000000e+00> : vector<8x32xf32>
    %482 = tpu.matmul %480, %481, %cst_189 {dimension_numbers = #tpu.dot_dimension_numbers<[1], [0], [0], [1], [0, 0, 1, 1], [], []>} : vector<8x8xf32>, vector<8x32xf32>, vector<8x32xf32> -> vector<8x32xf32>
    %483 = arith.addf %465, %482 : vector<8x32xf32>
    %484 = vector.extract_strided_slice %446 {offsets = [0, 16], sizes = [8, 8], strides = [1, 1]} : vector<8x32xf32> to vector<8x8xf32>
    %485 = vector.extract_strided_slice %443 {offsets = [0, 16], sizes = [8, 8], strides = [1, 1]} : vector<8x32xf32> to vector<8x8xf32>
    %cst_190 = arith.constant dense<0.000000e+00> : vector<8x8xf32>
    %486 = tpu.matmul %484, %485, %cst_190 {dimension_numbers = #tpu.dot_dimension_numbers<[1], [1], [0], [0], [0, 0, 1, 0], [], []>} : vector<8x8xf32>, vector<8x8xf32>, vector<8x8xf32> -> vector<8x8xf32>
    %cst_191 = arith.constant dense<0xFF800000> : vector<8xf32>
    %487 = vector.multi_reduction <maximumf>, %486, %cst_191 [1] : vector<8x8xf32> to vector<8xf32>
    %488 = vector.shape_cast %487 : vector<8xf32> to vector<8x1xf32>
    %489 = vector.broadcast %488 : vector<8x1xf32> to vector<8x8xf32>
    %490 = arith.subf %486, %489 : vector<8x8xf32>
    %491 = math.exp %490 : vector<8x8xf32>
    %cst_192 = arith.constant dense<0.000000e+00> : vector<8xf32>
    %492 = vector.multi_reduction <add>, %491, %cst_192 [1] : vector<8x8xf32> to vector<8xf32>
    %493 = vector.shape_cast %492 : vector<8xf32> to vector<8x1xf32>
    %494 = tpu.reciprocal %493 {approx = true} : vector<8x1xf32> -> vector<8x1xf32>
    %495 = vector.broadcast %494 : vector<8x1xf32> to vector<8x8xf32>
    %496 = arith.mulf %491, %495 : vector<8x8xf32>
    %497 = vector.extract_strided_slice %444 {offsets = [0, 16], sizes = [8, 8], strides = [1, 1]} : vector<8x32xf32> to vector<8x8xf32>
    %cst_193 = arith.constant dense<0.000000e+00> : vector<8x8xf32>
    %498 = tpu.matmul %496, %497, %cst_193 {dimension_numbers = #tpu.dot_dimension_numbers<[1], [0], [0], [1], [0, 0, 1, 1], [], []>} : vector<8x8xf32>, vector<8x8xf32>, vector<8x8xf32> -> vector<8x8xf32>
    %499 = vector.extract_strided_slice %430 {offsets = [16, 0], sizes = [8, 32], strides = [1, 1]} : vector<32x32xf32> to vector<8x32xf32>
    %cst_194 = arith.constant dense<0.000000e+00> : vector<8x32xf32>
    %500 = tpu.matmul %498, %499, %cst_194 {dimension_numbers = #tpu.dot_dimension_numbers<[1], [0], [0], [1], [0, 0, 1, 1], [], []>} : vector<8x8xf32>, vector<8x32xf32>, vector<8x32xf32> -> vector<8x32xf32>
    %501 = arith.addf %483, %500 : vector<8x32xf32>
    %502 = vector.extract_strided_slice %446 {offsets = [0, 24], sizes = [8, 8], strides = [1, 1]} : vector<8x32xf32> to vector<8x8xf32>
    %503 = vector.extract_strided_slice %443 {offsets = [0, 24], sizes = [8, 8], strides = [1, 1]} : vector<8x32xf32> to vector<8x8xf32>
    %cst_195 = arith.constant dense<0.000000e+00> : vector<8x8xf32>
    %504 = tpu.matmul %502, %503, %cst_195 {dimension_numbers = #tpu.dot_dimension_numbers<[1], [1], [0], [0], [0, 0, 1, 0], [], []>} : vector<8x8xf32>, vector<8x8xf32>, vector<8x8xf32> -> vector<8x8xf32>
    %cst_196 = arith.constant dense<0xFF800000> : vector<8xf32>
    %505 = vector.multi_reduction <maximumf>, %504, %cst_196 [1] : vector<8x8xf32> to vector<8xf32>
    %506 = vector.shape_cast %505 : vector<8xf32> to vector<8x1xf32>
    %507 = vector.broadcast %506 : vector<8x1xf32> to vector<8x8xf32>
    %508 = arith.subf %504, %507 : vector<8x8xf32>
    %509 = math.exp %508 : vector<8x8xf32>
    %cst_197 = arith.constant dense<0.000000e+00> : vector<8xf32>
    %510 = vector.multi_reduction <add>, %509, %cst_197 [1] : vector<8x8xf32> to vector<8xf32>
    %511 = vector.shape_cast %510 : vector<8xf32> to vector<8x1xf32>
    %512 = tpu.reciprocal %511 {approx = true} : vector<8x1xf32> -> vector<8x1xf32>
    %513 = vector.broadcast %512 : vector<8x1xf32> to vector<8x8xf32>
    %514 = arith.mulf %509, %513 : vector<8x8xf32>
    %515 = vector.extract_strided_slice %444 {offsets = [0, 24], sizes = [8, 8], strides = [1, 1]} : vector<8x32xf32> to vector<8x8xf32>
    %cst_198 = arith.constant dense<0.000000e+00> : vector<8x8xf32>
    %516 = tpu.matmul %514, %515, %cst_198 {dimension_numbers = #tpu.dot_dimension_numbers<[1], [0], [0], [1], [0, 0, 1, 1], [], []>} : vector<8x8xf32>, vector<8x8xf32>, vector<8x8xf32> -> vector<8x8xf32>
    %517 = vector.extract_strided_slice %430 {offsets = [24, 0], sizes = [8, 32], strides = [1, 1]} : vector<32x32xf32> to vector<8x32xf32>
    %cst_199 = arith.constant dense<0.000000e+00> : vector<8x32xf32>
    %518 = tpu.matmul %516, %517, %cst_199 {dimension_numbers = #tpu.dot_dimension_numbers<[1], [0], [0], [1], [0, 0, 1, 1], [], []>} : vector<8x8xf32>, vector<8x32xf32>, vector<8x32xf32> -> vector<8x32xf32>
    %519 = arith.addf %501, %518 : vector<8x32xf32>
    %520 = vector.broadcast %432 : vector<1x32xf32> to vector<8x32xf32>
    %521 = arith.addf %519, %520 : vector<8x32xf32>
    %522 = arith.addf %402, %521 : vector<8x32xf32>
    %523 = vector.extract_strided_slice %286 {offsets = [2, 0], sizes = [1, 32], strides = [1, 1]} : vector<3x32xf32> to vector<1x32xf32>
    %524 = vector.extract_strided_slice %288 {offsets = [2, 0], sizes = [1, 32], strides = [1, 1]} : vector<3x32xf32> to vector<1x32xf32>
    %cst_200 = arith.constant dense<0.000000e+00> : vector<8xf32>
    %525 = vector.multi_reduction <add>, %522, %cst_200 [1] : vector<8x32xf32> to vector<8xf32>
    %526 = vector.shape_cast %525 : vector<8xf32> to vector<8x1xf32>
    %cst_201 = arith.constant 3.200000e+01 : f32
    %527 = vector.broadcast %cst_201 : f32 to vector<8x1xf32>
    %528 = arith.divf %526, %527 : vector<8x1xf32>
    %529 = vector.broadcast %528 : vector<8x1xf32> to vector<8x32xf32>
    %530 = arith.subf %522, %529 : vector<8x32xf32>
    %531 = arith.mulf %530, %530 : vector<8x32xf32>
    %cst_202 = arith.constant dense<0.000000e+00> : vector<8xf32>
    %532 = vector.multi_reduction <add>, %531, %cst_202 [1] : vector<8x32xf32> to vector<8xf32>
    %533 = vector.shape_cast %532 : vector<8xf32> to vector<8x1xf32>
    %cst_203 = arith.constant 3.200000e+01 : f32
    %534 = vector.broadcast %cst_203 : f32 to vector<8x1xf32>
    %535 = arith.divf %533, %534 : vector<8x1xf32>
    %cst_204 = arith.constant 9.99999974E-6 : f32
    %536 = vector.broadcast %cst_204 : f32 to vector<8x1xf32>
    %537 = arith.addf %535, %536 : vector<8x1xf32>
    %538 = math.rsqrt %537 : vector<8x1xf32>
    %539 = vector.broadcast %538 : vector<8x1xf32> to vector<8x32xf32>
    %540 = arith.mulf %530, %539 : vector<8x32xf32>
    %541 = vector.broadcast %523 : vector<1x32xf32> to vector<8x32xf32>
    %542 = arith.mulf %540, %541 : vector<8x32xf32>
    %543 = vector.broadcast %524 : vector<1x32xf32> to vector<8x32xf32>
    %544 = arith.addf %542, %543 : vector<8x32xf32>
    %c1_205 = arith.constant 1 : index
    %c0_206 = arith.constant 0 : index
    %c0_207 = arith.constant 0 : index
    %545 = vector.load %arg14[%c1_205, %c0_206, %c0_207] : memref<2x32x64xf32, #tpu.memory_space<vmem>>, vector<1x32x64xf32>
    %546 = vector.shape_cast %545 : vector<1x32x64xf32> to vector<32x64xf32>
    %cst_208 = arith.constant dense<0.000000e+00> : vector<8x64xf32>
    %547 = tpu.matmul %544, %546, %cst_208 {dimension_numbers = #tpu.dot_dimension_numbers<[1], [0], [0], [1], [0, 0, 1, 1], [], []>} : vector<8x32xf32>, vector<32x64xf32>, vector<8x64xf32> -> vector<8x64xf32>
    %c1_209 = arith.constant 1 : index
    %c0_210 = arith.constant 0 : index
    %c0_211 = arith.constant 0 : index
    %548 = vector.load %arg15[%c1_209, %c0_210, %c0_211] : memref<2x1x64xf32, #tpu.memory_space<vmem>>, vector<1x1x64xf32>
    %549 = vector.shape_cast %548 : vector<1x1x64xf32> to vector<1x64xf32>
    %550 = vector.broadcast %549 : vector<1x64xf32> to vector<8x64xf32>
    %551 = arith.addf %547, %550 : vector<8x64xf32>
    %cst_212 = arith.constant 0.000000e+00 : f32
    %552 = vector.broadcast %cst_212 : f32 to vector<8x64xf32>
    %553 = arith.maximumf %551, %552 : vector<8x64xf32>
    %c1_213 = arith.constant 1 : index
    %c0_214 = arith.constant 0 : index
    %c0_215 = arith.constant 0 : index
    %554 = vector.load %arg16[%c1_213, %c0_214, %c0_215] : memref<2x64x32xf32, #tpu.memory_space<vmem>>, vector<1x64x32xf32>
    %555 = vector.shape_cast %554 : vector<1x64x32xf32> to vector<64x32xf32>
    %cst_216 = arith.constant dense<0.000000e+00> : vector<8x32xf32>
    %556 = tpu.matmul %553, %555, %cst_216 {dimension_numbers = #tpu.dot_dimension_numbers<[1], [0], [0], [1], [0, 0, 1, 1], [], []>} : vector<8x64xf32>, vector<64x32xf32>, vector<8x32xf32> -> vector<8x32xf32>
    %557 = arith.addf %522, %556 : vector<8x32xf32>
    %c1_217 = arith.constant 1 : index
    %c0_218 = arith.constant 0 : index
    %c0_219 = arith.constant 0 : index
    %558 = vector.load %arg17[%c1_217, %c0_218, %c0_219] : memref<2x1x32xf32, #tpu.memory_space<vmem>>, vector<1x1x32xf32>
    %559 = vector.shape_cast %558 : vector<1x1x32xf32> to vector<1x32xf32>
    %560 = vector.broadcast %559 : vector<1x32xf32> to vector<8x32xf32>
    %561 = arith.addf %557, %560 : vector<8x32xf32>
    %c0_220 = arith.constant 0 : index
    %c0_221 = arith.constant 0 : index
    %562 = vector.load %arg18[%c0_220, %c0_221] : memref<1x32xf32, #tpu.memory_space<vmem>>, vector<1x32xf32>
    %c0_222 = arith.constant 0 : index
    %c0_223 = arith.constant 0 : index
    %563 = vector.load %arg19[%c0_222, %c0_223] : memref<1x32xf32, #tpu.memory_space<vmem>>, vector<1x32xf32>
    %cst_224 = arith.constant dense<0.000000e+00> : vector<8xf32>
    %564 = vector.multi_reduction <add>, %561, %cst_224 [1] : vector<8x32xf32> to vector<8xf32>
    %565 = vector.shape_cast %564 : vector<8xf32> to vector<8x1xf32>
    %cst_225 = arith.constant 3.200000e+01 : f32
    %566 = vector.broadcast %cst_225 : f32 to vector<8x1xf32>
    %567 = arith.divf %565, %566 : vector<8x1xf32>
    %568 = vector.broadcast %567 : vector<8x1xf32> to vector<8x32xf32>
    %569 = arith.subf %561, %568 : vector<8x32xf32>
    %570 = arith.mulf %569, %569 : vector<8x32xf32>
    %cst_226 = arith.constant dense<0.000000e+00> : vector<8xf32>
    %571 = vector.multi_reduction <add>, %570, %cst_226 [1] : vector<8x32xf32> to vector<8xf32>
    %572 = vector.shape_cast %571 : vector<8xf32> to vector<8x1xf32>
    %cst_227 = arith.constant 3.200000e+01 : f32
    %573 = vector.broadcast %cst_227 : f32 to vector<8x1xf32>
    %574 = arith.divf %572, %573 : vector<8x1xf32>
    %cst_228 = arith.constant 9.99999974E-6 : f32
    %575 = vector.broadcast %cst_228 : f32 to vector<8x1xf32>
    %576 = arith.addf %574, %575 : vector<8x1xf32>
    %577 = math.rsqrt %576 : vector<8x1xf32>
    %578 = vector.broadcast %577 : vector<8x1xf32> to vector<8x32xf32>
    %579 = arith.mulf %569, %578 : vector<8x32xf32>
    %580 = vector.broadcast %562 : vector<1x32xf32> to vector<8x32xf32>
    %581 = arith.mulf %579, %580 : vector<8x32xf32>
    %582 = vector.broadcast %563 : vector<1x32xf32> to vector<8x32xf32>
    %583 = arith.addf %581, %582 : vector<8x32xf32>
    %c0_229 = arith.constant 0 : index
    %c0_230 = arith.constant 0 : index
    %c0_231 = arith.constant 0 : index
    %584 = vector.load %arg20[%c0_229, %c0_230, %c0_231] : memref<1x8x32xf32, #tpu.memory_space<vmem>>, vector<1x8x32xf32>
    %585 = vector.shape_cast %584 : vector<1x8x32xf32> to vector<8x32xf32>
    %586 = vector.shape_cast %583 : vector<8x32xf32> to vector<1x8x32xf32>
    tpu.vector_store %arg20[%c0_229, %c0_230, %c0_231], %586 {strides = array<i32>} : memref<1x8x32xf32, #tpu.memory_space<vmem>>, vector<1x8x32xf32>,
    return
  }
  func.func @transform_0(%arg0: i32) -> (i32, i32, i32) {
    %c0_i32 = arith.constant 0 : i32
    %c0_i32_0 = arith.constant 0 : i32
    %c0_i32_1 = arith.constant 0 : i32
    return %arg0, %c0_i32, %c0_i32_0 : i32, i32, i32
  }
  func.func @transform_1(%arg0: i32) -> (i32, i32, i32) {
    %c0_i32 = arith.constant 0 : i32
    %c0_i32_0 = arith.constant 0 : i32
    %c0_i32_1 = arith.constant 0 : i32
    return %arg0, %c0_i32, %c0_i32_0 : i32, i32, i32
  }
  func.func @transform_2(%arg0: i32) -> (i32, i32) {
    %c0_i32 = arith.constant 0 : i32
    %c0_i32_0 = arith.constant 0 : i32
    %c0_i32_1 = arith.constant 0 : i32
    return %c0_i32, %c0_i32_0 : i32, i32
  }
  func.func @transform_3(%arg0: i32) -> (i32, i32, i32) {
    %c0_i32 = arith.constant 0 : i32
    %c0_i32_0 = arith.constant 0 : i32
    %c0_i32_1 = arith.constant 0 : i32
    %c0_i32_2 = arith.constant 0 : i32
    return %c0_i32, %c0_i32_0, %c0_i32_1 : i32, i32, i32
  }
  func.func @transform_4(%arg0: i32) -> (i32, i32, i32) {
    %c0_i32 = arith.constant 0 : i32
    %c0_i32_0 = arith.constant 0 : i32
    %c0_i32_1 = arith.constant 0 : i32
    %c0_i32_2 = arith.constant 0 : i32
    return %c0_i32, %c0_i32_0, %c0_i32_1 : i32, i32, i32
  }
  func.func @transform_5(%arg0: i32) -> (i32, i32, i32) {
    %c0_i32 = arith.constant 0 : i32
    %c0_i32_0 = arith.constant 0 : i32
    %c0_i32_1 = arith.constant 0 : i32
    %c0_i32_2 = arith.constant 0 : i32
    return %c0_i32, %c0_i32_0, %c0_i32_1 : i32, i32, i32
  }
  func.func @transform_6(%arg0: i32) -> (i32, i32, i32) {
    %c0_i32 = arith.constant 0 : i32
    %c0_i32_0 = arith.constant 0 : i32
    %c0_i32_1 = arith.constant 0 : i32
    %c0_i32_2 = arith.constant 0 : i32
    return %c0_i32, %c0_i32_0, %c0_i32_1 : i32, i32, i32
  }
  func.func @transform_7(%arg0: i32) -> (i32, i32, i32) {
    %c0_i32 = arith.constant 0 : i32
    %c0_i32_0 = arith.constant 0 : i32
    %c0_i32_1 = arith.constant 0 : i32
    %c0_i32_2 = arith.constant 0 : i32
    return %c0_i32, %c0_i32_0, %c0_i32_1 : i32, i32, i32
  }
  func.func @transform_8(%arg0: i32) -> (i32, i32, i32) {
    %c0_i32 = arith.constant 0 : i32
    %c0_i32_0 = arith.constant 0 : i32
    %c0_i32_1 = arith.constant 0 : i32
    %c0_i32_2 = arith.constant 0 : i32
    return %c0_i32, %c0_i32_0, %c0_i32_1 : i32, i32, i32
  }
  func.func @transform_9(%arg0: i32) -> (i32, i32, i32) {
    %c0_i32 = arith.constant 0 : i32
    %c0_i32_0 = arith.constant 0 : i32
    %c0_i32_1 = arith.constant 0 : i32
    %c0_i32_2 = arith.constant 0 : i32
    return %c0_i32, %c0_i32_0, %c0_i32_1 : i32, i32, i32
  }
  func.func @transform_10(%arg0: i32) -> (i32, i32, i32) {
    %c0_i32 = arith.constant 0 : i32
    %c0_i32_0 = arith.constant 0 : i32
    %c0_i32_1 = arith.constant 0 : i32
    %c0_i32_2 = arith.constant 0 : i32
    return %c0_i32, %c0_i32_0, %c0_i32_1 : i32, i32, i32
  }
  func.func @transform_11(%arg0: i32) -> (i32, i32, i32) {
    %c0_i32 = arith.constant 0 : i32
    %c0_i32_0 = arith.constant 0 : i32
    %c0_i32_1 = arith.constant 0 : i32
    %c0_i32_2 = arith.constant 0 : i32
    return %c0_i32, %c0_i32_0, %c0_i32_1 : i32, i32, i32
  }
  func.func @transform_12(%arg0: i32) -> (i32, i32, i32) {
    %c0_i32 = arith.constant 0 : i32
    %c0_i32_0 = arith.constant 0 : i32
    %c0_i32_1 = arith.constant 0 : i32
    %c0_i32_2 = arith.constant 0 : i32
    return %c0_i32, %c0_i32_0, %c0_i32_1 : i32, i32, i32
  }
  func.func @transform_13(%arg0: i32) -> (i32, i32, i32) {
    %c0_i32 = arith.constant 0 : i32
    %c0_i32_0 = arith.constant 0 : i32
    %c0_i32_1 = arith.constant 0 : i32
    %c0_i32_2 = arith.constant 0 : i32
    return %c0_i32, %c0_i32_0, %c0_i32_1 : i32, i32, i32
  }
  func.func @transform_14(%arg0: i32) -> (i32, i32, i32) {
    %c0_i32 = arith.constant 0 : i32
    %c0_i32_0 = arith.constant 0 : i32
    %c0_i32_1 = arith.constant 0 : i32
    %c0_i32_2 = arith.constant 0 : i32
    return %c0_i32, %c0_i32_0, %c0_i32_1 : i32, i32, i32
  }
  func.func @transform_15(%arg0: i32) -> (i32, i32, i32) {
    %c0_i32 = arith.constant 0 : i32
    %c0_i32_0 = arith.constant 0 : i32
    %c0_i32_1 = arith.constant 0 : i32
    %c0_i32_2 = arith.constant 0 : i32
    return %c0_i32, %c0_i32_0, %c0_i32_1 : i32, i32, i32
  }
  func.func @transform_16(%arg0: i32) -> (i32, i32, i32) {
    %c0_i32 = arith.constant 0 : i32
    %c0_i32_0 = arith.constant 0 : i32
    %c0_i32_1 = arith.constant 0 : i32
    %c0_i32_2 = arith.constant 0 : i32
    return %c0_i32, %c0_i32_0, %c0_i32_1 : i32, i32, i32
  }
  func.func @transform_17(%arg0: i32) -> (i32, i32) {
    %c0_i32 = arith.constant 0 : i32
    %c0_i32_0 = arith.constant 0 : i32
    %c0_i32_1 = arith.constant 0 : i32
    return %c0_i32, %c0_i32_0 : i32, i32
  }
  func.func @transform_18(%arg0: i32) -> (i32, i32) {
    %c0_i32 = arith.constant 0 : i32
    %c0_i32_0 = arith.constant 0 : i32
    %c0_i32_1 = arith.constant 0 : i32
    return %c0_i32, %c0_i32_0 : i32, i32
  }
  func.func @transform_19(%arg0: i32) -> (i32, i32, i32) {
    %c0_i32 = arith.constant 0 : i32
    %c0_i32_0 = arith.constant 0 : i32
    %c0_i32_1 = arith.constant 0 : i32
    return %arg0, %c0_i32, %c0_i32_0 : i32, i32, i32
  }
}

</mosaic_0001>

<bundles_post_ra>
// kernel: tpu_custom_call.1
= control target key start
LH: loop header
LB: loop body
LE: loop exit
PB: predicated region body
PF: predicated region fallthrough
CT: control target
= control target key end

     0   :  { %s8147_s0 = inlined_call_operand.vmem [shape: f32[2,8,32], index: 0, kind: input, shape index: {}]   ;;  %s8148_s1 = inlined_call_operand.hbm [shape: f32[2,8,32], index: 1, kind: input, shape index: {}]   ;;  %s8149_s2 = inlined_call_operand.hbm [shape: f32[8,32], index: 2, kind: input, shape index: {}]   ;;  %s8150_s3 = inlined_call_operand.vmem [shape: f32[2,3,32], index: 3, kind: input, shape index: {}]   ;;  %s8151_s4 = inlined_call_operand.vmem [shape: f32[2,3,32], index: 4, kind: input, shape index: {}]   ;;  %s8152_s5 = inlined_call_operand.vmem [shape: f32[2,32,96], index: 5, kind: input, shape index: {}]   ;;  %s8153_s6 = inlined_call_operand.vmem [shape: f32[2,1,96], index: 6, kind: input, shape index: {}]   ;;  %s8154_s7 = inlined_call_operand.vmem [shape: f32[2,32,32], index: 7, kind: input, shape index: {}]   ;;  %s8155_s8 = inlined_call_operand.vmem [shape: f32[2,1,32], index: 8, kind: input, shape index: {}]   ;;  %s8156_s9 = inlined_call_operand.vmem [shape: f32[2,32,96], index: 9, kind: input, shape index: {}]   ;;  %s8157_s10 = inlined_call_operand.hbm [shape: f32[2,1,96], index: 10, kind: input, shape index: {}]   ;;  %s8158_s11 = inlined_call_operand.hbm [shape: f32[2,32,32], index: 11, kind: input, shape index: {}]   ;;  %s8159_s12 = inlined_call_operand.hbm [shape: f32[2,1,32], index: 12, kind: input, shape index: {}]   ;;  %s8160_s13 = inlined_call_operand.hbm [shape: f32[2,32,64], index: 13, kind: input, shape index: {}]   ;;  %s8161_s14 = inlined_call_operand.hbm [shape: f32[2,1,64], index: 14, kind: input, shape index: {}]   ;;  %s8162_s15 = inlined_call_operand.vmem [shape: f32[2,64,32], index: 15, kind: input, shape index: {}]   ;;  %s8163_s16 = inlined_call_operand.vmem [shape: f32[2,1,32], index: 16, kind: input, shape index: {}]   ;;  %s8164_s17 = inlined_call_operand.vmem [shape: f32[1,32], index: 17, kind: input, shape index: {}]   ;;  %s8165_s18 = inlined_call_operand.vmem [shape: f32[1,32], index: 18, kind: input, shape index: {}]   ;;  %s8166_s19 = inlined_call_operand.hbm [shape: f32[2,8,32], index: 19, kind: output, shape index: {}]  }
   0x1   :  { %8198 = sst [smem:[#allocation21_spill]] %s8147_s0 }
   0x2   :  { %8199 = sst [smem:[#allocation22_spill]] %s8148_s1 }
   0x3   :  { %8200 = sst [smem:[#allocation23_spill]] %s8149_s2 }
   0x4   :  { %8201 = sst [smem:[#allocation24_spill]] %s8150_s3 }
   0x5   :  { %8202 = sst [smem:[#allocation25_spill]] %s8151_s4 }
   0x6   :  { %8203 = sst [smem:[#allocation26_spill]] %s8152_s5 }
   0x7   :  { %8204 = sst [smem:[#allocation27_spill]] %s8156_s9 }
   0x8   :  { %8205 = sst [smem:[#allocation28_spill]] %s8157_s10 }
   0x9   :  { %8206 = sst [smem:[#allocation29_spill]] %s8158_s11 }
   0xa   :  { %8207 = sst [smem:[#allocation30_spill]] %s8159_s12 }
   0xb   :  { %8208 = sst [smem:[#allocation31_spill]] %s8160_s13 }
   0xc   :  { %8209 = sst [smem:[#allocation32_spill]] %s8161_s14 }
   0xd   :  { %8210 = sst [smem:[#allocation33_spill]] %s8162_s15 }
   0xe   :  { %8211 = sst [smem:[#allocation34_spill]] %s8163_s16 }
   0xf   :  { %8212 = sst [smem:[#allocation35_spill]] %s8164_s17 }
  0x10   :  { %8213 = sst [smem:[#allocation36_spill]] %s8165_s18 }
  0x11   :  { %8214 = sst [smem:[#allocation37_spill]] %s8166_s19 }
  0x12   :  { %24 = vsyncpa [#allocation3], 0 }
  0x13   :  { %26 = vsyncpa [#allocation3 + $0x1], 0 }
  0x14   :  { %27 = vsyncpa [#allocation6], 0 }
  0x15   :  { %28 = vsyncpa [#allocation9], 0 }
  0x16   :  { %29 = vsyncpa [#allocation12], 0 }
  0x17   :  { %30 = vsyncpa [#allocation4], 0 }
  0x18   :  { %32 = vsyncpa [#allocation4 + $0x1], 0  ;;  %s7160_s0 = smov 0   ;;  %s7162_s30 = smov 0  }
  0x19   :  { %s7164_s20 = smov 0   ;;  %s7166_s21 = smov 0  }
  0x1a LB: > { %s7034_s1 = smov [#allocation5]   ;;  %s7181_s2 = sadd.s32 4294967295, %s7032_s21   ;;  %s7032_s21 = sphi %s7166_s21, %s8268_s21   ;;  %s7028_s20 = sphi %s7164_s20, %s8267_s20   ;;  %s7024_s30 = sphi %s7162_s30, %s8266_s30   ;;  %s7020_s0 = sphi %s7160_s0, %s8265_s0  }
  0x1b   : > { %s491_s22 = sshll.u32 %s7034_s1, 4  ;;  %p5804_p0 = scmp.ge.s32.totalorder %s7032_s21, 1  ;;  %s492_s22 = int_to_ptr.vmem [resolvable:$true] %s491_s22 }
  0x1c   : > { %p8172_p1 = scmp.eq.s32.totalorder %s7181_s2, 0  ;;  %p478_p2 = scmp.lt.s32.totalorder %s7032_s21, 3 }
  0x1d   : > { %s7035_s24 = smov [#allocation8]   ;;  %s7036_s26 = smov [#allocation11]  }
  0x1e   : > { %p7186_p3 = pnand %p5804_p0, %p478_p2  ;;  %s535_s25 = sshll.u32 %s7035_s24, 4  ;;  %s7193_s25 = int_to_ptr.vmem [resolvable:$true] %s535_s25 }
  0x1f   : > { %s561_s27 = sshll.u32 %s7036_s26, 4  ;;  %s8217_s1 = sld [smem:[#allocation23_spill]]  ;;  %s7201_s27 = int_to_ptr.vmem [resolvable:$true] %s561_s27 }
  0x20   : > { %s8215_s23 = scalar_select %p7186_p3, 1, 0 }
  0x21   : > { %p6561_p5 = pneg %p7186_p3 }
  0x23   : > { %p7197_p6 = pnand %p6561_p5, %p8172_p1 }
  0x25   : > { %s6756_s19 = scalar_lea.hbm %s8217_s1, 128  ;;  %p7211_p8 = pneg %p7197_p6 }
  0x26   : > { %p6757_p7 = scmp.ne.s32.totalorder %s8217_s1, %s6756_s19  ;;  %p6763_p11 = scmp.lt.u32.totalorder %s6756_s19, %s8217_s1 }
  0x28   : > { %p6759_p9 = pnand %p7211_p8, %p6757_p7 }
  0x2a   : > { %p6760_p10 = pneg %p6759_p9 }
  0x2c   : > { %p6765_p12 = pnand %p6763_p11, %p6760_p10 }
  0x2e   : > { %6768 = shalt.err (!%p6765_p12)
}
  0x2f   : > { %s6769_s28 = scalar_lea.vmem %s492_s22, 128  ;;  %p6777_p5 = scmp.lt.s32.totalorder %s492_s22, %s492_s22 }
  0x30   : > { %p6770_p13 = scmp.ne.s32.totalorder %s492_s22, %s6769_s28  ;;  %p6778_p4 = scmp.lt.s32.totalorder %s6769_s28, %s6769_s28 }
  0x32   : > { %p6772_p0 = pnand %p6770_p13, %p7211_p8  ;;  %p6779_p1 = por %p6778_p4, %p6777_p5 }
  0x34   : > { %p6773_p2 = pneg %p6772_p0 }
  0x36   : > { %p6780_p3 = pnand %p6779_p1, %p6773_p2 }
  0x38   : > { %6783 = shalt.err (!%p6780_p3)
}
  0x39   : > { %6564 = dma.hbm_to_vmem [thread:$0]  (!%p7197_p6), %s8217_s1, 128, %s492_s22, [#allocation6]  }
  0x3a   : > { %s8219_s11 = sld [smem:[#allocation29_spill]] }
  0x40   : > { %s6784_s29 = scalar_lea.hbm %s8219_s11, 1024 }
  0x41   : > { %p6785_p7 = scmp.ne.s32.totalorder %s8219_s11, %s6784_s29  ;;  %p6791_p1 = scmp.lt.u32.totalorder %s6784_s29, %s8219_s11 }
  0x43   : > { %p6787_p9 = pnand %p6785_p7, %p7211_p8 }
  0x45   : > { %p6788_p4 = pneg %p6787_p9 }
  0x47   : > { %p6793_p3 = pnand %p6791_p1, %p6788_p4 }
  0x49   : > { %6796 = shalt.err (!%p6793_p3)
}
  0x4a   : > { %s6797_s22 = scalar_lea.vmem %s7193_s25, 1024  ;;  %p6805_p13 = scmp.lt.s32.totalorder %s7193_s25, %s7193_s25 }
  0x4b   : > { %p6798_p10 = scmp.ne.s32.totalorder %s7193_s25, %s6797_s22  ;;  %p6806_p0 = scmp.lt.s32.totalorder %s6797_s22, %s6797_s22 }
  0x4d   : > { %p6800_p11 = pnand %p6798_p10, %p7211_p8  ;;  %p6807_p2 = por %p6806_p0, %p6805_p13 }
  0x4f   : > { %p6801_p12 = pneg %p6800_p11 }
  0x51   : > { %p6808_p5 = pnand %p6807_p2, %p6801_p12 }
  0x53   : > { %6811 = shalt.err (!%p6808_p5)
}
  0x54   : > { %s7037_s15 = smov 128   ;;  %s7038_s9 = smov 8  }
  0x55   : > { %6570 = dma.hbm_to_vmem [thread:$0]  (!%p7197_p6), %s8219_s11, 1024, %s7193_s25, [#allocation9], %s7037_s15, %s7037_s15, %s7038_s9  }
  0x56   : > { %s8220_s13 = sld [smem:[#allocation31_spill]] }
  0x5c   : > { %s6812_s29 = scalar_lea.hbm %s8220_s13, 1024 }
  0x5d   : > { %p6813_p7 = scmp.ne.s32.totalorder %s8220_s13, %s6812_s29  ;;  %p6819_p1 = scmp.lt.u32.totalorder %s6812_s29, %s8220_s13 }
  0x5f   : > { %p6815_p9 = pnand %p6813_p7, %p7211_p8 }
  0x61   : > { %p6816_p4 = pneg %p6815_p9 }
  0x63   : > { %p6821_p3 = pnand %p6819_p1, %p6816_p4 }
  0x65   : > { %6824 = shalt.err (!%p6821_p3)
}
  0x66   : > { %s6825_s25 = scalar_lea.vmem %s7201_s27, 1024  ;;  %p6833_p13 = scmp.lt.s32.totalorder %s7201_s27, %s7201_s27 }
  0x67   : > { %p6826_p10 = scmp.ne.s32.totalorder %s7201_s27, %s6825_s25  ;;  %p6834_p0 = scmp.lt.s32.totalorder %s6825_s25, %s6825_s25 }
  0x69   : > { %p6828_p11 = pnand %p6826_p10, %p7211_p8  ;;  %p6835_p2 = por %p6834_p0, %p6833_p13 }
  0x6b   : > { %p6829_p12 = pneg %p6828_p11 }
  0x6d   : > { %p6836_p5 = pnand %p6835_p2, %p6829_p12 }
  0x6f   : > { %6839 = shalt.err (!%p6836_p5)
}
  0x70   : > { %6576 = dma.hbm_to_vmem [thread:$0]  (!%p7197_p6), %s8220_s13, 1024, %s7201_s27, [#allocation12], %s7037_s15, %s7037_s15, %s7038_s9  }
  0x71   : > { %s7039_s18 = smov [#allocation7]   ;;  %s8221_s10 = sld [smem:[#allocation28_spill]] }
  0x72   : > { %s522_s16 = sshll.u32 %s7039_s18, 4  ;;  %s523_s16 = int_to_ptr.vmem [resolvable:$true] %s522_s16 }
  0x77   : > { %s6840_s26 = scalar_lea.hbm %s8221_s10, 32 }
  0x78   : > { %p6841_p7 = scmp.ne.s32.totalorder %s8221_s10, %s6840_s26  ;;  %p6847_p1 = scmp.lt.u32.totalorder %s6840_s26, %s8221_s10 }
  0x7a   : > { %p6843_p9 = pnand %p6841_p7, %p7211_p8 }
  0x7c   : > { %p6844_p4 = pneg %p6843_p9 }
  0x7e   : > { %p6849_p3 = pnand %p6847_p1, %p6844_p4 }
  0x80   : > { %6852 = shalt.err (!%p6849_p3)
}
  0x81   : > { %s6853_s27 = scalar_lea.vmem %s523_s16, 32  ;;  %p6861_p13 = scmp.lt.s32.totalorder %s523_s16, %s523_s16 }
  0x82   : > { %p6854_p10 = scmp.ne.s32.totalorder %s523_s16, %s6853_s27  ;;  %p6862_p0 = scmp.lt.s32.totalorder %s6853_s27, %s6853_s27 }
  0x84   : > { %p6856_p11 = pnand %p6854_p10, %p7211_p8  ;;  %p6863_p2 = por %p6862_p0, %p6861_p13 }
  0x86   : > { %p6857_p12 = pneg %p6856_p11 }
  0x88   : > { %p6864_p5 = pnand %p6863_p2, %p6857_p12 }
  0x8a   : > { %6867 = shalt.err (!%p6864_p5)
}
  0x8b   : > { %s7040_s15 = smov 16   ;;  %s7041_s9 = smov 1  }
  0x8c   : > { %6567 = dma.hbm_to_vmem [thread:$0]  (!%p7197_p6), %s8221_s10, 32, %s523_s16, [#allocation6], %s7040_s15, %s7040_s15, %s7041_s9  }
  0x8d   : > { %s7042_s17 = smov [#allocation10]   ;;  %s7043_s19 = smov [#allocation13]  }
  0x8e   : > { %s548_s18 = sshll.u32 %s7042_s17, 4  ;;  %s574_s29 = sshll.u32 %s7043_s19, 4  ;;  %s549_s18 = int_to_ptr.vmem [resolvable:$true] %s548_s18  ;;  %s7294_s29 = int_to_ptr.vmem [resolvable:$true] %s574_s29 }
  0x8f   : > { %s8222_s12 = sld [smem:[#allocation30_spill]] }
  0x95   : > { %s6868_s22 = scalar_lea.hbm %s8222_s12, 32 }
  0x96   : > { %p6869_p7 = scmp.ne.s32.totalorder %s8222_s12, %s6868_s22  ;;  %p6875_p1 = scmp.lt.u32.totalorder %s6868_s22, %s8222_s12 }
  0x98   : > { %p6871_p9 = pnand %p6869_p7, %p7211_p8 }
  0x9a   : > { %p6872_p4 = pneg %p6871_p9 }
  0x9c   : > { %p6877_p3 = pnand %p6875_p1, %p6872_p4 }
  0x9e   : > { %6880 = shalt.err (!%p6877_p3)
}
  0x9f   : > { %s6881_s1 = scalar_lea.vmem %s549_s18, 32  ;;  %p6889_p13 = scmp.lt.s32.totalorder %s549_s18, %s549_s18 }
  0xa0   : > { %p6882_p10 = scmp.ne.s32.totalorder %s549_s18, %s6881_s1  ;;  %p6890_p0 = scmp.lt.s32.totalorder %s6881_s1, %s6881_s1 }
  0xa2   : > { %p6884_p11 = pnand %p6882_p10, %p7211_p8  ;;  %p6891_p2 = por %p6890_p0, %p6889_p13 }
  0xa4   : > { %p6885_p12 = pneg %p6884_p11 }
  0xa6   : > { %p6892_p5 = pnand %p6891_p2, %p6885_p12 }
  0xa8   : > { %6895 = shalt.err (!%p6892_p5)
}
  0xa9   : > { %6573 = dma.hbm_to_vmem [thread:$0]  (!%p7197_p6), %s8222_s12, 32, %s549_s18, [#allocation9], %s7040_s15, %s7040_s15, %s7041_s9  }
  0xaa   : > { %s8223_s14 = sld [smem:[#allocation32_spill]] }
  0xb0   : > { %s6896_s22 = scalar_lea.hbm %s8223_s14, 32 }
  0xb1   : > { %p6897_p7 = scmp.ne.s32.totalorder %s8223_s14, %s6896_s22  ;;  %p6903_p1 = scmp.lt.u32.totalorder %s6896_s22, %s8223_s14 }
  0xb3   : > { %p6899_p9 = pnand %p6897_p7, %p7211_p8 }
  0xb5   : > { %p6900_p4 = pneg %p6899_p9 }
  0xb7   : > { %p6905_p3 = pnand %p6903_p1, %p6900_p4 }
  0xb9   : > { %6908 = shalt.err (!%p6905_p3)
}
  0xba   : > { %s6909_s18 = scalar_lea.vmem %s7294_s29, 32  ;;  %p6917_p13 = scmp.lt.s32.totalorder %s7294_s29, %s7294_s29 }
  0xbb   : > { %p6910_p10 = scmp.ne.s32.totalorder %s7294_s29, %s6909_s18  ;;  %p6918_p0 = scmp.lt.s32.totalorder %s6909_s18, %s6909_s18 }
  0xbd   : > { %p6912_p11 = pnand %p6910_p10, %p7211_p8  ;;  %p6919_p2 = por %p6918_p0, %p6917_p13 }
  0xbf   : > { %p6913_p12 = pneg %p6912_p11 }
  0xc1   : > { %p6920_p5 = pnand %p6919_p2, %p6913_p12 }
  0xc3   : > { %6923 = shalt.err (!%p6920_p5)
}
  0xc4   : > { %6579 = dma.hbm_to_vmem [thread:$0]  (!%p7197_p6), %s8223_s14, 32, %s7294_s29, [#allocation12], %s7040_s15, %s7040_s15, %s7041_s9  }
  0xc5   : > { %s5803_s3 = sadd.s32 4294967294, %s7032_s21   ;;  %s7345_s24 = sadd.s32 1, %s7032_s21  }
  0xc6   : > { %s68_s19 = ssub.s32 %s7032_s21, %s7345_s24  ;;  %s71_s26 = sadd.s32 1, %s7028_s20 }
  0xc7   : > { %p69_p8 = scmp.eq.s32.totalorder %s68_s19, 0  ;;  %p78_p7 = scmp.ne.s32.totalorder %s7028_s20, %s7024_s30 }
  0xc8   : > { %p79_p9 = scmp.eq.s32.totalorder %s7032_s21, 0  ;;  %p84_p4 = scmp.ne.s32.totalorder %s7024_s30, %s7020_s0 }
  0xc9   : > { %s7356_s28 = scalar_select %p69_p8, %s7028_s20, %s71_s26  }
  0xca   : > { %p7358_p1 = por %p79_p9, %p78_p7  ;;  %p8226_p3 = scmp.eq.s32.totalorder %s7181_s2, 0 }
  0xcb   : > { %8224 = sst [smem:[#allocation20_spill]] %s7356_s28  ;;  %p465_p10 = scmp.eq.s32.totalorder %s7181_s2, 1 }
  0xcc   : > { %p7364_p6 = por %p8226_p3, %p84_p4  ;;  %p471_p11 = scmp.eq.s32.totalorder %s5803_s3, 1 }
  0xcd   : > { %p6594_p12 = scmp.lt.s32.totalorder %s7032_s21, 2  ;;  %s607_s9 = sand.u32 1, %s7028_s20  }
  0xce   : > { %p7371_p13 = por %p465_p10, %p78_p7  ;;  %p7375_p0 = por %p471_p11, %p84_p4 }
  0xcf   : > { %s5812_s27 = sshll.u32 %s607_s9, 3  ;;  %s5813_s11 = sshll.u32 %s7032_s21, 7 }
  0xd0   : > { %s8228_s29 = scalar_select %p7371_p13, 1, 0 }
  0xd1   : > { %s8229_s25 = scalar_select %p7375_p0, 1, 0 }
  0xd2   : > { %s8230_s1 = sld [smem:[#allocation22_spill]]  ;;  %s611_s3 = scalar_lea.vmem [#allocation2], %s5812_s27 }
  0xd3   : > { %s618_s19 = sshll.u32 %s611_s3, 4  ;;  %p7389_p2 = pnand %p6594_p12, %p7358_p1  ;;  %s7385_s19 = int_to_ptr.vmem [resolvable:$true] %s618_s19 }
  0xd4   : > { %s608_s10 = scalar_lea.sflag [#allocation3], %s607_s9 }
  0xd5   : > { %p6926_p8 = pneg %p7389_p2 }
  0xd8   : > { %s7383_s17 = scalar_lea.hbm %s8230_s1, %s5813_s11  ;;  %s6929_s16 = scalar_lea.hbm %s8230_s1, 256 }
  0xd9   : > { %s6924_s12 = scalar_lea.hbm %s7383_s17, 128  ;;  %p6930_p4 = scmp.lt.u32.totalorder %s7383_s17, %s8230_s1 }
  0xda   : > { %p6925_p5 = scmp.ne.s32.totalorder %s7383_s17, %s6924_s12  ;;  %p6931_p1 = scmp.lt.u32.totalorder %s6929_s16, %s6924_s12 }
  0xdb   : > { %p6933_p10 = scmp.lt.u32.totalorder %s6924_s12, %s7383_s17 }
  0xdc   : > { %p6927_p7 = pnand %p6926_p8, %p6925_p5  ;;  %p6932_p3 = por %p6931_p1, %p6930_p4 }
  0xde   : > { %p6928_p9 = pneg %p6927_p7  ;;  %p6934_p11 = por %p6933_p10, %p6932_p3 }
  0xe0   : > { %p6935_p12 = pnand %p6934_p11, %p6928_p9 }
  0xe2   : > { %6938 = shalt.err (!%p6935_p12)
}
  0xe3   : > { %s6939_s9 = scalar_lea.vmem %s7385_s19, 128  ;;  %s7044_s3 = smov [#allocation2]  }
  0xe4   : > { %p6940_p5 = scmp.ne.s32.totalorder %s7385_s19, %s6939_s9  ;;  %s6944_s27 = sshll.u32 %s7044_s3, 4  ;;  %s6945_s27 = int_to_ptr.vmem [resolvable:$false] %s6944_s27 }
  0xe5   : > { %s6946_s11 = scalar_lea.vmem %s6945_s27, 256  ;;  %p6947_p13 = scmp.lt.s32.totalorder %s7385_s19, %s6945_s27 }
  0xe6   : > { %p6942_p7 = pnand %p6940_p5, %p6926_p8  ;;  %p6948_p4 = scmp.lt.s32.totalorder %s6946_s11, %s6939_s9 }
  0xe8   : > { %p6943_p0 = pneg %p6942_p7  ;;  %p6949_p1 = por %p6948_p4, %p6947_p13 }
  0xea   : > { %p6950_p3 = pnand %p6949_p1, %p6943_p0 }
  0xec   : > { %6953 = shalt.err (!%p6950_p3)
}
  0xed   : > { %6583 = dma.hbm_to_vmem [thread:$0]  (!%p7389_p2), %s7383_s17, 128, %s7385_s19, %s608_s10  }
  0xee   : > { %p8232_p9 = scmp.ne.s32.totalorder %s8215_s23, 0 }
  0xef   : > { %s7421_s12 = sand.u32 (!%p8232_p9), 1, %s7024_s30  }
  0xf0   : > { %627 = sbr.rel (%p8232_p9) target bundleno = 13585 (0x3511), region = 96  ;;  %s8178_s16 = sshll.u32 (!%p8232_p9), %s7421_s12, 3 }
  0xf1   : > { %s630_s22 = scalar_lea.sflag (!%p8232_p9), [#allocation3], %s7421_s12  ;;  %s7427_s18 = scalar_lea.vmem (!%p8232_p9), [#allocation2], %s8178_s16 }
  0xf7   : > { %6999 = dma.done.wait (%p7364_p6), %s630_s22, 128  }
  0xf8   : > { %7001 = vsyncadd (%p7364_p6), %s630_s22, 4294967168  ;;  %p8233_p13 = scmp.eq.s32.totalorder %s7181_s2, 0 }
  0xfa   : > { %7003 = dma.done.wait (%p8233_p13), [#allocation6], 160   ;;  %p8234_p0 = pmov %p8233_p13 }
  0xfc   : > { %7005 = vsyncadd (%p8234_p0), [#allocation6], 4294967136  ;;  %p8235_p2 = pmov %p8234_p0 }
  0xfd   : > { %p8236_p8 = pmov %p8234_p0 }
  0xfe   : > { %7007 = dma.done.wait (%p8235_p2), [#allocation9], 1056  }
  0xff   : > { %7009 = vsyncadd (%p8236_p8), [#allocation9], 4294966240  ;;  %p8237_p10 = pmov %p8234_p0 }
 0x100   : > { %p8238_p11 = pmov %p8234_p0 }
 0x101   : > { %7011 = dma.done.wait (%p8237_p10), [#allocation12], 1056  }
 0x102   : > { %7013 = vsyncadd (%p8238_p11), [#allocation12], 4294966240  ;;  %p716_p6 = scmp.lt.s32.totalorder %s7181_s2, 1  ;;  %s8239_s19 = sld [smem:[#allocation21_spill]]  ;;  %v722_v1 = vld [vmem:[#allocation5] sm:$0xff]  ;;  %vm727_vm0 = vcmask 261120   ;;  %v742_v20 = vlaneseq }
 0x103   : > { %s8240_s5 = sld [smem:[#allocation26_spill]]  ;;  %v7045_v13 = vmov 0.0|0.0   ;;  %vm7046_vm1 = vmmov 0   ;;  %v7047_v16 = vmov 0.0   ;;  %s8242_s4 = sld [smem:[#allocation25_spill]]  ;;  %vm845_vm2 = vcmask 64512  }
 0x104   : > { %s717_s10 = scalar_select %p716_p6, %s7181_s2, 1  ;;  %6461 = vmatprep.subr.bf16.mxu0 %v7045_v13  ;;  %6103 = vmatprep.mubr.msk.f32.mxu0 %vm7046_vm1, %v7047_v16  ;;  %v7476_v22 = vshrl.u32 %v742_v20, 7  ;;  %v5824_v32 = vld [vmem:[%s8153_s6] ss:$0 sm:$0xff]  ;;  %v758_v56 = vld [vmem:[%s8154_s7 + $0x8] sm:$0xff]  ;;  %vm3086_vm3 = vcmask 523264  }
 0x105   : > { %6111 = vmatprep.subr.mxu1 %v7047_v16  ;;  %6113 = vmatprep.mubr.msk.f32.mxu1 %vm7046_vm1, %v7047_v16  ;;  %s8195_s22 = smov 96   ;;  %s8182_s15 = smov 56  }
 0x106   : > { %s5823_s23 = sshll.u32 %s717_s10, 3  ;;  %v7479_v23 = vsub.s32 0, %v7476_v22  ;;  %s8193_s10 = smov 120  }
 0x107   : > { %s8180_s17 = smov 64   ;;  %s8191_s9 = smov 112  }
 0x108   : > { %s719_s26 = scalar_lea.vmem %s8239_s19, %s5823_s23  ;;  %s8189_s23 = smov 88  }
 0x109   : > { %v720_v0 = vld [vmem:[%s719_s26] sm:$0xff]  ;;  %v753_v11 = vld [vmem:[%s8240_s5 + $0x8] sm:$0xff]  ;;  %v754_v12 = vld [vmem:[%s8240_s5 + $0x10] sm:$0xff]  ;;  %s8241_s26 = sld [smem:[#allocation24_spill]]  ;;  %s8185_s19 = smov 80  }
 0x10a   : > { %v721_v2 = vmul.f32 5.656854, %v720_v0  ;;  %v752_v10 = vld [vmem:[%s8240_s5] sm:$0xff]  ;;  %v755_v15 = vld [vmem:[%s8240_s5 + $0x18] sm:$0xff]  ;;  %s8179_s27 = smov 48   ;;  %s8187_s11 = smov 104  }
 0x10b   : > { %v6462_v14 = vpack.c.bf16 %v753_v11, %v752_v10  ;;  %v6465_v17 = vpack.c.bf16 %v755_v15, %v754_v12  ;;  %v7489_v25 = vld [vmem:[%s8242_s4] sm:$0x7]  ;;  %s8183_s3 = smov 72   ;;  %s8181_s16 = smov 40  }
 0x10c   : > { %v7450_v3 = vadd.f32 %v722_v1, %v721_v2  ;;  %v750_v29 = vrot.slane %v7489_v25, %v7479_v23  ;;  %v757_v1 = vld [vmem:[%s8154_s7] sm:$0xff]  ;;  %s8256_s14 = smov 40   ;;  %s5938_s13 = sshll.u32 %s7181_s2, 7 }
 0x10d   : > { %6463 = vmatpush3.bf16.msra.mxu0 %v6462_v14  ;;  %p8261_p5 = scmp.ne.s32.totalorder %s8228_s29, 0  ;;  %s7059_s2 = smov [#allocation14]  }
 0x10e   : > { %v728_v4 = vsel %vm727_vm0, %v7450_v3, 0.0  ;;  %6464 = vmatprep.subr.bf16.mxu0 %v7045_v13 }
 0x10f   : > { %729 = vadd.xlane.f32.xlu0 %v728_v4  ;;  %v7484_v24 = vld [vmem:[%s8241_s26] sm:$0x7] }
 0x110   : > { %v745_v26 = vrot.slane %v7484_v24, %v7479_v23 }
 0x111   : > { %6466 = vmatpush3.bf16.msra.mxu0 %v6465_v17 }
 0x112   : > { %6106 = vmatprep.subr.mxu0 %v7047_v16 }
 0x19c   : > { %v730_v5 = vpop.xlane.xlu0 %729 }
 0x19d   : > { %v732_v6 = vmul.f32 0.03125, %v730_v5 }
 0x19f   : > { %v733_v7 = vsub.f32 %v7450_v3, %v732_v6 }
 0x1a1   : > { %v734_v8 = vmul.f32 %v733_v7, %v733_v7 }
 0x1a3   : > { %v735_v9 = vsel %vm727_vm0, %v734_v8, 0.0 }
 0x1a4   : > { %736 = vadd.xlane.f32.xlu0 %v735_v9 }
 0x231   : > { %v737_v18 = vpop.xlane.xlu0 %736 }
 0x232   : > { %v738_v19 = vmul.f32 0.03125, %v737_v18 }
 0x234   : > { %v739_v21 = vadd.f32 1e-05, %v738_v19 }
 0x236   : > { %6678 = vrsqrt.f32 %v739_v21 }
 0x240   : > { %v6679_v27 = vpop.eup %6678 }
 0x241   : > { %v741_v28 = vmul.f32 %v6679_v27, %v733_v7 }
 0x243   : > { %v746_v30 = vmul.f32 %v745_v26, %v741_v28 }
 0x245   : > { %v751_v31 = vadd.f32 %v750_v29, %v746_v30 }
 0x247   : > { %6104 = vmatmul.mubr.msk.f32.vlgmr.msra.gmra.mrb[0].mxu0 %vm727_vm0, %v751_v31 }
 0x248   : > { %6108 = vmatprep.mubr.msk.f32.mxu0 %vm7046_vm1, %v7047_v16 }
 0x31a   : > { %v837_v33 = vpop.f32.mrb[0].mxu0 }
 0x31b   : > { %v7501_v34 = vadd.f32 %v5824_v32, %v837_v33  ;;  %v6105_v35 = vpop.f32.mrb[1].mxu0 }
 0x31c   : > { %v759_v35 = vld [vmem:[%s8154_s7 + $0x10] sm:$0xff] }
 0x31d   : > { %843 = vrot.lane.b32.xlu1 %v7501_v34, %s8195_s22  ;;  %v7506_v36 = vmul.f32 0.35355338, %v7501_v34 }
 0x31f   : > { %1008 = vrot.lane.b32.xlu0 %v7506_v36, %s8193_s10 }
 0x321   : > { %1010 = vrot.lane.b32.xlu1 %v7501_v34, %s8189_s23  ;;  %s8245_s23 = smov 88  }
 0x38f   : > { %v844_v37 = vpop.permute.xlu1 %843 }
 0x390   : > { %6107 = vmatpush3.xpose.msk.msra.mxu0 %vm845_vm2, %v844_v37 }
 0x391   : > { %6116 = vmatprep.subr.mxu0 %v7047_v16  ;;  %v1009_v39 = vpop.permute.xlu0 %1008 }
 0x393   : > { %v1011_v38 = vpop.permute.xlu1 %1010  ;;  %6109 = vmatmul.mubr.msk.f32.vlgmr.msra.gmra.mrb[2].mxu0 %vm845_vm2, %v7506_v36 }
 0x394   : > { %6117 = vmatpush3.xpose.msk.msra.mxu0 %vm845_vm2, %v1011_v38  ;;  %6118 = vmatprep.mubr.msk.f32.mxu0 %vm7046_vm1, %v7047_v16 }
 0x395   : > { %6126 = vmatprep.subr.mxu0 %v7047_v16 }
 0x397   : > { %6119 = vmatmul.mubr.msk.f32.vlgmr.msra.gmra.mrb[4].mxu0 %vm845_vm2, %v1009_v39 }
 0x398   : > { %6128 = vmatprep.mubr.msk.f32.mxu0 %vm7046_vm1, %v7047_v16  ;;  %6127 = vmatpush3.msra.mxu0 %v758_v56 }
 0x399   : > { %6136 = vmatprep.subr.mxu0 %v7047_v16 }
 0x466   : > { %v917_v40 = vpop.f32.mrb[2].mxu0 }
 0x467   : > { %v6110_v41 = vpop.f32.mrb[3].mxu0  ;;  %v921_v42 = vsel %vm845_vm2, %v917_v40, -inf }
 0x468   : > { %922 = vmax.xlane.f32.xlu1 %v921_v42 }
 0x46a   : > { %v1082_v43 = vpop.f32.mrb[4].mxu0 }
 0x46b   : > { %v6120_v44 = vpop.f32.mrb[5].mxu0  ;;  %v1086_v45 = vsel %vm845_vm2, %v1082_v43, -inf }
 0x46c   : > { %1087 = vmax.xlane.f32.xlu0 %v1086_v45 }
 0x482   : > { %1097 = vrot.lane.b32.xlu0 %v7501_v34, %s8182_s15  ;;  %s8246_s15 = smov 104  }
 0x4f5   : > { %v923_v46 = vpop.xlane.xlu1 %922 }
 0x4f6   : > { %v924_v47 = vsub.f32 %v917_v40, %v923_v46  ;;  %v760_v46 = vld [vmem:[%s8154_s7 + $0x18] sm:$0xff] }
 0x4f8   : > { %v925_v48 = vmul.f32 1.442695, %v924_v47 }
 0x4f9   : > { %v1088_v49 = vpop.xlane.xlu0 %1087 }
 0x4fa   : > { %6680 = vpow2.f32 %v925_v48  ;;  %v1089_v50 = vsub.f32 %v1082_v43, %v1088_v49 }
 0x4fc   : > { %v1090_v51 = vmul.f32 1.442695, %v1089_v50 }
 0x4fd   : > { %v1098_v62 = vpop.permute.xlu0 %1097 }
 0x4fe   : > { %6682 = vpow2.f32 %v1090_v51 }
 0x504   : > { %v6681_v52 = vpop.eup %6680 }
 0x505   : > { %v927_v53 = vsel %vm845_vm2, %v6681_v52, 0.0 }
 0x506   : > { %928 = vadd.xlane.f32.xlu1 %v927_v53 }
 0x508   : > { %v6683_v54 = vpop.eup %6682 }
 0x509   : > { %v1092_v55 = vsel %vm845_vm2, %v6683_v54, 0.0 }
 0x50a   : > { %1093 = vadd.xlane.f32.xlu1 %v1092_v55  ;;  %v5842_v55 = vld [vmem:[%s8155_s8] ss:$0 sm:$0xff] }
 0x51b   : > { %932 = vrot.lane.b32.xlu1 %v7501_v34, %s8180_s17  ;;  %s8249_s17 = sld [smem:[#allocation33_spill]] }
 0x51f   : > { %1321 = vrot.lane.b32.xlu1 %v7501_v34, %s8185_s19  ;;  %s8247_s19 = smov 80  }
 0x523   : > { %1319 = vrot.lane.b32.xlu1 %v7506_v36, %s8191_s9  ;;  %s8248_s9 = smov 72  }
 0x593   : > { %v929_v57 = vpop.xlane.xlu1 %928 }
 0x594   : > { %6684 = vrcp.f32 %v929_v57 }
 0x597   : > { %v1094_v58 = vpop.xlane.xlu1 %1093 }
 0x598   : > { %6686 = vrcp.f32 %v1094_v58 }
 0x59b   : > { %v933_v59 = vpop.permute.xlu1 %932 }
 0x59c   : > { %6112 = vmatpush3.msra.mxu1 %v933_v59 }
 0x59d   : > { %6121 = vmatprep.subr.mxu1 %v7047_v16 }
 0x59e   : > { %v6685_v60 = vpop.eup %6684 }
 0x59f   : > { %v931_v61 = vmul.f32 %v6685_v60, %v6681_v52  ;;  %v1322_v5 = vpop.permute.xlu1 %1321 }
 0x5a1   : > { %6114 = vmatmul.mubr.msk.f32.vlgmr.msra.gmra.mrb[0].mxu1 %vm845_vm2, %v931_v61 }
 0x5a2   : > { %v6687_v63 = vpop.eup %6686  ;;  %6122 = vmatpush3.msra.mxu1 %v1098_v62  ;;  %6123 = vmatprep.mubr.msk.f32.mxu1 %vm7046_vm1, %v7047_v16 }
 0x5a3   : > { %v1096_v0 = vmul.f32 %v6687_v63, %v6683_v54  ;;  %6131 = vmatprep.subr.mxu1 %v7047_v16  ;;  %v1320_v8 = vpop.permute.xlu1 %1319 }
 0x5a5   : > { %6124 = vmatmul.mubr.msk.f32.vlgmr.msra.gmra.mrb[2].mxu1 %vm845_vm2, %v1096_v0 }
 0x5a6   : > { %6133 = vmatprep.mubr.msk.f32.mxu1 %vm7046_vm1, %v7047_v16  ;;  %6132 = vmatpush3.msra.mxu1 %v757_v1 }
 0x5a7   : > { %6141 = vmatprep.subr.mxu1 %v7047_v16 }
 0x674   : > { %v1004_v2 = vpop.f32.mrb[0].mxu1 }
 0x675   : > { %v6115_v4 = vpop.f32.mrb[1].mxu1  ;;  %6134 = vmatmul.mubr.msk.f32.vlgmr.msra.gmra.mrb[4].mxu1 %vm845_vm2, %v1004_v2 }
 0x676   : > { %6143 = vmatprep.mubr.msk.f32.mxu1 %vm7046_vm1, %v7047_v16 }
 0x678   : > { %v1169_v6 = vpop.f32.mrb[2].mxu1 }
 0x679   : > { %v6125_v7 = vpop.f32.mrb[3].mxu1  ;;  %6129 = vmatmul.mubr.msk.f32.vlgmr.msra.gmra.mrb[6].mxu0 %vm845_vm2, %v1169_v6 }
 0x67a   : > { %6137 = vmatpush3.xpose.msk.msra.mxu0 %vm845_vm2, %v1322_v5  ;;  %6138 = vmatprep.mubr.msk.f32.mxu0 %vm7046_vm1, %v7047_v16 }
 0x67b   : > { %6146 = vmatprep.subr.mxu0 %v7047_v16 }
 0x67d   : > { %6139 = vmatmul.mubr.msk.f32.vlgmr.msra.gmra.mrb[8].mxu0 %vm845_vm2, %v1320_v8 }
 0x67e   : > { %6148 = vmatprep.mubr.msk.f32.mxu0 %vm7046_vm1, %v7047_v16  ;;  %6147 = vmatpush3.msra.mxu0 %v759_v35 }
 0x67f   : > { %6156 = vmatprep.subr.mxu0 %v7047_v16 }
 0x748   : > { %v1315_v9 = vpop.f32.mrb[4].mxu1 }
 0x749   : > { %v6135_v10 = vpop.f32.mrb[5].mxu1 }
 0x74c   : > { %v1242_v11 = vpop.f32.mrb[6].mxu0 }
 0x74d   : > { %v1316_v12 = vadd.f32 %v1315_v9, %v1242_v11  ;;  %v6130_v14 = vpop.f32.mrb[7].mxu0  ;;  %v5843_v11 = vld [vmem:[#allocation7] ss:$0 sm:$0xff] }
 0x750   : > { %v1393_v15 = vpop.f32.mrb[8].mxu0 }
 0x751   : > { %v6140_v17 = vpop.f32.mrb[9].mxu0  ;;  %v1397_v18 = vsel %vm845_vm2, %v1393_v15, -inf }
 0x752   : > { %1398 = vmax.xlane.f32.xlu1 %v1397_v18 }
 0x763   : > { %1408 = vrot.lane.b32.xlu1 %v7501_v34, %s8179_s27  ;;  %s8252_s27 = smov 120  }
 0x767   : > { %1558 = vrot.lane.b32.xlu1 %v7506_v36, %s8187_s11  ;;  %s8250_s11 = sld [smem:[#allocation34_spill]] }
 0x7df   : > { %v1399_v19 = vpop.xlane.xlu1 %1398 }
 0x7e0   : > { %v1400_v20 = vsub.f32 %v1393_v15, %v1399_v19 }
 0x7e2   : > { %v1401_v21 = vmul.f32 1.442695, %v1400_v20 }
 0x7e3   : > { %v1409_v26 = vpop.permute.xlu1 %1408 }
 0x7e4   : > { %6688 = vpow2.f32 %v1401_v21  ;;  %6142 = vmatpush3.msra.mxu1 %v1409_v26 }
 0x7e5   : > { %6151 = vmatprep.subr.mxu1 %v7047_v16 }
 0x7e7   : > { %v1559_v33 = vpop.permute.xlu1 %1558 }
 0x7ee   : > { %v6689_v27 = vpop.eup %6688 }
 0x7ef   : > { %v1403_v28 = vsel %vm845_vm2, %v6689_v27, 0.0 }
 0x7f0   : > { %1404 = vadd.xlane.f32.xlu0 %v1403_v28 }
 0x806   : > { %1560 = vrot.lane.b32.xlu0 %v7501_v34, %s8183_s3  ;;  %s8243_s3 = sld [smem:[#allocation27_spill]] }
 0x80c   : > { %v1828_v62 = vld [vmem:[%s8243_s3] sm:$0xff]  ;;  %v1829_v63 = vld [vmem:[%s8243_s3 + $0x8] sm:$0xff]  ;;  %v1831_v2 = vld [vmem:[%s8243_s3 + $0x18] sm:$0xff] }
 0x80d   : > { %v6658_v0 = vpack.i.bf16 %v1829_v63, %v1828_v62  ;;  %v6468_v1 = vpack.c.bf16 %v1829_v63, %v1828_v62 }
 0x87d   : > { %v1405_v29 = vpop.xlane.xlu0 %1404 }
 0x87e   : > { %6690 = vrcp.f32 %v1405_v29  ;;  %v7630_v29 = vsub.s32 1, %v7476_v22 }
 0x880   : > { %v1826_v35 = vrot.slane %v7489_v25, %v7630_v29 }
 0x881   : > { %v1561_v32 = vpop.permute.xlu0 %1560 }
 0x888   : > { %v6691_v30 = vpop.eup %6690 }
 0x889   : > { %v1407_v31 = vmul.f32 %v6691_v30, %v6689_v27  ;;  %v7633_v30 = vld [vmem:[%s7427_s18] sm:$0xff]  ;;  %s8244_s18 = smov 112  }
 0x88b   : > { %6144 = vmatmul.mubr.msk.f32.vlgmr.msra.gmra.mrb[6].mxu1 %vm845_vm2, %v1407_v31  ;;  %v1821_v31 = vrot.slane %v7484_v24, %v7630_v29 }
 0x88c   : > { %6152 = vmatpush3.xpose.msk.msra.mxu1 %vm845_vm2, %v1561_v32  ;;  %6153 = vmatprep.mubr.msk.f32.mxu1 %vm7046_vm1, %v7047_v16 }
 0x88d   : > { %6161 = vmatprep.subr.mxu1 %v7047_v16 }
 0x88f   : > { %6154 = vmatmul.mubr.msk.f32.vlgmr.msra.gmra.mrb[8].mxu1 %vm845_vm2, %v1559_v33 }
 0x890   : > { %6163 = vmatprep.mubr.msk.f32.mxu1 %vm7046_vm1, %v7047_v16  ;;  %6162 = vmatpush3.msra.mxu1 %v760_v46 }
 0x891   : > { %6473 = vmatprep.subr.bf16.mxu1 %v7045_v13 }
 0x95e   : > { %v1480_v36 = vpop.f32.mrb[6].mxu1 }
 0x95f   : > { %v6145_v37 = vpop.f32.mrb[7].mxu1  ;;  %6149 = vmatmul.mubr.msk.f32.vlgmr.msra.gmra.mrb[10].mxu0 %vm845_vm2, %v1480_v36 }
 0x960   : > { %6158 = vmatprep.mubr.msk.f32.mxu0 %vm7046_vm1, %v7047_v16 }
 0x962   : > { %v1632_v38 = vpop.f32.mrb[8].mxu1 }
 0x963   : > { %v6155_v39 = vpop.f32.mrb[9].mxu1  ;;  %v1636_v40 = vsel %vm845_vm2, %v1632_v38, -inf }
 0x964   : > { %1637 = vmax.xlane.f32.xlu1 %v1636_v40 }
 0x9f1   : > { %v1638_v41 = vpop.xlane.xlu1 %1637 }
 0x9f2   : > { %v1639_v42 = vsub.f32 %v1632_v38, %v1638_v41 }
 0x9f4   : > { %v1640_v43 = vmul.f32 1.442695, %v1639_v42 }
 0x9f6   : > { %6692 = vpow2.f32 %v1640_v43 }
 0xa00   : > { %v6693_v44 = vpop.eup %6692 }
 0xa01   : > { %v1642_v45 = vsel %vm845_vm2, %v6693_v44, 0.0 }
 0xa02   : > { %1643 = vadd.xlane.f32.xlu0 %v1642_v45 }
 0xa18   : > { %1647 = vrot.lane.b32.xlu0 %v7501_v34, %s8181_s16  ;;  %s8253_s16 = smov 56  }
 0xa32   : > { %v1553_v47 = vpop.f32.mrb[10].mxu0 }
 0xa33   : > { %v1557_v48 = vadd.f32 %v1553_v47, %v1316_v12  ;;  %v6150_v49 = vpop.f32.mrb[11].mxu0 }
 0xa8f   : > { %v1644_v50 = vpop.xlane.xlu0 %1643 }
 0xa90   : > { %6694 = vrcp.f32 %v1644_v50 }
 0xa93   : > { %v1648_v51 = vpop.permute.xlu0 %1647 }
 0xa94   : > { %6157 = vmatpush3.msra.mxu0 %v1648_v51 }
 0xa95   : > { %6467 = vmatprep.subr.bf16.mxu0 %v7045_v13 }
 0xa9a   : > { %v6695_v52 = vpop.eup %6694 }
 0xa9b   : > { %v1646_v53 = vmul.f32 %v6695_v52, %v6693_v44 }
 0xa9d   : > { %6159 = vmatmul.mubr.msk.f32.vlgmr.msra.gmra.mrb[12].mxu0 %vm845_vm2, %v1646_v53 }
 0xa9e   : > { %6174 = vmatprep.mubr.msk.f32.mxu0 %vm7046_vm1, %v7047_v16  ;;  %6469 = vmatpush3.bf16.msra.mxu0 %v6468_v1 }
 0xa9f   : > { %6470 = vmatprep.subr.bf16.mxu0 %v7045_v13 }
 0xb70   : > { %v1719_v34 = vpop.f32.mrb[12].mxu0 }
 0xb71   : > { %v6160_v54 = vpop.f32.mrb[13].mxu0  ;;  %6164 = vmatmul.mubr.msk.f32.vlgmr.msra.gmra.mrb[10].mxu1 %vm845_vm2, %v1719_v34 }
 0xb72   : > { %6185 = vmatprep.mubr.msk.f32.mxu1 %vm7046_vm1, %v7047_v16 }
 0xc44   : > { %v1792_v56 = vpop.f32.mrb[10].mxu1 }
 0xc45   : > { %v1796_v57 = vadd.f32 %v1792_v56, %v1557_v48  ;;  %v6165_v58 = vpop.f32.mrb[11].mxu1 }
 0xc47   : > { %v1803_v59 = vadd.f32 %v5842_v55, %v1796_v57 }
 0xc49   : > { %v7605_v60 = vadd.f32 %v1803_v59, %v7450_v3  ;;  %v1830_v3 = vld [vmem:[%s8243_s3 + $0x10] sm:$0xff] }
 0xc4a   : > { %v6663_v4 = vpack.i.bf16 %v1831_v2, %v1830_v3  ;;  %v6471_v5 = vpack.c.bf16 %v1831_v2, %v1830_v3 }
 0xc4b   : > { %v1805_v61 = vsel %vm727_vm0, %v7605_v60, 0.0 }
 0xc4c   : > { %1806 = vadd.xlane.f32.xlu1 %v1805_v61  ;;  %6664 = vrot.lane.b32.xlu0 %v6663_v4, %s8195_s22  ;;  %v1834_v4 = vld [vmem:[#allocation8 + $0x8] sm:$0xff] }
 0xc4d   : > { %6472 = vmatpush3.bf16.msra.mxu0 %v6471_v5 }
 0xc4e   : > { %6188 = vmatprep.subr.mxu0 %v7047_v16 }
 0xc50   : > { %1933 = vrot.lane.b32.xlu0 %v5843_v11, %s8195_s22 }
 0xcbe   : > { %v6665_v15 = vpop.permute.xlu0 %6664 }
 0xcbf   : > { %v6667_v19 = vunpack.i.h.bf16 %v6665_v15  ;;  %v6666_v26 = vunpack.i.l.bf16 %v6665_v15 }
 0xcc1   : > { %v6477_v28 = vpack.c.bf16 %v6667_v19, %v6666_v26 }
 0xcc2   : > { %v1934_v38 = vpop.permute.xlu0 %1933 }
 0xcd9   : > { %v1807_v6 = vpop.xlane.xlu1 %1806 }
 0xcda   : > { %v1808_v7 = vmul.f32 0.03125, %v1807_v6 }
 0xcdc   : > { %v1809_v8 = vsub.f32 %v7605_v60, %v1808_v7 }
 0xcde   : > { %v1810_v9 = vmul.f32 %v1809_v8, %v1809_v8 }
 0xce0   : > { %v1811_v10 = vsel %vm727_vm0, %v1810_v9, 0.0  ;;  %v1833_v9 = vld [vmem:[#allocation8] sm:$0xff] }
 0xce1   : > { %1812 = vadd.xlane.f32.xlu1 %v1811_v10 }
 0xcf2   : > { %6659 = vrot.lane.b32.xlu1 %v6658_v0, %s8195_s22 }
 0xd6e   : > { %v1813_v12 = vpop.xlane.xlu1 %1812 }
 0xd6f   : > { %v1814_v14 = vmul.f32 0.03125, %v1813_v12 }
 0xd71   : > { %v1815_v17 = vadd.f32 1e-05, %v1814_v14 }
 0xd72   : > { %v6660_v18 = vpop.permute.xlu1 %6659 }
 0xd73   : > { %6696 = vrsqrt.f32 %v1815_v17  ;;  %v6662_v20 = vunpack.i.h.bf16 %v6660_v18  ;;  %v6661_v21 = vunpack.i.l.bf16 %v6660_v18 }
 0xd75   : > { %v6474_v27 = vpack.c.bf16 %v6662_v20, %v6661_v21 }
 0xd77   : > { %6475 = vmatpush3.bf16.msra.mxu1 %v6474_v27 }
 0xd78   : > { %6476 = vmatprep.subr.bf16.mxu1 %v7045_v13 }
 0xd7b   : > { %6478 = vmatpush3.bf16.msra.mxu1 %v6477_v28 }
 0xd7c   : > { %6193 = vmatprep.subr.mxu1 %v7047_v16 }
 0xd7d   : > { %v6697_v32 = vpop.eup %6696 }
 0xd7e   : > { %v1817_v33 = vmul.f32 %v6697_v32, %v1809_v8  ;;  %6186 = vmatmul.mubr.msk.f32.vlgmr.msra.gmra.mrb[12].mxu1 %vm727_vm0, %v7633_v30 }
 0xd7f   : > { %6195 = vmatprep.mubr.msk.f32.mxu1 %vm7046_vm1, %v7047_v16 }
 0xd80   : > { %v1822_v36 = vmul.f32 %v1821_v31, %v1817_v33 }
 0xd82   : > { %v1827_v37 = vadd.f32 %v1826_v35, %v1822_v36 }
 0xd84   : > { %6175 = vmatmul.mubr.msk.f32.vlgmr.msra.gmra.mrb[14].mxu0 %vm727_vm0, %v1827_v37 }
 0xd85   : > { %6190 = vmatprep.mubr.msk.f32.mxu0 %vm7046_vm1, %v7047_v16 }
 0xe51   : > { %v2005_v39 = vpop.f32.mrb[12].mxu1 }
 0xe52   : > { %v7647_v40 = vadd.f32 %v2005_v39, %v1934_v38  ;;  %v6187_v41 = vpop.f32.mrb[13].mxu1 }
 0xe54   : > { %2175 = vrot.lane.b32.xlu1 %v7647_v40, %s8193_s10  ;;  %6189 = vmatpush3.xpose.msk.msra.mxu0 %vm845_vm2, %v7647_v40 }
 0xe55   : > { %6198 = vmatprep.subr.mxu0 %v7047_v16 }
 0xe57   : > { %v1913_v42 = vpop.f32.mrb[14].mxu0 }
 0xe58   : > { %v1914_v43 = vadd.f32 %v5843_v11, %v1913_v42  ;;  %v6176_v44 = vpop.f32.mrb[15].mxu0 }
 0xe5a   : > { %v7654_v45 = vmul.f32 0.35355338, %v1914_v43 }
 0xe5c   : > { %2173 = vrot.lane.b32.xlu0 %v7654_v45, %s8193_s10  ;;  %6191 = vmatmul.mubr.msk.f32.vlgmr.msra.gmra.mrb[16].mxu0 %vm845_vm2, %v7654_v45  ;;  %s8254_s10 = smov 64  }
 0xe5d   : > { %6200 = vmatprep.mubr.msk.f32.mxu0 %vm7046_vm1, %v7047_v16 }
 0xec6   : > { %v2176_v46 = vpop.permute.xlu1 %2175 }
 0xec7   : > { %6199 = vmatpush3.xpose.msk.msra.mxu0 %vm845_vm2, %v2176_v46 }
 0xec8   : > { %6208 = vmatprep.subr.mxu0 %v7047_v16 }
 0xece   : > { %v2174_v47 = vpop.permute.xlu0 %2173 }
 0xecf   : > { %6201 = vmatmul.mubr.msk.f32.vlgmr.msra.gmra.mrb[18].mxu0 %vm845_vm2, %v2174_v47 }
 0xed0   : > { %6210 = vmatprep.mubr.msk.f32.mxu0 %vm7046_vm1, %v7047_v16  ;;  %6209 = vmatpush3.msra.mxu0 %v1834_v4 }
 0xed1   : > { %6218 = vmatprep.subr.mxu0 %v7047_v16 }
 0xf2f   : > { %v2082_v48 = vpop.f32.mrb[16].mxu0 }
 0xf30   : > { %v6192_v49 = vpop.f32.mrb[17].mxu0  ;;  %v2086_v50 = vsel %vm845_vm2, %v2082_v48, -inf }
 0xf31   : > { %2087 = vmax.xlane.f32.xlu1 %v2086_v50 }
 0xfa2   : > { %v2247_v51 = vpop.f32.mrb[18].mxu0 }
 0xfa3   : > { %v6202_v52 = vpop.f32.mrb[19].mxu0  ;;  %v2251_v53 = vsel %vm845_vm2, %v2247_v51, -inf }
 0xfa4   : > { %2252 = vmax.xlane.f32.xlu0 %v2251_v53 }
 0xfbe   : > { %v2088_v34 = vpop.xlane.xlu1 %2087 }
 0xfbf   : > { %v2089_v54 = vsub.f32 %v2082_v48, %v2088_v34 }
 0xfc1   : > { %v2090_v55 = vmul.f32 1.442695, %v2089_v54 }
 0xfc3   : > { %6698 = vpow2.f32 %v2090_v55 }
 0xfcd   : > { %v6699_v56 = vpop.eup %6698 }
 0xfce   : > { %v2092_v57 = vsel %vm845_vm2, %v6699_v56, 0.0 }
 0xfcf   : > { %2093 = vadd.xlane.f32.xlu0 %v2092_v57 }
 0xfe5   : > { %2097 = vrot.lane.b32.xlu0 %v7647_v40, %s8195_s22  ;;  %s8251_s22 = smov 96  }
 0xfe9   : > { %2484 = vrot.lane.b32.xlu0 %v7654_v45, %s8244_s18 }
0x1031   : > { %v2253_v58 = vpop.xlane.xlu0 %2252 }
0x1032   : > { %v2254_v59 = vsub.f32 %v2247_v51, %v2253_v58 }
0x1034   : > { %v2255_v61 = vmul.f32 1.442695, %v2254_v59 }
0x1036   : > { %6700 = vpow2.f32 %v2255_v61 }
0x1040   : > { %v6701_v62 = vpop.eup %6700 }
0x1041   : > { %v2257_v63 = vsel %vm845_vm2, %v6701_v62, 0.0 }
0x1042   : > { %2258 = vadd.xlane.f32.xlu1 %v2257_v63 }
0x1053   : > { %2262 = vrot.lane.b32.xlu1 %v7647_v40, %s8245_s23 }
0x1057   : > { %2486 = vrot.lane.b32.xlu1 %v7647_v40, %s8244_s18 }
0x105c   : > { %v2094_v0 = vpop.xlane.xlu0 %2093 }
0x105d   : > { %6702 = vrcp.f32 %v2094_v0 }
0x1060   : > { %v2098_v1 = vpop.permute.xlu0 %2097 }
0x1061   : > { %6194 = vmatpush3.msra.mxu1 %v2098_v1  ;;  %v5862_v1 = vld [vmem:[#allocation10] ss:$0 sm:$0xff] }
0x1062   : > { %6203 = vmatprep.subr.mxu1 %v7047_v16 }
0x1064   : > { %v2485_v17 = vpop.permute.xlu0 %2484 }
0x1067   : > { %v6703_v3 = vpop.eup %6702 }
0x1068   : > { %v2096_v2 = vmul.f32 %v6703_v3, %v6699_v56  ;;  %v1836_v56 = vld [vmem:[#allocation8 + $0x18] sm:$0xff] }
0x106a   : > { %6196 = vmatmul.mubr.msk.f32.vlgmr.msra.gmra.mrb[14].mxu1 %vm845_vm2, %v2096_v2 }
0x106b   : > { %6205 = vmatprep.mubr.msk.f32.mxu1 %vm7046_vm1, %v7047_v16 }
0x10cf   : > { %v2259_v5 = vpop.xlane.xlu1 %2258 }
0x10d0   : > { %6704 = vrcp.f32 %v2259_v5 }
0x10d3   : > { %v2263_v6 = vpop.permute.xlu1 %2262 }
0x10d4   : > { %6204 = vmatpush3.msra.mxu1 %v2263_v6 }
0x10d5   : > { %6213 = vmatprep.subr.mxu1 %v7047_v16 }
0x10d7   : > { %v2487_v14 = vpop.permute.xlu1 %2486 }
0x10da   : > { %v6705_v7 = vpop.eup %6704 }
0x10db   : > { %v2261_v8 = vmul.f32 %v6705_v7, %v6701_v62 }
0x10dd   : > { %6206 = vmatmul.mubr.msk.f32.vlgmr.msra.gmra.mrb[16].mxu1 %vm845_vm2, %v2261_v8 }
0x10de   : > { %6214 = vmatpush3.msra.mxu1 %v1833_v9  ;;  %6215 = vmatprep.mubr.msk.f32.mxu1 %vm7046_vm1, %v7047_v16 }
0x10df   : > { %6223 = vmatprep.subr.mxu1 %v7047_v16 }
0x113d   : > { %v2169_v10 = vpop.f32.mrb[14].mxu1 }
0x113e   : > { %v6197_v11 = vpop.f32.mrb[15].mxu1  ;;  %6216 = vmatmul.mubr.msk.f32.vlgmr.msra.gmra.mrb[18].mxu1 %vm845_vm2, %v2169_v10 }
0x113f   : > { %6225 = vmatprep.mubr.msk.f32.mxu1 %vm7046_vm1, %v7047_v16 }
0x11b0   : > { %v2334_v12 = vpop.f32.mrb[16].mxu1 }
0x11b1   : > { %v6207_v15 = vpop.f32.mrb[17].mxu1  ;;  %6211 = vmatmul.mubr.msk.f32.vlgmr.msra.gmra.mrb[20].mxu0 %vm845_vm2, %v2334_v12 }
0x11b2   : > { %6219 = vmatpush3.xpose.msk.msra.mxu0 %vm845_vm2, %v2487_v14  ;;  %6220 = vmatprep.mubr.msk.f32.mxu0 %vm7046_vm1, %v7047_v16  ;;  %v2993_v14 = vld [vmem:[#allocation11] sm:$0xff]  ;;  %v2994_v15 = vld [vmem:[#allocation11 + $0x8] sm:$0xff] }
0x11b3   : > { %6228 = vmatprep.subr.mxu0 %v7047_v16 }
0x11b5   : > { %6221 = vmatmul.mubr.msk.f32.vlgmr.msra.gmra.mrb[22].mxu0 %vm845_vm2, %v2485_v17  ;;  %v6480_v17 = vpack.c.bf16 %v2994_v15, %v2993_v14 }
0x11b6   : > { %6230 = vmatprep.mubr.msk.f32.mxu0 %vm7046_vm1, %v7047_v16 }
0x1211   : > { %v2480_v18 = vpop.f32.mrb[18].mxu1 }
0x1212   : > { %v6217_v19 = vpop.f32.mrb[19].mxu1 }
0x1213   : > { %v2996_v19 = vld [vmem:[#allocation11 + $0x18] sm:$0xff] }
0x1284   : > { %v2407_v20 = vpop.f32.mrb[20].mxu0 }
0x1285   : > { %v2481_v21 = vadd.f32 %v2480_v18, %v2407_v20  ;;  %v6212_v26 = vpop.f32.mrb[21].mxu0  ;;  %v2995_v18 = vld [vmem:[#allocation11 + $0x10] sm:$0xff] }
0x1286   : > { %v6483_v20 = vpack.c.bf16 %v2996_v19, %v2995_v18  ;;  %v3080_v26 = vld [vmem:[%s8249_s17 + $0x10] sm:$0xff] }
0x1288   : > { %v2558_v27 = vpop.f32.mrb[22].mxu0 }
0x1289   : > { %v6222_v28 = vpop.f32.mrb[23].mxu0  ;;  %v2562_v31 = vsel %vm845_vm2, %v2558_v27, -inf }
0x128a   : > { %2563 = vmax.xlane.f32.xlu1 %v2562_v31  ;;  %v3081_v28 = vld [vmem:[%s8249_s17 + $0x18] sm:$0xff] }
0x128b   : > { %v6489_v31 = vpack.c.bf16 %v3081_v28, %v3080_v26 }
0x129b   : > { %2725 = vrot.lane.b32.xlu1 %v7647_v40, %s8246_s15 }
0x129f   : > { %2723 = vrot.lane.b32.xlu1 %v7654_v45, %s8246_s15  ;;  %v1835_v45 = vld [vmem:[#allocation8 + $0x10] sm:$0xff] }
0x12a0   : > { %6229 = vmatpush3.msra.mxu0 %v1835_v45 }
0x12a1   : > { %6238 = vmatprep.subr.mxu0 %v7047_v16 }
0x1317   : > { %v2564_v32 = vpop.xlane.xlu1 %2563 }
0x1318   : > { %v2565_v33 = vsub.f32 %v2558_v27, %v2564_v32  ;;  %v3082_v32 = vld [vmem:[%s8249_s17 + $0x20] sm:$0xff] }
0x131a   : > { %v2566_v35 = vmul.f32 1.442695, %v2565_v33  ;;  %v3083_v33 = vld [vmem:[%s8249_s17 + $0x28] sm:$0xff] }
0x131b   : > { %v2726_v42 = vpop.permute.xlu1 %2725 }
0x131c   : > { %6706 = vpow2.f32 %v2566_v35  ;;  %v6492_v35 = vpack.c.bf16 %v3083_v33, %v3082_v32 }
0x131f   : > { %v2724_v44 = vpop.permute.xlu1 %2723 }
0x1326   : > { %v6707_v36 = vpop.eup %6706 }
0x1327   : > { %v2568_v37 = vsel %vm845_vm2, %v6707_v36, 0.0 }
0x1328   : > { %2569 = vadd.xlane.f32.xlu0 %v2568_v37 }
0x133e   : > { %2573 = vrot.lane.b32.xlu0 %v7647_v40, %s8247_s19 }
0x13b5   : > { %v2570_v38 = vpop.xlane.xlu0 %2569 }
0x13b6   : > { %6708 = vrcp.f32 %v2570_v38 }
0x13b9   : > { %v2574_v39 = vpop.permute.xlu0 %2573 }
0x13ba   : > { %6224 = vmatpush3.msra.mxu1 %v2574_v39  ;;  %v7760_v39 = vsub.s32 2, %v7476_v22  ;;  %v3084_v22 = vld [vmem:[%s8249_s17 + $0x30] sm:$0xff] }
0x13bb   : > { %6233 = vmatprep.subr.mxu1 %v7047_v16 }
0x13c0   : > { %v6709_v41 = vpop.eup %6708 }
0x13c1   : > { %v2572_v43 = vmul.f32 %v6709_v41, %v6707_v36  ;;  %v2986_v41 = vrot.slane %v7484_v24, %v7760_v39  ;;  %v3085_v24 = vld [vmem:[%s8249_s17 + $0x38] sm:$0xff] }
0x13c3   : > { %6226 = vmatmul.mubr.msk.f32.vlgmr.msra.gmra.mrb[20].mxu1 %vm845_vm2, %v2572_v43 }
0x13c4   : > { %6234 = vmatpush3.xpose.msk.msra.mxu1 %vm845_vm2, %v2726_v42  ;;  %6235 = vmatprep.mubr.msk.f32.mxu1 %vm7046_vm1, %v7047_v16 }
0x13c5   : > { %6243 = vmatprep.subr.mxu1 %v7047_v16 }
0x13c7   : > { %6236 = vmatmul.mubr.msk.f32.vlgmr.msra.gmra.mrb[22].mxu1 %vm845_vm2, %v2724_v44  ;;  %v2991_v44 = vrot.slane %v7489_v25, %v7760_v39  ;;  %v5863_v25 = vld [vmem:[#allocation13] ss:$0 sm:$0xff] }
0x13c8   : > { %6245 = vmatprep.mubr.msk.f32.mxu1 %vm7046_vm1, %v7047_v16  ;;  %6244 = vmatpush3.msra.mxu1 %v1836_v56 }
0x13c9   : > { %6485 = vmatprep.subr.bf16.mxu1 %v7045_v13 }
0x1496   : > { %v2645_v46 = vpop.f32.mrb[20].mxu1 }
0x1497   : > { %v6227_v47 = vpop.f32.mrb[21].mxu1  ;;  %6231 = vmatmul.mubr.msk.f32.vlgmr.msra.gmra.mrb[24].mxu0 %vm845_vm2, %v2645_v46 }
0x1498   : > { %6240 = vmatprep.mubr.msk.f32.mxu0 %vm7046_vm1, %v7047_v16  ;;  %v6495_v47 = vpack.c.bf16 %v3085_v24, %v3084_v22  ;;  %v5875_v24 = vld [vmem:[%s8154_s7 + $0x28] sm:$0xff] }
0x149a   : > { %v2797_v48 = vpop.f32.mrb[22].mxu1 }
0x149b   : > { %v6237_v49 = vpop.f32.mrb[23].mxu1  ;;  %v2801_v50 = vsel %vm845_vm2, %v2797_v48, -inf }
0x149c   : > { %2802 = vmax.xlane.f32.xlu0 %v2801_v50 }
0x14b2   : > { %2812 = vrot.lane.b32.xlu0 %v7647_v40, %s8248_s9 }
0x1529   : > { %v2803_v51 = vpop.xlane.xlu0 %2802 }
0x152a   : > { %v2804_v52 = vsub.f32 %v2797_v48, %v2803_v51 }
0x152c   : > { %v2805_v53 = vmul.f32 1.442695, %v2804_v52 }
0x152d   : > { %v2813_v34 = vpop.permute.xlu0 %2812 }
0x152e   : > { %6710 = vpow2.f32 %v2805_v53  ;;  %6239 = vmatpush3.msra.mxu0 %v2813_v34  ;;  %v5866_v53 = vld [vmem:[%s8250_s11] ss:$0 sm:$0xff] }
0x152f   : > { %6479 = vmatprep.subr.bf16.mxu0 %v7045_v13 }
0x1538   : > { %v6711_v54 = vpop.eup %6710 }
0x1539   : > { %v2807_v55 = vsel %vm845_vm2, %v6711_v54, 0.0 }
0x153a   : > { %2808 = vadd.xlane.f32.xlu1 %v2807_v55 }
0x156a   : > { %v2718_v57 = vpop.f32.mrb[24].mxu0 }
0x156b   : > { %v2722_v58 = vadd.f32 %v2718_v57, %v2481_v21  ;;  %v6232_v59 = vpop.f32.mrb[25].mxu0  ;;  %v3079_v21 = vld [vmem:[%s8249_s17 + $0x8] sm:$0xff] }
0x15c7   : > { %v2809_v40 = vpop.xlane.xlu1 %2808 }
0x15c8   : > { %6712 = vrcp.f32 %v2809_v40 }
0x15d2   : > { %v6713_v61 = vpop.eup %6712 }
0x15d3   : > { %v2811_v62 = vmul.f32 %v6713_v61, %v6711_v54 }
0x15d5   : > { %6241 = vmatmul.mubr.msk.f32.vlgmr.msra.gmra.mrb[26].mxu0 %vm845_vm2, %v2811_v62  ;;  %v5869_v62 = vld [vmem:[%s8240_s5 + $0x20] sm:$0xff] }
0x15d6   : > { %6256 = vmatprep.mubr.msk.f32.mxu0 %vm7046_vm1, %v7047_v16  ;;  %6481 = vmatpush3.bf16.msra.mxu0 %v6480_v17  ;;  %v5879_v17 = vld [vmem:[%s8153_s6 + $0x1] ss:$0 sm:$0xff] }
0x15d7   : > { %6482 = vmatprep.subr.bf16.mxu0 %v7045_v13 }
0x15da   : > { %6484 = vmatpush3.bf16.msra.mxu0 %v6483_v20 }
0x15db   : > { %6497 = vmatprep.subr.bf16.mxu0 %v7045_v13 }
0x16a8   : > { %v2884_v63 = vpop.f32.mrb[26].mxu0 }
0x16a9   : > { %v6242_v0 = vpop.f32.mrb[27].mxu0  ;;  %6246 = vmatmul.mubr.msk.f32.vlgmr.msra.gmra.mrb[24].mxu1 %vm845_vm2, %v2884_v63  ;;  %v5870_v63 = vld [vmem:[%s8240_s5 + $0x28] sm:$0xff] }
0x16aa   : > { %6275 = vmatprep.mubr.msk.f32.mxu1 %vm7046_vm1, %v7047_v16  ;;  %v6498_v0 = vpack.c.bf16 %v5870_v63, %v5869_v62 }
0x177c   : > { %v2957_v3 = vpop.f32.mrb[24].mxu1 }
0x177d   : > { %v2961_v2 = vadd.f32 %v2957_v3, %v2722_v58  ;;  %v6247_v4 = vpop.f32.mrb[25].mxu1  ;;  %v5872_v3 = vld [vmem:[%s8240_s5 + $0x38] sm:$0xff] }
0x177f   : > { %v2968_v5 = vadd.f32 %v5862_v1, %v2961_v2  ;;  %v5871_v1 = vld [vmem:[%s8240_s5 + $0x30] sm:$0xff] }
0x1780   : > { %v6501_v2 = vpack.c.bf16 %v5872_v3, %v5871_v1 }
0x1781   : > { %v2969_v6 = vadd.f32 %v2968_v5, %v7605_v60  ;;  %v3078_v60 = vld [vmem:[%s8249_s17] sm:$0xff] }
0x1782   : > { %v6486_v27 = vpack.c.bf16 %v3079_v21, %v3078_v60 }
0x1783   : > { %v2970_v7 = vsel %vm727_vm0, %v2969_v6, 0.0 }
0x1784   : > { %2971 = vadd.xlane.f32.xlu1 %v2970_v7  ;;  %6487 = vmatpush3.bf16.msra.mxu1 %v6486_v27  ;;  %v7805_v7 = vld [vmem:[%s8241_s26 + $0x4] sm:$0x7] }
0x1785   : > { %6488 = vmatprep.subr.bf16.mxu1 %v7045_v13 }
0x1788   : > { %6490 = vmatpush3.bf16.msra.mxu1 %v6489_v31 }
0x1789   : > { %6491 = vmatprep.subr.bf16.mxu1 %v7045_v13 }
0x178c   : > { %6493 = vmatpush3.bf16.msra.mxu1 %v6492_v35 }
0x178d   : > { %6494 = vmatprep.subr.bf16.mxu1 %v7045_v13 }
0x1790   : > { %6496 = vmatpush3.bf16.msra.mxu1 %v6495_v47 }
0x1791   : > { %6294 = vmatprep.subr.mxu1 %v7047_v16 }
0x1811   : > { %v2972_v8 = vpop.xlane.xlu1 %2971 }
0x1812   : > { %v2973_v9 = vmul.f32 0.03125, %v2972_v8  ;;  %v7810_v8 = vld [vmem:[%s8242_s4 + $0x4] sm:$0x7]  ;;  %s8260_s4 = sld [smem:[#allocation37_spill]] }
0x1814   : > { %v2974_v10 = vsub.f32 %v2969_v6, %v2973_v9  ;;  %v3189_v9 = vrot.slane %v7805_v7, %v7479_v23 }
0x1816   : > { %v2975_v11 = vmul.f32 %v2974_v10, %v2974_v10 }
0x1818   : > { %v2976_v12 = vsel %vm727_vm0, %v2975_v11, 0.0  ;;  %s8102_s5 = scalar_lea.hbm %s8260_s4, %s5938_s13 }
0x1819   : > { %2977 = vadd.xlane.f32.xlu1 %v2976_v12  ;;  %v3194_v12 = vrot.slane %v7810_v8, %v7479_v23 }
0x18a6   : > { %v2978_v36 = vpop.xlane.xlu1 %2977 }
0x18a7   : > { %v2979_v37 = vmul.f32 0.03125, %v2978_v36 }
0x18a9   : > { %v2980_v38 = vadd.f32 1e-05, %v2979_v37 }
0x18ab   : > { %6714 = vrsqrt.f32 %v2980_v38 }
0x18b5   : > { %v6715_v42 = vpop.eup %6714 }
0x18b6   : > { %v2982_v43 = vmul.f32 %v6715_v42, %v2974_v10 }
0x18b8   : > { %v2987_v45 = vmul.f32 %v2986_v41, %v2982_v43 }
0x18ba   : > { %v2992_v46 = vadd.f32 %v2991_v44, %v2987_v45 }
0x18bc   : > { %6257 = vmatmul.mubr.msk.f32.vlgmr.msra.gmra.mrb[28].mxu0 %vm727_vm0, %v2992_v46 }
0x18bd   : > { %6286 = vmatprep.mubr.msk.f32.mxu0 %vm7046_vm1, %v7047_v16  ;;  %6499 = vmatpush3.bf16.msra.mxu0 %v6498_v0 }
0x18be   : > { %6500 = vmatprep.subr.bf16.mxu0 %v7045_v13 }
0x18c1   : > { %6502 = vmatpush3.bf16.msra.mxu0 %v6501_v2 }
0x18c2   : > { %6289 = vmatprep.subr.mxu0 %v7047_v16 }
0x198f   : > { %v3073_v48 = vpop.f32.mrb[28].mxu0 }
0x1990   : > { %v3074_v49 = vadd.f32 %v5863_v25, %v3073_v48  ;;  %v6258_v50 = vpop.f32.mrb[29].mxu0 }
0x1992   : > { %v3077_v51 = vmax.f32 %v3074_v49, 0.0 }
0x1994   : > { %6276 = vmatmul.mubr.msk.f32.vlgmr.msra.gmra.mrb[26].mxu1 %vm3086_vm3, %v3077_v51 }
0x1995   : > { %6296 = vmatprep.mubr.msk.f32.mxu1 %vm7046_vm1, %v7047_v16 }
0x1a67   : > { %v3156_v52 = vpop.f32.mrb[26].mxu1 }
0x1a68   : > { %v3160_v34 = vadd.f32 %v3156_v52, %v2969_v6  ;;  %v6277_v54 = vpop.f32.mrb[27].mxu1 }
0x1a6a   : > { %v7782_v55 = vadd.f32 %v5866_v53, %v3160_v34  ;;  %v5874_v34 = vld [vmem:[%s8154_s7 + $0x20] sm:$0xff] }
0x1a6c   : > { %v3173_v56 = vsel %vm727_vm0, %v7782_v55, 0.0 }
0x1a6d   : > { %3174 = vadd.xlane.f32.xlu1 %v3173_v56 }
0x1afa   : > { %v3175_v57 = vpop.xlane.xlu1 %3174 }
0x1afb   : > { %v3176_v58 = vmul.f32 0.03125, %v3175_v57 }
0x1afd   : > { %v3177_v59 = vsub.f32 %v7782_v55, %v3176_v58 }
0x1aff   : > { %v3178_v40 = vmul.f32 %v3177_v59, %v3177_v59 }
0x1b01   : > { %v3179_v61 = vsel %vm727_vm0, %v3178_v40, 0.0 }
0x1b02   : > { %3180 = vadd.xlane.f32.xlu1 %v3179_v61 }
0x1b8f   : > { %v3181_v4 = vpop.xlane.xlu1 %3180 }
0x1b90   : > { %v3182_v5 = vmul.f32 0.03125, %v3181_v4 }
0x1b92   : > { %v3183_v6 = vadd.f32 1e-05, %v3182_v5 }
0x1b94   : > { %6716 = vrsqrt.f32 %v3183_v6 }
0x1b9e   : > { %v6717_v10 = vpop.eup %6716 }
0x1b9f   : > { %v3185_v11 = vmul.f32 %v6717_v10, %v3177_v59 }
0x1ba1   : > { %v3190_v14 = vmul.f32 %v3189_v9, %v3185_v11 }
0x1ba3   : > { %v3195_v15 = vadd.f32 %v3194_v12, %v3190_v14 }
0x1ba5   : > { %6287 = vmatmul.mubr.msk.f32.vlgmr.msra.gmra.mrb[30].mxu0 %vm727_vm0, %v3195_v15 }
0x1ba6   : > { %6291 = vmatprep.mubr.msk.f32.mxu0 %vm7046_vm1, %v7047_v16 }
0x1c78   : > { %v3285_v18 = vpop.f32.mrb[30].mxu0 }
0x1c79   : > { %v7822_v19 = vadd.f32 %v5879_v17, %v3285_v18  ;;  %v6288_v20 = vpop.f32.mrb[31].mxu0 }
0x1c7b   : > { %3457 = vrot.lane.b32.xlu1 %v7822_v19, %s8245_s23  ;;  %3291 = vrot.lane.b32.xlu0 %v7822_v19, %s8251_s22  ;;  %v7829_v23 = vmul.f32 0.35355338, %v7822_v19 }
0x1c7f   : > { %3455 = vrot.lane.b32.xlu0 %v7829_v23, %s8252_s27 }
0x1ced   : > { %v3292_v60 = vpop.permute.xlu0 %3291  ;;  %v3458_v21 = vpop.permute.xlu1 %3457 }
0x1cee   : > { %6290 = vmatpush3.xpose.msk.msra.mxu0 %vm845_vm2, %v3292_v60 }
0x1cef   : > { %6299 = vmatprep.subr.mxu0 %v7047_v16 }
0x1cf1   : > { %6292 = vmatmul.mubr.msk.f32.vlgmr.msra.gmra.mrb[32].mxu0 %vm845_vm2, %v7829_v23  ;;  %v3456_v26 = vpop.permute.xlu0 %3455 }
0x1cf2   : > { %6300 = vmatpush3.xpose.msk.msra.mxu0 %vm845_vm2, %v3458_v21  ;;  %6301 = vmatprep.mubr.msk.f32.mxu0 %vm7046_vm1, %v7047_v16 }
0x1cf3   : > { %6309 = vmatprep.subr.mxu0 %v7047_v16 }
0x1cf5   : > { %6302 = vmatmul.mubr.msk.f32.vlgmr.msra.gmra.mrb[34].mxu0 %vm845_vm2, %v3456_v26 }
0x1cf6   : > { %6311 = vmatprep.mubr.msk.f32.mxu0 %vm7046_vm1, %v7047_v16  ;;  %6310 = vmatpush3.msra.mxu0 %v5875_v24  ;;  %v5897_v24 = vld [vmem:[%s8155_s8 + $0x1] ss:$0 sm:$0xff] }
0x1cf7   : > { %6319 = vmatprep.subr.mxu0 %v7047_v16 }
0x1dc4   : > { %v3364_v27 = vpop.f32.mrb[32].mxu0 }
0x1dc5   : > { %v6293_v28 = vpop.f32.mrb[33].mxu0  ;;  %v3368_v31 = vsel %vm845_vm2, %v3364_v27, -inf }
0x1dc6   : > { %3369 = vmax.xlane.f32.xlu0 %v3368_v31 }
0x1dc8   : > { %v3529_v32 = vpop.f32.mrb[34].mxu0 }
0x1dc9   : > { %v6303_v33 = vpop.f32.mrb[35].mxu0  ;;  %v3533_v35 = vsel %vm845_vm2, %v3529_v32, -inf }
0x1dca   : > { %3534 = vmax.xlane.f32.xlu1 %v3533_v35 }
0x1ddb   : > { %3544 = vrot.lane.b32.xlu1 %v7822_v19, %s8253_s16  ;;  %s8255_s16 = smov 48  }
0x1ddf   : > { %3766 = vrot.lane.b32.xlu1 %v7829_v23, %s8244_s18 }
0x1e53   : > { %v3370_v36 = vpop.xlane.xlu0 %3369 }
0x1e54   : > { %v3371_v37 = vsub.f32 %v3364_v27, %v3370_v36 }
0x1e56   : > { %v3372_v38 = vmul.f32 1.442695, %v3371_v37  ;;  %v5877_v37 = vld [vmem:[%s8154_s7 + $0x38] sm:$0xff] }
0x1e57   : > { %v3535_v41 = vpop.xlane.xlu1 %3534 }
0x1e58   : > { %6718 = vpow2.f32 %v3372_v38  ;;  %v3536_v42 = vsub.f32 %v3529_v32, %v3535_v41 }
0x1e5a   : > { %v3537_v43 = vmul.f32 1.442695, %v3536_v42 }
0x1e5b   : > { %v3545_v51 = vpop.permute.xlu1 %3544 }
0x1e5c   : > { %6720 = vpow2.f32 %v3537_v43 }
0x1e5f   : > { %v3767_v40 = vpop.permute.xlu1 %3766 }
0x1e62   : > { %v6719_v44 = vpop.eup %6718 }
0x1e63   : > { %v3374_v45 = vsel %vm845_vm2, %v6719_v44, 0.0 }
0x1e64   : > { %3375 = vadd.xlane.f32.xlu0 %v3374_v45 }
0x1e66   : > { %v6721_v46 = vpop.eup %6720 }
0x1e67   : > { %v3539_v22 = vsel %vm845_vm2, %v6721_v46, 0.0 }
0x1e68   : > { %3540 = vadd.xlane.f32.xlu0 %v3539_v22 }
0x1e7e   : > { %3379 = vrot.lane.b32.xlu0 %v7822_v19, %s8254_s10 }
0x1e82   : > { %3768 = vrot.lane.b32.xlu0 %v7822_v19, %s8247_s19 }
0x1ef1   : > { %v3376_v47 = vpop.xlane.xlu0 %3375 }
0x1ef2   : > { %6722 = vrcp.f32 %v3376_v47 }
0x1ef5   : > { %v3541_v25 = vpop.xlane.xlu0 %3540 }
0x1ef6   : > { %6724 = vrcp.f32 %v3541_v25 }
0x1ef9   : > { %v3380_v48 = vpop.permute.xlu0 %3379 }
0x1efa   : > { %6295 = vmatpush3.msra.mxu1 %v3380_v48 }
0x1efb   : > { %6304 = vmatprep.subr.mxu1 %v7047_v16 }
0x1efc   : > { %v6723_v49 = vpop.eup %6722 }
0x1efd   : > { %v3378_v50 = vmul.f32 %v6723_v49, %v6719_v44  ;;  %v3769_v58 = vpop.permute.xlu0 %3768 }
0x1eff   : > { %6297 = vmatmul.mubr.msk.f32.vlgmr.msra.gmra.mrb[28].mxu1 %vm845_vm2, %v3378_v50 }
0x1f00   : > { %v6725_v52 = vpop.eup %6724  ;;  %6305 = vmatpush3.msra.mxu1 %v3545_v51  ;;  %6306 = vmatprep.mubr.msk.f32.mxu1 %vm7046_vm1, %v7047_v16 }
0x1f01   : > { %v3543_v53 = vmul.f32 %v6725_v52, %v6721_v46  ;;  %6314 = vmatprep.subr.mxu1 %v7047_v16  ;;  %v5898_v52 = vld [vmem:[%s8243_s3 + $0x20] sm:$0xff] }
0x1f03   : > { %6307 = vmatmul.mubr.msk.f32.vlgmr.msra.gmra.mrb[30].mxu1 %vm845_vm2, %v3543_v53  ;;  %v5899_v53 = vld [vmem:[%s8243_s3 + $0x28] sm:$0xff] }
0x1f04   : > { %6316 = vmatprep.mubr.msk.f32.mxu1 %vm7046_vm1, %v7047_v16  ;;  %6315 = vmatpush3.msra.mxu1 %v5874_v34  ;;  %v6668_v34 = vpack.i.bf16 %v5899_v53, %v5898_v52 }
0x1f05   : > { %6324 = vmatprep.subr.mxu1 %v7047_v16 }
0x1fd2   : > { %v3451_v54 = vpop.f32.mrb[28].mxu1 }
0x1fd3   : > { %v6298_v56 = vpop.f32.mrb[29].mxu1  ;;  %6317 = vmatmul.mubr.msk.f32.vlgmr.msra.gmra.mrb[32].mxu1 %vm845_vm2, %v3451_v54  ;;  %v6504_v54 = vpack.c.bf16 %v5899_v53, %v5898_v52 }
0x1fd4   : > { %6326 = vmatprep.mubr.msk.f32.mxu1 %vm7046_vm1, %v7047_v16  ;;  %v5901_v56 = vld [vmem:[%s8243_s3 + $0x38] sm:$0xff] }
0x1fd6   : > { %v3616_v57 = vpop.f32.mrb[30].mxu1 }
0x1fd7   : > { %v6308_v59 = vpop.f32.mrb[31].mxu1  ;;  %6312 = vmatmul.mubr.msk.f32.vlgmr.msra.gmra.mrb[36].mxu0 %vm845_vm2, %v3616_v57 }
0x1fd8   : > { %6320 = vmatpush3.xpose.msk.msra.mxu0 %vm845_vm2, %v3769_v58  ;;  %6321 = vmatprep.mubr.msk.f32.mxu0 %vm7046_vm1, %v7047_v16 }
0x1fd9   : > { %6329 = vmatprep.subr.mxu0 %v7047_v16 }
0x1fdb   : > { %6322 = vmatmul.mubr.msk.f32.vlgmr.msra.gmra.mrb[38].mxu0 %vm845_vm2, %v3767_v40 }
0x1fdc   : > { %6331 = vmatprep.mubr.msk.f32.mxu0 %vm7046_vm1, %v7047_v16 }
0x20a6   : > { %v3762_v61 = vpop.f32.mrb[32].mxu1 }
0x20a7   : > { %v6318_v62 = vpop.f32.mrb[33].mxu1 }
0x20aa   : > { %v3689_v63 = vpop.f32.mrb[36].mxu0 }
0x20ab   : > { %v3763_v0 = vadd.f32 %v3762_v61, %v3689_v63  ;;  %v6313_v1 = vpop.f32.mrb[37].mxu0 }
0x20ae   : > { %v3840_v3 = vpop.f32.mrb[38].mxu0 }
0x20af   : > { %v6323_v2 = vpop.f32.mrb[39].mxu0  ;;  %v3844_v4 = vsel %vm845_vm2, %v3840_v3, -inf }
0x20b0   : > { %3845 = vmax.xlane.f32.xlu0 %v3844_v4 }
0x20c6   : > { %3855 = vrot.lane.b32.xlu0 %v7822_v19, %s8255_s16 }
0x20ca   : > { %4005 = vrot.lane.b32.xlu0 %v7829_v23, %s8246_s15  ;;  %v5876_v23 = vld [vmem:[%s8154_s7 + $0x30] sm:$0xff] }
0x20cb   : > { %6330 = vmatpush3.msra.mxu0 %v5876_v23 }
0x20cc   : > { %6339 = vmatprep.subr.mxu0 %v7047_v16 }
0x213d   : > { %v3846_v5 = vpop.xlane.xlu0 %3845 }
0x213e   : > { %v3847_v6 = vsub.f32 %v3840_v3, %v3846_v5 }
0x2140   : > { %v3848_v9 = vmul.f32 1.442695, %v3847_v6 }
0x2141   : > { %v3856_v10 = vpop.permute.xlu0 %3855 }
0x2142   : > { %6726 = vpow2.f32 %v3848_v9  ;;  %6325 = vmatpush3.msra.mxu1 %v3856_v10 }
0x2143   : > { %6334 = vmatprep.subr.mxu1 %v7047_v16 }
0x2145   : > { %v4006_v20 = vpop.permute.xlu0 %4005 }
0x214c   : > { %v6727_v11 = vpop.eup %6726 }
0x214d   : > { %v3850_v12 = vsel %vm845_vm2, %v6727_v11, 0.0 }
0x214e   : > { %3851 = vadd.xlane.f32.xlu1 %v3850_v12 }
0x215f   : > { %4007 = vrot.lane.b32.xlu1 %v7822_v19, %s8248_s9 }
0x21db   : > { %v3852_v14 = vpop.xlane.xlu1 %3851 }
0x21dc   : > { %6728 = vrcp.f32 %v3852_v14 }
0x21df   : > { %v4008_v18 = vpop.permute.xlu1 %4007 }
0x21e6   : > { %v6729_v15 = vpop.eup %6728 }
0x21e7   : > { %v3854_v17 = vmul.f32 %v6729_v15, %v6727_v11  ;;  %v4268_v15 = vrot.slane %v7805_v7, %v7630_v29 }
0x21e9   : > { %6327 = vmatmul.mubr.msk.f32.vlgmr.msra.gmra.mrb[34].mxu1 %vm845_vm2, %v3854_v17 }
0x21ea   : > { %6335 = vmatpush3.xpose.msk.msra.mxu1 %vm845_vm2, %v4008_v18  ;;  %6336 = vmatprep.mubr.msk.f32.mxu1 %vm7046_vm1, %v7047_v16 }
0x21eb   : > { %6344 = vmatprep.subr.mxu1 %v7047_v16 }
0x21ed   : > { %6337 = vmatmul.mubr.msk.f32.vlgmr.msra.gmra.mrb[36].mxu1 %vm845_vm2, %v4006_v20  ;;  %v4273_v20 = vrot.slane %v7810_v8, %v7630_v29 }
0x21ee   : > { %6346 = vmatprep.mubr.msk.f32.mxu1 %vm7046_vm1, %v7047_v16  ;;  %6345 = vmatpush3.msra.mxu1 %v5877_v37 }
0x21ef   : > { %6509 = vmatprep.subr.bf16.mxu1 %v7045_v13 }
0x22bc   : > { %v3927_v60 = vpop.f32.mrb[34].mxu1 }
0x22bd   : > { %v6328_v21 = vpop.f32.mrb[35].mxu1  ;;  %6332 = vmatmul.mubr.msk.f32.vlgmr.msra.gmra.mrb[40].mxu0 %vm845_vm2, %v3927_v60 }
0x22be   : > { %6341 = vmatprep.mubr.msk.f32.mxu0 %vm7046_vm1, %v7047_v16 }
0x22c0   : > { %v4079_v26 = vpop.f32.mrb[36].mxu1 }
0x22c1   : > { %v6338_v27 = vpop.f32.mrb[37].mxu1  ;;  %v4083_v28 = vsel %vm845_vm2, %v4079_v26, -inf }
0x22c2   : > { %4084 = vmax.xlane.f32.xlu1 %v4083_v28 }
0x234f   : > { %v4085_v31 = vpop.xlane.xlu1 %4084 }
0x2350   : > { %v4086_v32 = vsub.f32 %v4079_v26, %v4085_v31 }
0x2352   : > { %v4087_v33 = vmul.f32 1.442695, %v4086_v32 }
0x2354   : > { %6730 = vpow2.f32 %v4087_v33 }
0x235e   : > { %v6731_v35 = vpop.eup %6730 }
0x235f   : > { %v4089_v36 = vsel %vm845_vm2, %v6731_v35, 0.0 }
0x2360   : > { %4090 = vadd.xlane.f32.xlu0 %v4089_v36 }
0x2376   : > { %4094 = vrot.lane.b32.xlu0 %v7822_v19, %s8256_s14  ;;  %s8259_s14 = sshll.u32 %s7421_s12, 3 }
0x2377   : > { %s715_s28 = scalar_lea.vmem [#allocation14], %s8259_s14 }
0x2378   : > { %s5664_s1 = sshll.u32 %s715_s28, 4  ;;  %s8104_s1 = int_to_ptr.vmem [resolvable:$true] %s5664_s1 }
0x2390   : > { %v4000_v38 = vpop.f32.mrb[40].mxu0 }
0x2391   : > { %v4004_v41 = vadd.f32 %v4000_v38, %v3763_v0  ;;  %v6333_v42 = vpop.f32.mrb[41].mxu0  ;;  %v5902_v0 = vld [vmem:[#allocation7 + $0x1] ss:$0 sm:$0xff] }
0x23ed   : > { %v4091_v43 = vpop.xlane.xlu0 %4090 }
0x23ee   : > { %6732 = vrcp.f32 %v4091_v43 }
0x23f1   : > { %v4095_v44 = vpop.permute.xlu0 %4094 }
0x23f2   : > { %6340 = vmatpush3.msra.mxu0 %v4095_v44 }
0x23f3   : > { %6503 = vmatprep.subr.bf16.mxu0 %v7045_v13 }
0x23f8   : > { %v6733_v45 = vpop.eup %6732 }
0x23f9   : > { %v4093_v46 = vmul.f32 %v6733_v45, %v6731_v35 }
0x23fb   : > { %6342 = vmatmul.mubr.msk.f32.vlgmr.msra.gmra.mrb[42].mxu0 %vm845_vm2, %v4093_v46 }
0x23fc   : > { %6357 = vmatprep.mubr.msk.f32.mxu0 %vm7046_vm1, %v7047_v16  ;;  %6505 = vmatpush3.bf16.msra.mxu0 %v6504_v54  ;;  %v4284_v54 = vld [vmem:[#allocation8 + $0x28] sm:$0xff] }
0x23fd   : > { %6506 = vmatprep.subr.bf16.mxu0 %v7045_v13 }
0x24ce   : > { %v4166_v19 = vpop.f32.mrb[42].mxu0 }
0x24cf   : > { %v6343_v22 = vpop.f32.mrb[43].mxu0  ;;  %6347 = vmatmul.mubr.msk.f32.vlgmr.msra.gmra.mrb[38].mxu1 %vm845_vm2, %v4166_v19 }
0x24d0   : > { %6368 = vmatprep.mubr.msk.f32.mxu1 %vm7046_vm1, %v7047_v16 }
0x25a2   : > { %v4239_v47 = vpop.f32.mrb[38].mxu1 }
0x25a3   : > { %v4243_v25 = vadd.f32 %v4239_v47, %v4004_v41  ;;  %v6348_v48 = vpop.f32.mrb[39].mxu1 }
0x25a5   : > { %v4250_v49 = vadd.f32 %v5897_v24, %v4243_v25 }
0x25a7   : > { %v7926_v50 = vadd.f32 %v4250_v49, %v7782_v55  ;;  %v5900_v55 = vld [vmem:[%s8243_s3 + $0x30] sm:$0xff] }
0x25a8   : > { %v6673_v57 = vpack.i.bf16 %v5901_v56, %v5900_v55  ;;  %v6507_v58 = vpack.c.bf16 %v5901_v56, %v5900_v55 }
0x25a9   : > { %v4252_v51 = vsel %vm727_vm0, %v7926_v50, 0.0 }
0x25aa   : > { %4253 = vadd.xlane.f32.xlu1 %v4252_v51  ;;  %6674 = vrot.lane.b32.xlu0 %v6673_v57, %s8251_s22 }
0x25ab   : > { %6508 = vmatpush3.bf16.msra.mxu0 %v6507_v58 }
0x25ac   : > { %6371 = vmatprep.subr.mxu0 %v7047_v16 }
0x25ae   : > { %4384 = vrot.lane.b32.xlu0 %v5902_v0, %s8251_s22 }
0x261c   : > { %v6675_v2 = vpop.permute.xlu0 %6674 }
0x261d   : > { %v6677_v6 = vunpack.i.h.bf16 %v6675_v2  ;;  %v6676_v11 = vunpack.i.l.bf16 %v6675_v2 }
0x261f   : > { %v6513_v14 = vpack.c.bf16 %v6677_v6, %v6676_v11 }
0x2620   : > { %v4385_v21 = vpop.permute.xlu0 %4384 }
0x2637   : > { %v4254_v59 = vpop.xlane.xlu1 %4253 }
0x2638   : > { %v4255_v40 = vmul.f32 0.03125, %v4254_v59  ;;  %v4283_v59 = vld [vmem:[#allocation8 + $0x20] sm:$0xff] }
0x263a   : > { %v4256_v61 = vsub.f32 %v7926_v50, %v4255_v40 }
0x263c   : > { %v4257_v62 = vmul.f32 %v4256_v61, %v4256_v61 }
0x263e   : > { %v4258_v63 = vsel %vm727_vm0, %v4257_v62, 0.0 }
0x263f   : > { %4259 = vadd.xlane.f32.xlu1 %v4258_v63 }
0x2650   : > { %6669 = vrot.lane.b32.xlu1 %v6668_v34, %s8251_s22 }
0x26cc   : > { %v4260_v1 = vpop.xlane.xlu1 %4259 }
0x26cd   : > { %v4261_v3 = vmul.f32 0.03125, %v4260_v1 }
0x26cf   : > { %v4262_v4 = vadd.f32 1e-05, %v4261_v3 }
0x26d0   : > { %v6670_v5 = vpop.permute.xlu1 %6669 }
0x26d1   : > { %6734 = vrsqrt.f32 %v4262_v4  ;;  %v6672_v9 = vunpack.i.h.bf16 %v6670_v5  ;;  %v6671_v10 = vunpack.i.l.bf16 %v6670_v5 }
0x26d3   : > { %v6510_v12 = vpack.c.bf16 %v6672_v9, %v6671_v10 }
0x26d5   : > { %6511 = vmatpush3.bf16.msra.mxu1 %v6510_v12 }
0x26d6   : > { %6512 = vmatprep.subr.bf16.mxu1 %v7045_v13 }
0x26d9   : > { %6514 = vmatpush3.bf16.msra.mxu1 %v6513_v14 }
0x26da   : > { %6376 = vmatprep.subr.mxu1 %v7047_v16 }
0x26db   : > { %v6735_v17 = vpop.eup %6734 }
0x26dc   : > { %v4264_v18 = vmul.f32 %v6735_v17, %v4256_v61  ;;  %6369 = vmatmul.mubr.msk.f32.vlgmr.msra.gmra.mrb[40].mxu1 %vm727_vm0, %v7633_v30 }
0x26dd   : > { %6378 = vmatprep.mubr.msk.f32.mxu1 %vm7046_vm1, %v7047_v16 }
0x26de   : > { %v4269_v23 = vmul.f32 %v4268_v15, %v4264_v18 }
0x26e0   : > { %v4274_v60 = vadd.f32 %v4273_v20, %v4269_v23 }
0x26e2   : > { %6358 = vmatmul.mubr.msk.f32.vlgmr.msra.gmra.mrb[44].mxu0 %vm727_vm0, %v4274_v60 }
0x26e3   : > { %6373 = vmatprep.mubr.msk.f32.mxu0 %vm7046_vm1, %v7047_v16 }
0x27af   : > { %v4453_v26 = vpop.f32.mrb[40].mxu1 }
0x27b0   : > { %v7962_v27 = vadd.f32 %v4453_v26, %v4385_v21  ;;  %v6370_v28 = vpop.f32.mrb[41].mxu1 }
0x27b2   : > { %4623 = vrot.lane.b32.xlu1 %v7962_v27, %s8252_s27  ;;  %6372 = vmatpush3.xpose.msk.msra.mxu0 %vm845_vm2, %v7962_v27 }
0x27b3   : > { %6381 = vmatprep.subr.mxu0 %v7047_v16 }
0x27b5   : > { %v4364_v29 = vpop.f32.mrb[44].mxu0 }
0x27b6   : > { %v4365_v30 = vadd.f32 %v5902_v0, %v4364_v29  ;;  %v6359_v31 = vpop.f32.mrb[45].mxu0  ;;  %v4285_v29 = vld [vmem:[#allocation8 + $0x30] sm:$0xff] }
0x27b8   : > { %v7969_v32 = vmul.f32 0.35355338, %v4365_v30 }
0x27ba   : > { %4621 = vrot.lane.b32.xlu0 %v7969_v32, %s8252_s27  ;;  %6374 = vmatmul.mubr.msk.f32.vlgmr.msra.gmra.mrb[46].mxu0 %vm845_vm2, %v7969_v32  ;;  %s8258_s27 = sld [smem:[#allocation36_spill]] }
0x27bb   : > { %6383 = vmatprep.mubr.msk.f32.mxu0 %vm7046_vm1, %v7047_v16 }
0x2824   : > { %v4624_v33 = vpop.permute.xlu1 %4623 }
0x2825   : > { %6382 = vmatpush3.xpose.msk.msra.mxu0 %vm845_vm2, %v4624_v33 }
0x2826   : > { %6391 = vmatprep.subr.mxu0 %v7047_v16 }
0x282c   : > { %v4622_v35 = vpop.permute.xlu0 %4621 }
0x282d   : > { %6384 = vmatmul.mubr.msk.f32.vlgmr.msra.gmra.mrb[48].mxu0 %vm845_vm2, %v4622_v35 }
0x282e   : > { %6393 = vmatprep.mubr.msk.f32.mxu0 %vm7046_vm1, %v7047_v16  ;;  %6392 = vmatpush3.msra.mxu0 %v4284_v54 }
0x282f   : > { %6401 = vmatprep.subr.mxu0 %v7047_v16 }
0x288d   : > { %v4530_v36 = vpop.f32.mrb[46].mxu0 }
0x288e   : > { %v6375_v37 = vpop.f32.mrb[47].mxu0  ;;  %v4534_v38 = vsel %vm845_vm2, %v4530_v36, -inf }
0x288f   : > { %4535 = vmax.xlane.f32.xlu1 %v4534_v38 }
0x2900   : > { %v4695_v41 = vpop.f32.mrb[48].mxu0 }
0x2901   : > { %v6385_v42 = vpop.f32.mrb[49].mxu0  ;;  %v4699_v43 = vsel %vm845_vm2, %v4695_v41, -inf }
0x2902   : > { %4700 = vmax.xlane.f32.xlu0 %v4699_v43 }
0x291c   : > { %v4536_v44 = vpop.xlane.xlu1 %4535 }
0x291d   : > { %v4537_v45 = vsub.f32 %v4530_v36, %v4536_v44  ;;  %v4286_v44 = vld [vmem:[#allocation8 + $0x38] sm:$0xff] }
0x291f   : > { %v4538_v46 = vmul.f32 1.442695, %v4537_v45 }
0x2921   : > { %6736 = vpow2.f32 %v4538_v46 }
0x292b   : > { %v6737_v19 = vpop.eup %6736 }
0x292c   : > { %v4540_v22 = vsel %vm845_vm2, %v6737_v19, 0.0 }
0x292d   : > { %4541 = vadd.xlane.f32.xlu0 %v4540_v22 }
0x2943   : > { %4545 = vrot.lane.b32.xlu0 %v7962_v27, %s8251_s22 }
0x2947   : > { %4932 = vrot.lane.b32.xlu0 %v7969_v32, %s8244_s18 }
0x298f   : > { %v4701_v24 = vpop.xlane.xlu0 %4700 }
0x2990   : > { %v4702_v47 = vsub.f32 %v4695_v41, %v4701_v24 }
0x2992   : > { %v4703_v25 = vmul.f32 1.442695, %v4702_v47 }
0x2994   : > { %6738 = vpow2.f32 %v4703_v25 }
0x299e   : > { %v6739_v48 = vpop.eup %6738 }
0x299f   : > { %v4705_v49 = vsel %vm845_vm2, %v6739_v48, 0.0 }
0x29a0   : > { %4706 = vadd.xlane.f32.xlu1 %v4705_v49 }
0x29b1   : > { %4710 = vrot.lane.b32.xlu1 %v7962_v27, %s8245_s23  ;;  %s6954_s23 = scalar_lea.vmem %s8104_s1, 128 }
0x29b2   : > { %p6955_p12 = scmp.ne.s32.totalorder %s8104_s1, %s6954_s23 }
0x29b4   : > { %p6956_p7 = pnand %p6955_p12, %p8261_p5 }
0x29b5   : > { %4934 = vrot.lane.b32.xlu1 %v7962_v27, %s8244_s18  ;;  %s5651_s18 = scalar_lea.sflag [#allocation4], %s7421_s12 }
0x29b6   : > { %p6957_p4 = pneg %p6956_p7 }
0x29ba   : > { %v4542_v51 = vpop.xlane.xlu0 %4541 }
0x29bb   : > { %6740 = vrcp.f32 %v4542_v51 }
0x29be   : > { %v4546_v52 = vpop.permute.xlu0 %4545 }
0x29bf   : > { %6377 = vmatpush3.msra.mxu1 %v4546_v52 }
0x29c0   : > { %6386 = vmatprep.subr.mxu1 %v7047_v16 }
0x29c2   : > { %v4933_v1 = vpop.permute.xlu0 %4932 }
0x29c5   : > { %v6741_v53 = vpop.eup %6740 }
0x29c6   : > { %v4544_v34 = vmul.f32 %v6741_v53, %v6737_v19 }
0x29c8   : > { %6379 = vmatmul.mubr.msk.f32.vlgmr.msra.gmra.mrb[42].mxu1 %vm845_vm2, %v4544_v34 }
0x29c9   : > { %6388 = vmatprep.mubr.msk.f32.mxu1 %vm7046_vm1, %v7047_v16 }
0x2a2d   : > { %v4707_v55 = vpop.xlane.xlu1 %4706 }
0x2a2e   : > { %6742 = vrcp.f32 %v4707_v55 }
0x2a31   : > { %v4711_v56 = vpop.permute.xlu1 %4710 }
0x2a32   : > { %6387 = vmatpush3.msra.mxu1 %v4711_v56 }
0x2a33   : > { %6396 = vmatprep.subr.mxu1 %v7047_v16 }
0x2a35   : > { %v4935_v63 = vpop.permute.xlu1 %4934 }
0x2a38   : > { %v6743_v57 = vpop.eup %6742 }
0x2a39   : > { %v4709_v58 = vmul.f32 %v6743_v57, %v6739_v48  ;;  %v5921_v48 = vld [vmem:[#allocation10 + $0x1] ss:$0 sm:$0xff] }
0x2a3b   : > { %6389 = vmatmul.mubr.msk.f32.vlgmr.msra.gmra.mrb[44].mxu1 %vm845_vm2, %v4709_v58 }
0x2a3c   : > { %6397 = vmatpush3.msra.mxu1 %v4283_v59  ;;  %6398 = vmatprep.mubr.msk.f32.mxu1 %vm7046_vm1, %v7047_v16 }
0x2a3d   : > { %6406 = vmatprep.subr.mxu1 %v7047_v16 }
0x2a9b   : > { %v4617_v40 = vpop.f32.mrb[42].mxu1 }
0x2a9c   : > { %v6380_v61 = vpop.f32.mrb[43].mxu1  ;;  %6399 = vmatmul.mubr.msk.f32.vlgmr.msra.gmra.mrb[46].mxu1 %vm845_vm2, %v4617_v40  ;;  %v5442_v40 = vld [vmem:[#allocation11 + $0x20] sm:$0xff] }
0x2a9d   : > { %6408 = vmatprep.mubr.msk.f32.mxu1 %vm7046_vm1, %v7047_v16  ;;  %v5443_v61 = vld [vmem:[#allocation11 + $0x28] sm:$0xff] }
0x2b0e   : > { %v4782_v62 = vpop.f32.mrb[44].mxu1 }
0x2b0f   : > { %v6390_v0 = vpop.f32.mrb[45].mxu1  ;;  %6394 = vmatmul.mubr.msk.f32.vlgmr.msra.gmra.mrb[50].mxu0 %vm845_vm2, %v4782_v62  ;;  %v5444_v62 = vld [vmem:[#allocation11 + $0x30] sm:$0xff] }
0x2b10   : > { %6402 = vmatpush3.xpose.msk.msra.mxu0 %vm845_vm2, %v4935_v63  ;;  %6403 = vmatprep.mubr.msk.f32.mxu0 %vm7046_vm1, %v7047_v16  ;;  %v5445_v63 = vld [vmem:[#allocation11 + $0x38] sm:$0xff] }
0x2b11   : > { %6411 = vmatprep.subr.mxu0 %v7047_v16  ;;  %v6519_v0 = vpack.c.bf16 %v5445_v63, %v5444_v62 }
0x2b13   : > { %6404 = vmatmul.mubr.msk.f32.vlgmr.msra.gmra.mrb[52].mxu0 %vm845_vm2, %v4933_v1  ;;  %v5925_v1 = vld [vmem:[%s8249_s17 + $0x48] sm:$0xff] }
0x2b14   : > { %6413 = vmatprep.mubr.msk.f32.mxu0 %vm7046_vm1, %v7047_v16  ;;  %6412 = vmatpush3.msra.mxu0 %v4285_v29 }
0x2b15   : > { %6421 = vmatprep.subr.mxu0 %v7047_v16 }
0x2b6f   : > { %v4928_v3 = vpop.f32.mrb[46].mxu1 }
0x2b70   : > { %v6400_v2 = vpop.f32.mrb[47].mxu1 }
0x2be2   : > { %v4855_v4 = vpop.f32.mrb[50].mxu0 }
0x2be3   : > { %v4929_v5 = vadd.f32 %v4928_v3, %v4855_v4  ;;  %v6395_v6 = vpop.f32.mrb[51].mxu0  ;;  %v5926_v3 = vld [vmem:[%s8249_s17 + $0x50] sm:$0xff]  ;;  %v5927_v4 = vld [vmem:[%s8249_s17 + $0x58] sm:$0xff] }
0x2be4   : > { %v5928_v6 = vld [vmem:[%s8249_s17 + $0x60] sm:$0xff] }
0x2be6   : > { %v5006_v9 = vpop.f32.mrb[52].mxu0 }
0x2be7   : > { %v6405_v10 = vpop.f32.mrb[53].mxu0  ;;  %v5010_v11 = vsel %vm845_vm2, %v5006_v9, -inf }
0x2be8   : > { %5011 = vmax.xlane.f32.xlu1 %v5010_v11 }
0x2bf9   : > { %5173 = vrot.lane.b32.xlu1 %v7962_v27, %s8246_s15 }
0x2bfd   : > { %5171 = vrot.lane.b32.xlu1 %v7969_v32, %s8246_s15  ;;  %s6958_s15 = sshll.u32 %s7059_s2, 4  ;;  %s6959_s15 = int_to_ptr.vmem [resolvable:$false] %s6958_s15 }
0x2bfe   : > { %p6961_p1 = scmp.lt.s32.totalorder %s8104_s1, %s6959_s15 }
0x2c75   : > { %v5012_v12 = vpop.xlane.xlu1 %5011 }
0x2c76   : > { %v5013_v14 = vsub.f32 %v5006_v9, %v5012_v12  ;;  %v5929_v9 = vld [vmem:[%s8249_s17 + $0x68] sm:$0xff] }
0x2c77   : > { %v6528_v10 = vpack.c.bf16 %v5929_v9, %v5928_v6 }
0x2c78   : > { %v5014_v15 = vmul.f32 1.442695, %v5013_v14 }
0x2c79   : > { %v5174_v21 = vpop.permute.xlu1 %5173 }
0x2c7a   : > { %6744 = vpow2.f32 %v5014_v15  ;;  %v5434_v15 = vrot.slane %v7805_v7, %v7760_v39  ;;  %v5922_v7 = vld [vmem:[#allocation13 + $0x1] ss:$0 sm:$0xff] }
0x2c7d   : > { %v5172_v28 = vpop.permute.xlu1 %5171 }
0x2c84   : > { %v6745_v17 = vpop.eup %6744 }
0x2c85   : > { %v5016_v18 = vsel %vm845_vm2, %v6745_v17, 0.0 }
0x2c86   : > { %5017 = vadd.xlane.f32.xlu0 %v5016_v18 }
0x2c9c   : > { %5021 = vrot.lane.b32.xlu0 %v7962_v27, %s8247_s19  ;;  %s8257_s19 = sld [smem:[#allocation35_spill]] }
0x2d13   : > { %v5018_v20 = vpop.xlane.xlu0 %5017 }
0x2d14   : > { %6746 = vrcp.f32 %v5018_v20  ;;  %v5439_v20 = vrot.slane %v7810_v8, %v7760_v39  ;;  %v5934_v8 = vld [vmem:[%s8250_s11 + $0x1] ss:$0 sm:$0xff] }
0x2d17   : > { %v5022_v23 = vpop.permute.xlu0 %5021 }
0x2d18   : > { %6407 = vmatpush3.msra.mxu1 %v5022_v23 }
0x2d19   : > { %6416 = vmatprep.subr.mxu1 %v7047_v16 }
0x2d1e   : > { %v6747_v60 = vpop.eup %6746 }
0x2d1f   : > { %v5020_v26 = vmul.f32 %v6747_v60, %v6745_v17 }
0x2d21   : > { %6409 = vmatmul.mubr.msk.f32.vlgmr.msra.gmra.mrb[48].mxu1 %vm845_vm2, %v5020_v26 }
0x2d22   : > { %6417 = vmatpush3.xpose.msk.msra.mxu1 %vm845_vm2, %v5174_v21  ;;  %6418 = vmatprep.mubr.msk.f32.mxu1 %vm7046_vm1, %v7047_v16  ;;  %v5931_v21 = vld [vmem:[%s8249_s17 + $0x78] sm:$0xff] }
0x2d23   : > { %6426 = vmatprep.subr.mxu1 %v7047_v16 }
0x2d25   : > { %6419 = vmatmul.mubr.msk.f32.vlgmr.msra.gmra.mrb[50].mxu1 %vm845_vm2, %v5172_v28 }
0x2d26   : > { %6428 = vmatprep.mubr.msk.f32.mxu1 %vm7046_vm1, %v7047_v16  ;;  %6427 = vmatpush3.msra.mxu1 %v4286_v44 }
0x2d27   : > { %6521 = vmatprep.subr.bf16.mxu1 %v7045_v13 }
0x2df4   : > { %v5093_v30 = vpop.f32.mrb[48].mxu1 }
0x2df5   : > { %v6410_v31 = vpop.f32.mrb[49].mxu1  ;;  %6414 = vmatmul.mubr.msk.f32.vlgmr.msra.gmra.mrb[54].mxu0 %vm845_vm2, %v5093_v30 }
0x2df6   : > { %6423 = vmatprep.mubr.msk.f32.mxu0 %vm7046_vm1, %v7047_v16 }
0x2df8   : > { %v5245_v32 = vpop.f32.mrb[50].mxu1 }
0x2df9   : > { %v6420_v33 = vpop.f32.mrb[51].mxu1  ;;  %v5249_v35 = vsel %vm845_vm2, %v5245_v32, -inf }
0x2dfa   : > { %5250 = vmax.xlane.f32.xlu0 %v5249_v35 }
0x2e10   : > { %5260 = vrot.lane.b32.xlu0 %v7962_v27, %s8248_s9 }
0x2e87   : > { %v5251_v36 = vpop.xlane.xlu0 %5250 }
0x2e88   : > { %v5252_v37 = vsub.f32 %v5245_v32, %v5251_v36 }
0x2e8a   : > { %v5253_v38 = vmul.f32 1.442695, %v5252_v37 }
0x2e8b   : > { %v5261_v41 = vpop.permute.xlu0 %5260 }
0x2e8c   : > { %6748 = vpow2.f32 %v5253_v38  ;;  %6422 = vmatpush3.msra.mxu0 %v5261_v41 }
0x2e8d   : > { %6515 = vmatprep.subr.bf16.mxu0 %v7045_v13 }
0x2e96   : > { %v6749_v42 = vpop.eup %6748 }
0x2e97   : > { %v5255_v43 = vsel %vm845_vm2, %v6749_v42, 0.0 }
0x2e98   : > { %5256 = vadd.xlane.f32.xlu1 %v5255_v43 }
0x2ec8   : > { %v5166_v45 = vpop.f32.mrb[54].mxu0 }
0x2ec9   : > { %v5170_v46 = vadd.f32 %v5166_v45, %v4929_v5  ;;  %v6415_v19 = vpop.f32.mrb[55].mxu0  ;;  %v6525_v5 = vpack.c.bf16 %v5927_v4, %v5926_v3 }
0x2f25   : > { %v5257_v27 = vpop.xlane.xlu1 %5256 }
0x2f26   : > { %6750 = vrcp.f32 %v5257_v27  ;;  %v5935_v27 = vld [vmem:[%s8257_s19] ss:$0 sm:$0xff]  ;;  %s6960_s19 = scalar_lea.vmem %s6959_s15, 256 }
0x2f27   : > { %p6962_p3 = scmp.lt.s32.totalorder %s6960_s19, %s6954_s23 }
0x2f29   : > { %p6963_p9 = por %p6962_p3, %p6961_p1 }
0x2f2b   : > { %p6964_p13 = pnand %p6963_p9, %p6957_p4 }
0x2f30   : > { %v6751_v22 = vpop.eup %6750 }
0x2f31   : > { %v5259_v24 = vmul.f32 %v6751_v22, %v6749_v42 }
0x2f33   : > { %6424 = vmatmul.mubr.msk.f32.vlgmr.msra.gmra.mrb[56].mxu0 %vm845_vm2, %v5259_v24  ;;  %v5936_v24 = vld [vmem:[%s8258_s27] ss:$0 sm:$0xff] }
0x2f34   : > { %6439 = vmatprep.mubr.msk.f32.mxu0 %vm7046_vm1, %v7047_v16 }
0x3006   : > { %v5332_v47 = vpop.f32.mrb[56].mxu0 }
0x3007   : > { %v6425_v25 = vpop.f32.mrb[57].mxu0  ;;  %6429 = vmatmul.mubr.msk.f32.vlgmr.msra.gmra.mrb[52].mxu1 %vm845_vm2, %v5332_v47 }
0x3008   : > { %6458 = vmatprep.mubr.msk.f32.mxu1 %vm7046_vm1, %v7047_v16  ;;  %v6516_v16 = vpack.c.bf16 %v5443_v61, %v5442_v40 }
0x300a   : > { %6517 = vmatpush3.bf16.msra.mxu0 %v6516_v16 }
0x300b   : > { %6518 = vmatprep.subr.bf16.mxu0 %v7045_v13 }
0x300e   : > { %6520 = vmatpush3.bf16.msra.mxu0 %v6519_v0 }
0x30da   : > { %v5405_v49 = vpop.f32.mrb[52].mxu1 }
0x30db   : > { %v5409_v51 = vadd.f32 %v5405_v49, %v5170_v46  ;;  %v6430_v52 = vpop.f32.mrb[53].mxu1 }
0x30dd   : > { %v5416_v53 = vadd.f32 %v5921_v48, %v5409_v51 }
0x30df   : > { %v5417_v34 = vadd.f32 %v5416_v53, %v7926_v50  ;;  %v5924_v50 = vld [vmem:[%s8249_s17 + $0x40] sm:$0xff] }
0x30e0   : > { %v6522_v2 = vpack.c.bf16 %v5925_v1, %v5924_v50 }
0x30e1   : > { %v5418_v54 = vsel %vm727_vm0, %v5417_v34, 0.0 }
0x30e2   : > { %5419 = vadd.xlane.f32.xlu1 %v5418_v54  ;;  %6523 = vmatpush3.bf16.msra.mxu1 %v6522_v2 }
0x30e3   : > { %6524 = vmatprep.subr.bf16.mxu1 %v7045_v13 }
0x30e6   : > { %6526 = vmatpush3.bf16.msra.mxu1 %v6525_v5 }
0x30e7   : > { %6527 = vmatprep.subr.bf16.mxu1 %v7045_v13 }
0x30ea   : > { %6529 = vmatpush3.bf16.msra.mxu1 %v6528_v10 }
0x30eb   : > { %6530 = vmatprep.subr.bf16.mxu1 %v7045_v13  ;;  %v5930_v13 = vld [vmem:[%s8249_s17 + $0x70] sm:$0xff] }
0x30ec   : > { %v6531_v26 = vpack.c.bf16 %v5931_v21, %v5930_v13 }
0x30ee   : > { %6532 = vmatpush3.bf16.msra.mxu1 %v6531_v26 }
0x316f   : > { %v5420_v55 = vpop.xlane.xlu1 %5419 }
0x3170   : > { %v5421_v56 = vmul.f32 0.03125, %v5420_v55 }
0x3172   : > { %v5422_v57 = vsub.f32 %v5417_v34, %v5421_v56 }
0x3174   : > { %v5423_v58 = vmul.f32 %v5422_v57, %v5422_v57 }
0x3176   : > { %v5424_v59 = vsel %vm727_vm0, %v5423_v58, 0.0 }
0x3177   : > { %5425 = vadd.xlane.f32.xlu1 %v5424_v59 }
0x3204   : > { %v5426_v11 = vpop.xlane.xlu1 %5425 }
0x3205   : > { %v5427_v12 = vmul.f32 0.03125, %v5426_v11 }
0x3207   : > { %v5428_v14 = vadd.f32 1e-05, %v5427_v12 }
0x3209   : > { %6752 = vrsqrt.f32 %v5428_v14 }
0x3213   : > { %v6753_v17 = vpop.eup %6752 }
0x3214   : > { %v5430_v18 = vmul.f32 %v6753_v17, %v5422_v57 }
0x3216   : > { %v5435_v23 = vmul.f32 %v5434_v15, %v5430_v18 }
0x3218   : > { %v5440_v60 = vadd.f32 %v5439_v20, %v5435_v23 }
0x321a   : > { %6440 = vmatmul.mubr.msk.f32.vlgmr.msra.gmra.mrb[58].mxu0 %vm727_vm0, %v5440_v60 }
0x32ed   : > { %v5523_v28 = vpop.f32.mrb[58].mxu0 }
0x32ee   : > { %v5524_v29 = vadd.f32 %v5922_v7, %v5523_v28  ;;  %v6441_v30 = vpop.f32.mrb[59].mxu0 }
0x32f0   : > { %v5527_v31 = vmax.f32 %v5524_v29, 0.0 }
0x32f2   : > { %6459 = vmatmul.mubr.msk.f32.vlgmr.msra.gmra.mrb[54].mxu1 %vm3086_vm3, %v5527_v31 }
0x33c5   : > { %v5606_v39 = vpop.f32.mrb[54].mxu1 }
0x33c6   : > { %v5610_v32 = vadd.f32 %v5606_v39, %v5417_v34  ;;  %v6460_v33 = vpop.f32.mrb[55].mxu1 }
0x33c8   : > { %v5619_v35 = vadd.f32 %v5934_v8, %v5610_v32 }
0x33ca   : > { %v5622_v36 = vsel %vm727_vm0, %v5619_v35, 0.0 }
0x33cb   : > { %5623 = vadd.xlane.f32.xlu1 %v5622_v36 }
0x3458   : > { %v5624_v37 = vpop.xlane.xlu1 %5623 }
0x3459   : > { %v5625_v38 = vmul.f32 0.03125, %v5624_v37 }
0x345b   : > { %v5626_v41 = vsub.f32 %v5619_v35, %v5625_v38 }
0x345d   : > { %v5627_v42 = vmul.f32 %v5626_v41, %v5626_v41 }
0x345f   : > { %v5628_v43 = vsel %vm727_vm0, %v5627_v42, 0.0 }
0x3460   : > { %5629 = vadd.xlane.f32.xlu1 %v5628_v43 }
0x34ed   : > { %v5630_v44 = vpop.xlane.xlu1 %5629 }
0x34ee   : > { %v5631_v45 = vmul.f32 0.03125, %v5630_v44 }
0x34f0   : > { %v5632_v46 = vadd.f32 1e-05, %v5631_v45 }
0x34f2   : > { %6754 = vrsqrt.f32 %v5632_v46 }
0x34fc   : > { %v6755_v19 = vpop.eup %6754 }
0x34fd   : > { %v5634_v22 = vmul.f32 %v6755_v19, %v5626_v41 }
0x34ff   : > { %v5641_v47 = vmul.f32 %v5935_v27, %v5634_v22 }
0x3501   : > { %v5648_v25 = vadd.f32 %v5936_v24, %v5641_v47 }
0x3503   : > { %5649 = vst.msk [vmem:[%s715_s28] sm:$0xff] %vm727_vm0, %v5648_v25 }
0x3504   : > { %6967 = shalt.err (!%p6964_p13)
}
0x3505   : > { %s6968_s12 = scalar_lea.hbm %s8102_s5, 128  ;;  %s6972_s27 = scalar_lea.hbm %s8260_s4, 256 }
0x3506   : > { %p6969_p0 = scmp.ne.s32.totalorder %s8102_s5, %s6968_s12  ;;  %p6973_p10 = scmp.lt.u32.totalorder %s8102_s5, %s8260_s4 }
0x3507   : > { %p6974_p11 = scmp.lt.u32.totalorder %s6972_s27, %s6968_s12  ;;  %p6976_p12 = scmp.lt.u32.totalorder %s6968_s12, %s8102_s5 }
0x3508   : > { %p6970_p2 = pnand %p6969_p0, %p8261_p5 }
0x3509   : > { %p6975_p6 = por %p6974_p11, %p6973_p10 }
0x350a   : > { %p6971_p8 = pneg %p6970_p2 }
0x350b   : > { %p6977_p7 = por %p6976_p12, %p6975_p6 }
0x350d   : > { %p6978_p4 = pnand %p6977_p7, %p6971_p8 }
0x350f   : > { %6981 = shalt.err (!%p6978_p4)
}
0x3510   : > { %6559 = dma.vmem_to_hbm [thread:$0]  (%p8261_p5), %s8104_s1, 128, %s8102_s5, %s5651_s18  }
0x3511 PF: > { %s5676_s28 = sand.u32 1, %s7020_s0   ;;  %p8262_p1 = scmp.ne.s32.totalorder %s8229_s25, 0 }
0x3512   : > { %p8263_p3 = scmp.ge.s32.totalorder %s7032_s21, 2  ;;  %s5677_s16 = scalar_lea.sflag [#allocation4], %s5676_s28 }
0x3514   : > { %p6585_p9 = pnand %p8263_p3, %p8262_p1 }
0x3516   : > { %7015 = dma.done.wait (!%p6585_p9), %s5677_s16, 128  }
0x3517   : > { %7017 = vsyncadd (!%p6585_p9), %s5677_s16, 4294967168  ;;  %s8264_s10 = sld [smem:[#allocation20_spill]]  ;;  %p35_p13 = scmp.ge.s32.totalorder %s7345_s24, 4  }
0x3518   : > { %s8265_s0 = smov %s7024_s30  ;;  %s8266_s30 = smov %s7028_s20 }
0x3519   : > { %s8268_s21 = smov %s7345_s24  ;;  %37 = sbr.rel (!%p35_p13) target bundleno = 26 (0x1a), region = 182 }
0x351d   : > { %s8267_s20 = smov %s8264_s10 }
0x3520   :  { %5682 = vsyncpa [#allocation3], 1 }
0x3521   :  { %5684 = vsyncpa [#allocation3 + $0x1], 1 }
0x3522   :  { %5685 = vsyncpa [#allocation6], 1 }
0x3523   :  { %5686 = vsyncpa [#allocation9], 1 }
0x3524   :  { %5687 = vsyncpa [#allocation12], 1 }
0x3525   :  { %5688 = vsyncpa [#allocation4], 1 }
0x3526   :  { %5690 = vsyncpa [#allocation4 + $0x1], 1 }

</bundles_post_ra>
